<compile_context>
chip_gen: v6e
topology: v6e:2x2x1
jax: 0.10.0
libtpu: 0.0.40
codegen_flags: <defaults>
</compile_context>

<pallas_src>
import functools

import jax
import jax.numpy as jnp
from jax.experimental import pallas as pl
from jax.experimental.pallas import tpu as pltpu


# ----------------------------------------------------------------------------
# Pallas kernel: single invocation, whole recurrence unrolled over time.
# ----------------------------------------------------------------------------
def _odernn_kernel(T, L, D,
                   dt_ref, x_ref,
                   wode_ref, bode_ref,
                   wur1_ref, bur1_ref, wur2_ref, bur2_ref,
                   wn1_ref, bn1_ref, wn2_ref, bn2_ref,
                   out_ref):
    B = out_ref.shape[0]
    bf = jnp.bfloat16

    # Hoisted bias broadcasts (f32) -- JAX does not CSE broadcast_in_dim, so
    # keep them out of the (unrolled) time loop.
    b_ode = jnp.broadcast_to(bode_ref[...], (B, L))
    b_ur1 = jnp.broadcast_to(bur1_ref[...], (B, bur1_ref.shape[1]))   # (B, 2H)
    b_ur2 = jnp.broadcast_to(bur2_ref[...], (B, 2 * L))
    b_n1 = jnp.broadcast_to(bn1_ref[...], (B, bn1_ref.shape[1]))      # (B, H)
    b_n2 = jnp.broadcast_to(bn2_ref[...], (B, 2 * L))

    def step(i, y, std):
        dt = dt_ref[i]                       # scalar f32 from SMEM
        x = x_ref[i]                         # (B, D) f32, static index (unrolled)

        # ---- ODE evolution: explicit Euler step (the "small step" branch) ----
        dy = jnp.tanh(
            jnp.dot(y.astype(bf), wode_ref[...],
                    preferred_element_type=jnp.float32) + b_ode)
        y_ode = y + dy * dt                  # == ode_sol[:, :, -1, :]

        # ---- GRU_unit: fused update|reset gates ----
        cat = jnp.concatenate([y_ode, std, x], axis=-1).astype(bf)   # (B, 2L+D)
        h = jnp.tanh(
            jnp.dot(cat, wur1_ref[...],
                    preferred_element_type=jnp.float32) + b_ur1)     # (B, 2H)
        gates = jax.nn.sigmoid(
            jnp.dot(h.astype(bf), wur2_ref[...],
                    preferred_element_type=jnp.float32) + b_ur2)     # (B, 2L)
        update_gate = gates[:, :L]
        reset_gate = gates[:, L:]

        # ---- new state net ----
        cat2 = jnp.concatenate([y_ode * reset_gate, std * reset_gate, x],
                               axis=-1).astype(bf)                   # (B, 2L+D)
        h2 = jnp.tanh(
            jnp.dot(cat2, wn1_ref[...],
                    preferred_element_type=jnp.float32) + b_n1)      # (B, H)
        ns = (jnp.dot(h2.astype(bf), wn2_ref[...],
                      preferred_element_type=jnp.float32) + b_n2)    # (B, 2L)
        new_state = ns[:, :L]
        new_state_std = jnp.abs(ns[:, L:])

        new_y = (1.0 - update_gate) * new_state + update_gate * y_ode
        new_y_std = (1.0 - update_gate) * new_state_std + update_gate * std

        # masked update: second half of the feature dim is the observation mask
        mask = (jnp.sum(x[:, D // 2:], axis=-1, keepdims=True) > 0.0
                ).astype(jnp.float32)
        new_y = mask * new_y + (1.0 - mask) * y_ode
        new_y_std = jnp.abs(mask * new_y_std + (1.0 - mask) * std)
        return new_y, new_y_std

    y = jnp.zeros((B, L), jnp.float32)
    std = jnp.zeros((B, L), jnp.float32)
    # Trace-time fully-unrolled time loop (T is static & small); identical
    # emitted code to lax.fori_loop(0, T, ..., unroll=True).
    for i in range(T):
        y, std = step(i, y, std)

    # Single packed [mean | std] store -- the only HBM writeback of the kernel.
    out_ref[...] = jnp.concatenate([y, std], axis=-1)


# ----------------------------------------------------------------------------
# Parameter init (mimics utils.init_network_weights: W ~ N(0, 0.1), b = 0)
# ----------------------------------------------------------------------------
def make_params(key, latent_dim, input_dim, n_units):
    L, D, H = latent_dim, input_dim, n_units
    ks = jax.random.split(key, 7)

    def w(k, shape):
        return (0.1 * jax.random.normal(k, shape)).astype(jnp.float32)

    z = lambda shape: jnp.zeros(shape, jnp.float32)
    return dict(
        # synthetic linear ODE vector field  f(y) = tanh(y @ W + b)
        w_ode=w(ks[0], (L, L)), b_ode=z((1, L)),
        # update gate MLP
        wu1=w(ks[1], (2 * L + D, H)), bu1=z((1, H)),
        wu2=w(ks[2], (H, L)), bu2=z((1, L)),
        # reset gate MLP
        wr1=w(ks[3], (2 * L + D, H)), br1=z((1, H)),
        wr2=w(ks[4], (H, L)), br2=z((1, L)),
        # new state MLP
        wn1=w(ks[5], (2 * L + D, H)), bn1=z((1, H)),
        wn2=w(ks[6], (H, 2 * L)), bn2=z((1, 2 * L)),
    )


# ----------------------------------------------------------------------------
# Wrapper: fuse / cast weights, build time-major input, launch one pallas_call
# ----------------------------------------------------------------------------
def encoder_z0_odernn_forward(data, time_steps, params, latent_dim):
    B, T, D = data.shape
    L = latent_dim
    H = params["wu1"].shape[1]
    bf = jnp.bfloat16

    # time-major input (whole array is resident in VMEM for the single call)
    x_tm = jnp.transpose(data, (1, 0, 2)).astype(jnp.float32)        # (T, B, D)

    # dt[0] = t_0 - (t_0 - 0.01) = 0.01 ; dt[i] = t_i - t_{i-1}
    ts = time_steps.astype(jnp.float32)
    dt = jnp.concatenate([jnp.full((1,), 0.01, jnp.float32), ts[1:] - ts[:-1]])

    # --- fused / bf16 weight packing (matmul operands bf16, biases f32) ---
    w_ode = params["w_ode"].astype(bf)
    b_ode = params["b_ode"].astype(jnp.float32)

    # update|reset first layers side-by-side -> (2L+D, 2H), 2H == 128 lanes
    wur1 = jnp.concatenate([params["wu1"], params["wr1"]], axis=1).astype(bf)
    bur1 = jnp.concatenate([params["bu1"], params["br1"]], axis=1
                           ).astype(jnp.float32)
    # second layers block-diagonal -> (2H, 2L); exact (zeros add nothing)
    wur2 = jnp.zeros((2 * H, 2 * L), jnp.float32)
    wur2 = wur2.at[:H, :L].set(params["wu2"])
    wur2 = wur2.at[H:, L:].set(params["wr2"]).astype(bf)
    bur2 = jnp.concatenate([params["bu2"], params["br2"]], axis=1
                           ).astype(jnp.float32)

    wn1 = params["wn1"].astype(bf)
    bn1 = params["bn1"].astype(jnp.float32)
    wn2 = params["wn2"].astype(bf)
    bn2 = params["bn2"].astype(jnp.float32)

    weights = [w_ode, b_ode, wur1, bur1, wur2, bur2, wn1, bn1, wn2, bn2]

    in_specs = (
        [pl.BlockSpec(memory_space=pltpu.MemorySpace.SMEM)]          # dt (T,)
        + [pl.BlockSpec(memory_space=pltpu.MemorySpace.VMEM)
           for _ in range(1 + len(weights))]                         # x + weights
    )

    kernel = functools.partial(_odernn_kernel, T, L, D)

    out = pl.pallas_call(
        kernel,
        out_shape=jax.ShapeDtypeStruct((B, 2 * L), jnp.float32),
        in_specs=in_specs,
        out_specs=pl.BlockSpec(memory_space=pltpu.MemorySpace.VMEM),
    )(dt, x_tm, *weights)

    mean_z0 = out[:, :L]
    std_z0 = out[:, L:]
    return mean_z0, std_z0


# ----------------------------------------------------------------------------
# Pure-JAX reference (mirrors GRU_unit.forward + run_odernn Euler branch),
# using the same bf16-operand / f32-accumulation matmul policy as the kernel.
# ----------------------------------------------------------------------------
def reference_forward(data, time_steps, params, latent_dim):
    B, T, D = data.shape
    L = latent_dim
    ts = time_steps.astype(jnp.float32)
    dt = jnp.concatenate([jnp.full((1,), 0.01, jnp.float32), ts[1:] - ts[:-1]])
    p = params

    def mm(a, w):
        return jnp.dot(a.astype(jnp.bfloat16), w.astype(jnp.bfloat16),
                       preferred_element_type=jnp.float32)

    y = jnp.zeros((B, L), jnp.float32)
    std = jnp.zeros((B, L), jnp.float32)
    for i in range(T):
        x = data[:, i, :].astype(jnp.float32)
        y_ode = y + jnp.tanh(mm(y, p["w_ode"]) + p["b_ode"]) * dt[i]
        yc = jnp.concatenate([y_ode, std, x], axis=-1)
        u = jax.nn.sigmoid(mm(jnp.tanh(mm(yc, p["wu1"]) + p["bu1"]),
                              p["wu2"]) + p["bu2"])
        r = jax.nn.sigmoid(mm(jnp.tanh(mm(yc, p["wr1"]) + p["br1"]),
                              p["wr2"]) + p["br2"])
        c2 = jnp.concatenate([y_ode * r, std * r, x], axis=-1)
        ns = mm(jnp.tanh(mm(c2, p["wn1"]) + p["bn1"]), p["wn2"]) + p["bn2"]
        new_state, new_state_std = ns[:, :L], jnp.abs(ns[:, L:])
        new_y = (1.0 - u) * new_state + u * y_ode
        new_y_std = (1.0 - u) * new_state_std + u * std
        mask = (jnp.sum(x[:, D // 2:], axis=-1, keepdims=True) > 0.0
                ).astype(jnp.float32)
        new_y = mask * new_y + (1.0 - mask) * y_ode
        new_y_std = jnp.abs(mask * new_y_std + (1.0 - mask) * std)
        y, std = new_y, new_y_std
    return y, std


if __name__ == "__main__":
    key = jax.random.PRNGKey(0)
    B, T, D_obs, L, H = 8, 8, 8, 32, 64     # n_traj, n_tp, obs dims, latent, n_gru_units
    D = 2 * D_obs                           # input_dim = observations ++ mask

    k_obs, k_mask, k_par = jax.random.split(key, 3)
    obs = jax.random.normal(k_obs, (B, T, D_obs), dtype=jnp.float32)
    mask = (jax.random.uniform(k_mask, (B, T, D_obs)) > 0.4).astype(jnp.float32)
    mask = mask.at[0, 2, :].set(0.0)        # a fully unobserved time point
    data = jnp.concatenate([obs * mask, mask], axis=-1)        # (B, T, D)
    time_steps = jnp.linspace(0.0, 1.0, T).astype(jnp.float32)

    params = make_params(k_par, L, D, H)

    mean_z0, std_z0 = encoder_z0_odernn_forward(data, time_steps, params, L)
    jax.block_until_ready((mean_z0, std_z0))

    ref_mean, ref_std = reference_forward(data, time_steps, params, L)
    assert mean_z0.shape == (B, L) and std_z0.shape == (B, L)
    assert jnp.allclose(mean_z0, ref_mean, atol=1e-2, rtol=1e-2)
    assert jnp.allclose(std_z0, ref_std, atol=1e-2, rtol=1e-2)
    print("KERNEL_OK")
</pallas_src>

<mosaic_0001>
module attributes {stable_mosaic.version = 11 : i64} {
  func.func @_odernn_kernel(%arg0: memref<8xf32, #tpu.memory_space<smem>>, %arg1: memref<8x8x16xf32, #tpu.memory_space<vmem>>, %arg2: memref<32x32xbf16, #tpu.memory_space<vmem>>, %arg3: memref<1x32xf32, #tpu.memory_space<vmem>>, %arg4: memref<80x128xbf16, #tpu.memory_space<vmem>>, %arg5: memref<1x128xf32, #tpu.memory_space<vmem>>, %arg6: memref<128x64xbf16, #tpu.memory_space<vmem>>, %arg7: memref<1x64xf32, #tpu.memory_space<vmem>>, %arg8: memref<80x64xbf16, #tpu.memory_space<vmem>>, %arg9: memref<1x64xf32, #tpu.memory_space<vmem>>, %arg10: memref<64x64xbf16, #tpu.memory_space<vmem>>, %arg11: memref<1x64xf32, #tpu.memory_space<vmem>>, %arg12: memref<8x64xf32, #tpu.memory_space<vmem>>) attributes {dimension_semantics = [], scalar_prefetch = 0 : i64, scratch_operands = 0 : i64, tpu.core_type = #tpu.core_type<tc>} {
    %c0 = arith.constant 0 : index
    %c0_0 = arith.constant 0 : index
    %0 = vector.load %arg3[%c0, %c0_0] : memref<1x32xf32, #tpu.memory_space<vmem>>, vector<1x32xf32>
    %1 = vector.shape_cast %0 : vector<1x32xf32> to vector<1x32xf32>
    %2 = vector.broadcast %1 : vector<1x32xf32> to vector<8x32xf32>
    %c0_1 = arith.constant 0 : index
    %c0_2 = arith.constant 0 : index
    %3 = vector.load %arg5[%c0_1, %c0_2] : memref<1x128xf32, #tpu.memory_space<vmem>>, vector<1x128xf32>
    %4 = vector.shape_cast %3 : vector<1x128xf32> to vector<1x128xf32>
    %5 = vector.broadcast %4 : vector<1x128xf32> to vector<8x128xf32>
    %c0_3 = arith.constant 0 : index
    %c0_4 = arith.constant 0 : index
    %6 = vector.load %arg7[%c0_3, %c0_4] : memref<1x64xf32, #tpu.memory_space<vmem>>, vector<1x64xf32>
    %7 = vector.shape_cast %6 : vector<1x64xf32> to vector<1x64xf32>
    %8 = vector.broadcast %7 : vector<1x64xf32> to vector<8x64xf32>
    %c0_5 = arith.constant 0 : index
    %c0_6 = arith.constant 0 : index
    %9 = vector.load %arg9[%c0_5, %c0_6] : memref<1x64xf32, #tpu.memory_space<vmem>>, vector<1x64xf32>
    %10 = vector.shape_cast %9 : vector<1x64xf32> to vector<1x64xf32>
    %11 = vector.broadcast %10 : vector<1x64xf32> to vector<8x64xf32>
    %c0_7 = arith.constant 0 : index
    %c0_8 = arith.constant 0 : index
    %12 = vector.load %arg11[%c0_7, %c0_8] : memref<1x64xf32, #tpu.memory_space<vmem>>, vector<1x64xf32>
    %13 = vector.shape_cast %12 : vector<1x64xf32> to vector<1x64xf32>
    %14 = vector.broadcast %13 : vector<1x64xf32> to vector<8x64xf32>
    %cst = arith.constant 0.000000e+00 : f32
    %15 = vector.broadcast %cst : f32 to vector<8x32xf32>
    %cst_9 = arith.constant 0.000000e+00 : f32
    %16 = vector.broadcast %cst_9 : f32 to vector<8x32xf32>
    %c0_10 = arith.constant 0 : index
    %17 = memref.load %arg0[%c0_10] : memref<8xf32, #tpu.memory_space<smem>>
    %c0_11 = arith.constant 0 : index
    %c0_12 = arith.constant 0 : index
    %c0_13 = arith.constant 0 : index
    %18 = vector.load %arg1[%c0_11, %c0_12, %c0_13] : memref<8x8x16xf32, #tpu.memory_space<vmem>>, vector<1x8x16xf32>
    %19 = vector.shape_cast %18 : vector<1x8x16xf32> to vector<8x16xf32>
    %20 = arith.truncf %15 : vector<8x32xf32> to vector<8x32xbf16>
    %c0_14 = arith.constant 0 : index
    %c0_15 = arith.constant 0 : index
    %21 = vector.load %arg2[%c0_14, %c0_15] : memref<32x32xbf16, #tpu.memory_space<vmem>>, vector<32x32xbf16>
    %cst_16 = arith.constant dense<0.000000e+00> : vector<8x32xf32>
    %22 = tpu.matmul %20, %21, %cst_16 {dimension_numbers = #tpu.dot_dimension_numbers<[1], [0], [0], [1], [0, 0, 1, 1], [], []>} : vector<8x32xbf16>, vector<32x32xbf16>, vector<8x32xf32> -> vector<8x32xf32>
    %23 = arith.addf %22, %2 : vector<8x32xf32>
    %24 = math.tanh %23 : vector<8x32xf32>
    %25 = vector.broadcast %17 : f32 to vector<8x32xf32>
    %26 = arith.mulf %24, %25 : vector<8x32xf32>
    %27 = arith.addf %15, %26 : vector<8x32xf32>
    %28 = tpu.concatenate %27, %16, %19 in 1 : vector<8x32xf32>, vector<8x32xf32>, vector<8x16xf32> -> vector<8x80xf32>
    %29 = arith.truncf %28 : vector<8x80xf32> to vector<8x80xbf16>
    %c0_17 = arith.constant 0 : index
    %c0_18 = arith.constant 0 : index
    %30 = vector.load %arg4[%c0_17, %c0_18] : memref<80x128xbf16, #tpu.memory_space<vmem>>, vector<80x128xbf16>
    %cst_19 = arith.constant dense<0.000000e+00> : vector<8x128xf32>
    %31 = tpu.matmul %29, %30, %cst_19 {dimension_numbers = #tpu.dot_dimension_numbers<[1], [0], [0], [1], [0, 0, 1, 1], [], []>} : vector<8x80xbf16>, vector<80x128xbf16>, vector<8x128xf32> -> vector<8x128xf32>
    %32 = arith.addf %31, %5 : vector<8x128xf32>
    %33 = math.tanh %32 : vector<8x128xf32>
    %34 = arith.truncf %33 : vector<8x128xf32> to vector<8x128xbf16>
    %c0_20 = arith.constant 0 : index
    %c0_21 = arith.constant 0 : index
    %35 = vector.load %arg6[%c0_20, %c0_21] : memref<128x64xbf16, #tpu.memory_space<vmem>>, vector<128x64xbf16>
    %cst_22 = arith.constant dense<0.000000e+00> : vector<8x64xf32>
    %36 = tpu.matmul %34, %35, %cst_22 {dimension_numbers = #tpu.dot_dimension_numbers<[1], [0], [0], [1], [0, 0, 1, 1], [], []>} : vector<8x128xbf16>, vector<128x64xbf16>, vector<8x64xf32> -> vector<8x64xf32>
    %37 = arith.addf %36, %8 : vector<8x64xf32>
    %38 = arith.negf %37 : vector<8x64xf32>
    %39 = math.exp %38 : vector<8x64xf32>
    %cst_23 = arith.constant 1.000000e+00 : f32
    %40 = vector.broadcast %cst_23 : f32 to vector<8x64xf32>
    %41 = arith.addf %40, %39 : vector<8x64xf32>
    %42 = arith.divf %40, %41 : vector<8x64xf32>
    %43 = vector.extract_strided_slice %42 {offsets = [0, 0], sizes = [8, 32], strides = [1, 1]} : vector<8x64xf32> to vector<8x32xf32>
    %44 = vector.extract_strided_slice %42 {offsets = [0, 32], sizes = [8, 32], strides = [1, 1]} : vector<8x64xf32> to vector<8x32xf32>
    %45 = arith.mulf %27, %44 : vector<8x32xf32>
    %46 = arith.mulf %16, %44 : vector<8x32xf32>
    %47 = tpu.concatenate %45, %46, %19 in 1 : vector<8x32xf32>, vector<8x32xf32>, vector<8x16xf32> -> vector<8x80xf32>
    %48 = arith.truncf %47 : vector<8x80xf32> to vector<8x80xbf16>
    %c0_24 = arith.constant 0 : index
    %c0_25 = arith.constant 0 : index
    %49 = vector.load %arg8[%c0_24, %c0_25] : memref<80x64xbf16, #tpu.memory_space<vmem>>, vector<80x64xbf16>
    %cst_26 = arith.constant dense<0.000000e+00> : vector<8x64xf32>
    %50 = tpu.matmul %48, %49, %cst_26 {dimension_numbers = #tpu.dot_dimension_numbers<[1], [0], [0], [1], [0, 0, 1, 1], [], []>} : vector<8x80xbf16>, vector<80x64xbf16>, vector<8x64xf32> -> vector<8x64xf32>
    %51 = arith.addf %50, %11 : vector<8x64xf32>
    %52 = math.tanh %51 : vector<8x64xf32>
    %53 = arith.truncf %52 : vector<8x64xf32> to vector<8x64xbf16>
    %c0_27 = arith.constant 0 : index
    %c0_28 = arith.constant 0 : index
    %54 = vector.load %arg10[%c0_27, %c0_28] : memref<64x64xbf16, #tpu.memory_space<vmem>>, vector<64x64xbf16>
    %cst_29 = arith.constant dense<0.000000e+00> : vector<8x64xf32>
    %55 = tpu.matmul %53, %54, %cst_29 {dimension_numbers = #tpu.dot_dimension_numbers<[1], [0], [0], [1], [0, 0, 1, 1], [], []>} : vector<8x64xbf16>, vector<64x64xbf16>, vector<8x64xf32> -> vector<8x64xf32>
    %56 = arith.addf %55, %14 : vector<8x64xf32>
    %57 = vector.extract_strided_slice %56 {offsets = [0, 0], sizes = [8, 32], strides = [1, 1]} : vector<8x64xf32> to vector<8x32xf32>
    %58 = vector.extract_strided_slice %56 {offsets = [0, 32], sizes = [8, 32], strides = [1, 1]} : vector<8x64xf32> to vector<8x32xf32>
    %59 = math.absf %58 : vector<8x32xf32>
    %cst_30 = arith.constant 1.000000e+00 : f32
    %60 = vector.broadcast %cst_30 : f32 to vector<8x32xf32>
    %61 = arith.subf %60, %43 : vector<8x32xf32>
    %62 = arith.mulf %61, %57 : vector<8x32xf32>
    %63 = arith.mulf %43, %27 : vector<8x32xf32>
    %64 = arith.addf %62, %63 : vector<8x32xf32>
    %cst_31 = arith.constant 1.000000e+00 : f32
    %65 = vector.broadcast %cst_31 : f32 to vector<8x32xf32>
    %66 = arith.subf %65, %43 : vector<8x32xf32>
    %67 = arith.mulf %66, %59 : vector<8x32xf32>
    %68 = arith.mulf %43, %16 : vector<8x32xf32>
    %69 = arith.addf %67, %68 : vector<8x32xf32>
    %70 = vector.extract_strided_slice %19 {offsets = [0, 8], sizes = [8, 8], strides = [1, 1]} : vector<8x16xf32> to vector<8x8xf32>
    %cst_32 = arith.constant dense<0.000000e+00> : vector<8xf32>
    %71 = vector.multi_reduction <add>, %70, %cst_32 [1] : vector<8x8xf32> to vector<8xf32>
    %72 = vector.shape_cast %71 : vector<8xf32> to vector<8x1xf32>
    %cst_33 = arith.constant 0.000000e+00 : f32
    %73 = vector.broadcast %cst_33 : f32 to vector<8x1xf32>
    %74 = arith.cmpf ogt, %72, %73 : vector<8x1xf32>
    %75 = arith.extui %74 : vector<8x1xi1> to vector<8x1xi32>
    %76 = arith.sitofp %75 : vector<8x1xi32> to vector<8x1xf32>
    %77 = vector.broadcast %76 : vector<8x1xf32> to vector<8x32xf32>
    %78 = arith.mulf %77, %64 : vector<8x32xf32>
    %cst_34 = arith.constant 1.000000e+00 : f32
    %79 = vector.broadcast %cst_34 : f32 to vector<8x1xf32>
    %80 = arith.subf %79, %76 : vector<8x1xf32>
    %81 = vector.broadcast %80 : vector<8x1xf32> to vector<8x32xf32>
    %82 = arith.mulf %81, %27 : vector<8x32xf32>
    %83 = arith.addf %78, %82 : vector<8x32xf32>
    %84 = vector.broadcast %76 : vector<8x1xf32> to vector<8x32xf32>
    %85 = arith.mulf %84, %69 : vector<8x32xf32>
    %cst_35 = arith.constant 1.000000e+00 : f32
    %86 = vector.broadcast %cst_35 : f32 to vector<8x1xf32>
    %87 = arith.subf %86, %76 : vector<8x1xf32>
    %88 = vector.broadcast %87 : vector<8x1xf32> to vector<8x32xf32>
    %89 = arith.mulf %88, %16 : vector<8x32xf32>
    %90 = arith.addf %85, %89 : vector<8x32xf32>
    %91 = math.absf %90 : vector<8x32xf32>
    %c1 = arith.constant 1 : index
    %92 = memref.load %arg0[%c1] : memref<8xf32, #tpu.memory_space<smem>>
    %c1_36 = arith.constant 1 : index
    %c0_37 = arith.constant 0 : index
    %c0_38 = arith.constant 0 : index
    %93 = vector.load %arg1[%c1_36, %c0_37, %c0_38] : memref<8x8x16xf32, #tpu.memory_space<vmem>>, vector<1x8x16xf32>
    %94 = vector.shape_cast %93 : vector<1x8x16xf32> to vector<8x16xf32>
    %95 = arith.truncf %83 : vector<8x32xf32> to vector<8x32xbf16>
    %c0_39 = arith.constant 0 : index
    %c0_40 = arith.constant 0 : index
    %96 = vector.load %arg2[%c0_39, %c0_40] : memref<32x32xbf16, #tpu.memory_space<vmem>>, vector<32x32xbf16>
    %cst_41 = arith.constant dense<0.000000e+00> : vector<8x32xf32>
    %97 = tpu.matmul %95, %96, %cst_41 {dimension_numbers = #tpu.dot_dimension_numbers<[1], [0], [0], [1], [0, 0, 1, 1], [], []>} : vector<8x32xbf16>, vector<32x32xbf16>, vector<8x32xf32> -> vector<8x32xf32>
    %98 = arith.addf %97, %2 : vector<8x32xf32>
    %99 = math.tanh %98 : vector<8x32xf32>
    %100 = vector.broadcast %92 : f32 to vector<8x32xf32>
    %101 = arith.mulf %99, %100 : vector<8x32xf32>
    %102 = arith.addf %83, %101 : vector<8x32xf32>
    %103 = tpu.concatenate %102, %91, %94 in 1 : vector<8x32xf32>, vector<8x32xf32>, vector<8x16xf32> -> vector<8x80xf32>
    %104 = arith.truncf %103 : vector<8x80xf32> to vector<8x80xbf16>
    %c0_42 = arith.constant 0 : index
    %c0_43 = arith.constant 0 : index
    %105 = vector.load %arg4[%c0_42, %c0_43] : memref<80x128xbf16, #tpu.memory_space<vmem>>, vector<80x128xbf16>
    %cst_44 = arith.constant dense<0.000000e+00> : vector<8x128xf32>
    %106 = tpu.matmul %104, %105, %cst_44 {dimension_numbers = #tpu.dot_dimension_numbers<[1], [0], [0], [1], [0, 0, 1, 1], [], []>} : vector<8x80xbf16>, vector<80x128xbf16>, vector<8x128xf32> -> vector<8x128xf32>
    %107 = arith.addf %106, %5 : vector<8x128xf32>
    %108 = math.tanh %107 : vector<8x128xf32>
    %109 = arith.truncf %108 : vector<8x128xf32> to vector<8x128xbf16>
    %c0_45 = arith.constant 0 : index
    %c0_46 = arith.constant 0 : index
    %110 = vector.load %arg6[%c0_45, %c0_46] : memref<128x64xbf16, #tpu.memory_space<vmem>>, vector<128x64xbf16>
    %cst_47 = arith.constant dense<0.000000e+00> : vector<8x64xf32>
    %111 = tpu.matmul %109, %110, %cst_47 {dimension_numbers = #tpu.dot_dimension_numbers<[1], [0], [0], [1], [0, 0, 1, 1], [], []>} : vector<8x128xbf16>, vector<128x64xbf16>, vector<8x64xf32> -> vector<8x64xf32>
    %112 = arith.addf %111, %8 : vector<8x64xf32>
    %113 = arith.negf %112 : vector<8x64xf32>
    %114 = math.exp %113 : vector<8x64xf32>
    %cst_48 = arith.constant 1.000000e+00 : f32
    %115 = vector.broadcast %cst_48 : f32 to vector<8x64xf32>
    %116 = arith.addf %115, %114 : vector<8x64xf32>
    %117 = arith.divf %115, %116 : vector<8x64xf32>
    %118 = vector.extract_strided_slice %117 {offsets = [0, 0], sizes = [8, 32], strides = [1, 1]} : vector<8x64xf32> to vector<8x32xf32>
    %119 = vector.extract_strided_slice %117 {offsets = [0, 32], sizes = [8, 32], strides = [1, 1]} : vector<8x64xf32> to vector<8x32xf32>
    %120 = arith.mulf %102, %119 : vector<8x32xf32>
    %121 = arith.mulf %91, %119 : vector<8x32xf32>
    %122 = tpu.concatenate %120, %121, %94 in 1 : vector<8x32xf32>, vector<8x32xf32>, vector<8x16xf32> -> vector<8x80xf32>
    %123 = arith.truncf %122 : vector<8x80xf32> to vector<8x80xbf16>
    %c0_49 = arith.constant 0 : index
    %c0_50 = arith.constant 0 : index
    %124 = vector.load %arg8[%c0_49, %c0_50] : memref<80x64xbf16, #tpu.memory_space<vmem>>, vector<80x64xbf16>
    %cst_51 = arith.constant dense<0.000000e+00> : vector<8x64xf32>
    %125 = tpu.matmul %123, %124, %cst_51 {dimension_numbers = #tpu.dot_dimension_numbers<[1], [0], [0], [1], [0, 0, 1, 1], [], []>} : vector<8x80xbf16>, vector<80x64xbf16>, vector<8x64xf32> -> vector<8x64xf32>
    %126 = arith.addf %125, %11 : vector<8x64xf32>
    %127 = math.tanh %126 : vector<8x64xf32>
    %128 = arith.truncf %127 : vector<8x64xf32> to vector<8x64xbf16>
    %c0_52 = arith.constant 0 : index
    %c0_53 = arith.constant 0 : index
    %129 = vector.load %arg10[%c0_52, %c0_53] : memref<64x64xbf16, #tpu.memory_space<vmem>>, vector<64x64xbf16>
    %cst_54 = arith.constant dense<0.000000e+00> : vector<8x64xf32>
    %130 = tpu.matmul %128, %129, %cst_54 {dimension_numbers = #tpu.dot_dimension_numbers<[1], [0], [0], [1], [0, 0, 1, 1], [], []>} : vector<8x64xbf16>, vector<64x64xbf16>, vector<8x64xf32> -> vector<8x64xf32>
    %131 = arith.addf %130, %14 : vector<8x64xf32>
    %132 = vector.extract_strided_slice %131 {offsets = [0, 0], sizes = [8, 32], strides = [1, 1]} : vector<8x64xf32> to vector<8x32xf32>
    %133 = vector.extract_strided_slice %131 {offsets = [0, 32], sizes = [8, 32], strides = [1, 1]} : vector<8x64xf32> to vector<8x32xf32>
    %134 = math.absf %133 : vector<8x32xf32>
    %cst_55 = arith.constant 1.000000e+00 : f32
    %135 = vector.broadcast %cst_55 : f32 to vector<8x32xf32>
    %136 = arith.subf %135, %118 : vector<8x32xf32>
    %137 = arith.mulf %136, %132 : vector<8x32xf32>
    %138 = arith.mulf %118, %102 : vector<8x32xf32>
    %139 = arith.addf %137, %138 : vector<8x32xf32>
    %cst_56 = arith.constant 1.000000e+00 : f32
    %140 = vector.broadcast %cst_56 : f32 to vector<8x32xf32>
    %141 = arith.subf %140, %118 : vector<8x32xf32>
    %142 = arith.mulf %141, %134 : vector<8x32xf32>
    %143 = arith.mulf %118, %91 : vector<8x32xf32>
    %144 = arith.addf %142, %143 : vector<8x32xf32>
    %145 = vector.extract_strided_slice %94 {offsets = [0, 8], sizes = [8, 8], strides = [1, 1]} : vector<8x16xf32> to vector<8x8xf32>
    %cst_57 = arith.constant dense<0.000000e+00> : vector<8xf32>
    %146 = vector.multi_reduction <add>, %145, %cst_57 [1] : vector<8x8xf32> to vector<8xf32>
    %147 = vector.shape_cast %146 : vector<8xf32> to vector<8x1xf32>
    %cst_58 = arith.constant 0.000000e+00 : f32
    %148 = vector.broadcast %cst_58 : f32 to vector<8x1xf32>
    %149 = arith.cmpf ogt, %147, %148 : vector<8x1xf32>
    %150 = arith.extui %149 : vector<8x1xi1> to vector<8x1xi32>
    %151 = arith.sitofp %150 : vector<8x1xi32> to vector<8x1xf32>
    %152 = vector.broadcast %151 : vector<8x1xf32> to vector<8x32xf32>
    %153 = arith.mulf %152, %139 : vector<8x32xf32>
    %cst_59 = arith.constant 1.000000e+00 : f32
    %154 = vector.broadcast %cst_59 : f32 to vector<8x1xf32>
    %155 = arith.subf %154, %151 : vector<8x1xf32>
    %156 = vector.broadcast %155 : vector<8x1xf32> to vector<8x32xf32>
    %157 = arith.mulf %156, %102 : vector<8x32xf32>
    %158 = arith.addf %153, %157 : vector<8x32xf32>
    %159 = vector.broadcast %151 : vector<8x1xf32> to vector<8x32xf32>
    %160 = arith.mulf %159, %144 : vector<8x32xf32>
    %cst_60 = arith.constant 1.000000e+00 : f32
    %161 = vector.broadcast %cst_60 : f32 to vector<8x1xf32>
    %162 = arith.subf %161, %151 : vector<8x1xf32>
    %163 = vector.broadcast %162 : vector<8x1xf32> to vector<8x32xf32>
    %164 = arith.mulf %163, %91 : vector<8x32xf32>
    %165 = arith.addf %160, %164 : vector<8x32xf32>
    %166 = math.absf %165 : vector<8x32xf32>
    %c2 = arith.constant 2 : index
    %167 = memref.load %arg0[%c2] : memref<8xf32, #tpu.memory_space<smem>>
    %c2_61 = arith.constant 2 : index
    %c0_62 = arith.constant 0 : index
    %c0_63 = arith.constant 0 : index
    %168 = vector.load %arg1[%c2_61, %c0_62, %c0_63] : memref<8x8x16xf32, #tpu.memory_space<vmem>>, vector<1x8x16xf32>
    %169 = vector.shape_cast %168 : vector<1x8x16xf32> to vector<8x16xf32>
    %170 = arith.truncf %158 : vector<8x32xf32> to vector<8x32xbf16>
    %c0_64 = arith.constant 0 : index
    %c0_65 = arith.constant 0 : index
    %171 = vector.load %arg2[%c0_64, %c0_65] : memref<32x32xbf16, #tpu.memory_space<vmem>>, vector<32x32xbf16>
    %cst_66 = arith.constant dense<0.000000e+00> : vector<8x32xf32>
    %172 = tpu.matmul %170, %171, %cst_66 {dimension_numbers = #tpu.dot_dimension_numbers<[1], [0], [0], [1], [0, 0, 1, 1], [], []>} : vector<8x32xbf16>, vector<32x32xbf16>, vector<8x32xf32> -> vector<8x32xf32>
    %173 = arith.addf %172, %2 : vector<8x32xf32>
    %174 = math.tanh %173 : vector<8x32xf32>
    %175 = vector.broadcast %167 : f32 to vector<8x32xf32>
    %176 = arith.mulf %174, %175 : vector<8x32xf32>
    %177 = arith.addf %158, %176 : vector<8x32xf32>
    %178 = tpu.concatenate %177, %166, %169 in 1 : vector<8x32xf32>, vector<8x32xf32>, vector<8x16xf32> -> vector<8x80xf32>
    %179 = arith.truncf %178 : vector<8x80xf32> to vector<8x80xbf16>
    %c0_67 = arith.constant 0 : index
    %c0_68 = arith.constant 0 : index
    %180 = vector.load %arg4[%c0_67, %c0_68] : memref<80x128xbf16, #tpu.memory_space<vmem>>, vector<80x128xbf16>
    %cst_69 = arith.constant dense<0.000000e+00> : vector<8x128xf32>
    %181 = tpu.matmul %179, %180, %cst_69 {dimension_numbers = #tpu.dot_dimension_numbers<[1], [0], [0], [1], [0, 0, 1, 1], [], []>} : vector<8x80xbf16>, vector<80x128xbf16>, vector<8x128xf32> -> vector<8x128xf32>
    %182 = arith.addf %181, %5 : vector<8x128xf32>
    %183 = math.tanh %182 : vector<8x128xf32>
    %184 = arith.truncf %183 : vector<8x128xf32> to vector<8x128xbf16>
    %c0_70 = arith.constant 0 : index
    %c0_71 = arith.constant 0 : index
    %185 = vector.load %arg6[%c0_70, %c0_71] : memref<128x64xbf16, #tpu.memory_space<vmem>>, vector<128x64xbf16>
    %cst_72 = arith.constant dense<0.000000e+00> : vector<8x64xf32>
    %186 = tpu.matmul %184, %185, %cst_72 {dimension_numbers = #tpu.dot_dimension_numbers<[1], [0], [0], [1], [0, 0, 1, 1], [], []>} : vector<8x128xbf16>, vector<128x64xbf16>, vector<8x64xf32> -> vector<8x64xf32>
    %187 = arith.addf %186, %8 : vector<8x64xf32>
    %188 = arith.negf %187 : vector<8x64xf32>
    %189 = math.exp %188 : vector<8x64xf32>
    %cst_73 = arith.constant 1.000000e+00 : f32
    %190 = vector.broadcast %cst_73 : f32 to vector<8x64xf32>
    %191 = arith.addf %190, %189 : vector<8x64xf32>
    %192 = arith.divf %190, %191 : vector<8x64xf32>
    %193 = vector.extract_strided_slice %192 {offsets = [0, 0], sizes = [8, 32], strides = [1, 1]} : vector<8x64xf32> to vector<8x32xf32>
    %194 = vector.extract_strided_slice %192 {offsets = [0, 32], sizes = [8, 32], strides = [1, 1]} : vector<8x64xf32> to vector<8x32xf32>
    %195 = arith.mulf %177, %194 : vector<8x32xf32>
    %196 = arith.mulf %166, %194 : vector<8x32xf32>
    %197 = tpu.concatenate %195, %196, %169 in 1 : vector<8x32xf32>, vector<8x32xf32>, vector<8x16xf32> -> vector<8x80xf32>
    %198 = arith.truncf %197 : vector<8x80xf32> to vector<8x80xbf16>
    %c0_74 = arith.constant 0 : index
    %c0_75 = arith.constant 0 : index
    %199 = vector.load %arg8[%c0_74, %c0_75] : memref<80x64xbf16, #tpu.memory_space<vmem>>, vector<80x64xbf16>
    %cst_76 = arith.constant dense<0.000000e+00> : vector<8x64xf32>
    %200 = tpu.matmul %198, %199, %cst_76 {dimension_numbers = #tpu.dot_dimension_numbers<[1], [0], [0], [1], [0, 0, 1, 1], [], []>} : vector<8x80xbf16>, vector<80x64xbf16>, vector<8x64xf32> -> vector<8x64xf32>
    %201 = arith.addf %200, %11 : vector<8x64xf32>
    %202 = math.tanh %201 : vector<8x64xf32>
    %203 = arith.truncf %202 : vector<8x64xf32> to vector<8x64xbf16>
    %c0_77 = arith.constant 0 : index
    %c0_78 = arith.constant 0 : index
    %204 = vector.load %arg10[%c0_77, %c0_78] : memref<64x64xbf16, #tpu.memory_space<vmem>>, vector<64x64xbf16>
    %cst_79 = arith.constant dense<0.000000e+00> : vector<8x64xf32>
    %205 = tpu.matmul %203, %204, %cst_79 {dimension_numbers = #tpu.dot_dimension_numbers<[1], [0], [0], [1], [0, 0, 1, 1], [], []>} : vector<8x64xbf16>, vector<64x64xbf16>, vector<8x64xf32> -> vector<8x64xf32>
    %206 = arith.addf %205, %14 : vector<8x64xf32>
    %207 = vector.extract_strided_slice %206 {offsets = [0, 0], sizes = [8, 32], strides = [1, 1]} : vector<8x64xf32> to vector<8x32xf32>
    %208 = vector.extract_strided_slice %206 {offsets = [0, 32], sizes = [8, 32], strides = [1, 1]} : vector<8x64xf32> to vector<8x32xf32>
    %209 = math.absf %208 : vector<8x32xf32>
    %cst_80 = arith.constant 1.000000e+00 : f32
    %210 = vector.broadcast %cst_80 : f32 to vector<8x32xf32>
    %211 = arith.subf %210, %193 : vector<8x32xf32>
    %212 = arith.mulf %211, %207 : vector<8x32xf32>
    %213 = arith.mulf %193, %177 : vector<8x32xf32>
    %214 = arith.addf %212, %213 : vector<8x32xf32>
    %cst_81 = arith.constant 1.000000e+00 : f32
    %215 = vector.broadcast %cst_81 : f32 to vector<8x32xf32>
    %216 = arith.subf %215, %193 : vector<8x32xf32>
    %217 = arith.mulf %216, %209 : vector<8x32xf32>
    %218 = arith.mulf %193, %166 : vector<8x32xf32>
    %219 = arith.addf %217, %218 : vector<8x32xf32>
    %220 = vector.extract_strided_slice %169 {offsets = [0, 8], sizes = [8, 8], strides = [1, 1]} : vector<8x16xf32> to vector<8x8xf32>
    %cst_82 = arith.constant dense<0.000000e+00> : vector<8xf32>
    %221 = vector.multi_reduction <add>, %220, %cst_82 [1] : vector<8x8xf32> to vector<8xf32>
    %222 = vector.shape_cast %221 : vector<8xf32> to vector<8x1xf32>
    %cst_83 = arith.constant 0.000000e+00 : f32
    %223 = vector.broadcast %cst_83 : f32 to vector<8x1xf32>
    %224 = arith.cmpf ogt, %222, %223 : vector<8x1xf32>
    %225 = arith.extui %224 : vector<8x1xi1> to vector<8x1xi32>
    %226 = arith.sitofp %225 : vector<8x1xi32> to vector<8x1xf32>
    %227 = vector.broadcast %226 : vector<8x1xf32> to vector<8x32xf32>
    %228 = arith.mulf %227, %214 : vector<8x32xf32>
    %cst_84 = arith.constant 1.000000e+00 : f32
    %229 = vector.broadcast %cst_84 : f32 to vector<8x1xf32>
    %230 = arith.subf %229, %226 : vector<8x1xf32>
    %231 = vector.broadcast %230 : vector<8x1xf32> to vector<8x32xf32>
    %232 = arith.mulf %231, %177 : vector<8x32xf32>
    %233 = arith.addf %228, %232 : vector<8x32xf32>
    %234 = vector.broadcast %226 : vector<8x1xf32> to vector<8x32xf32>
    %235 = arith.mulf %234, %219 : vector<8x32xf32>
    %cst_85 = arith.constant 1.000000e+00 : f32
    %236 = vector.broadcast %cst_85 : f32 to vector<8x1xf32>
    %237 = arith.subf %236, %226 : vector<8x1xf32>
    %238 = vector.broadcast %237 : vector<8x1xf32> to vector<8x32xf32>
    %239 = arith.mulf %238, %166 : vector<8x32xf32>
    %240 = arith.addf %235, %239 : vector<8x32xf32>
    %241 = math.absf %240 : vector<8x32xf32>
    %c3 = arith.constant 3 : index
    %242 = memref.load %arg0[%c3] : memref<8xf32, #tpu.memory_space<smem>>
    %c3_86 = arith.constant 3 : index
    %c0_87 = arith.constant 0 : index
    %c0_88 = arith.constant 0 : index
    %243 = vector.load %arg1[%c3_86, %c0_87, %c0_88] : memref<8x8x16xf32, #tpu.memory_space<vmem>>, vector<1x8x16xf32>
    %244 = vector.shape_cast %243 : vector<1x8x16xf32> to vector<8x16xf32>
    %245 = arith.truncf %233 : vector<8x32xf32> to vector<8x32xbf16>
    %c0_89 = arith.constant 0 : index
    %c0_90 = arith.constant 0 : index
    %246 = vector.load %arg2[%c0_89, %c0_90] : memref<32x32xbf16, #tpu.memory_space<vmem>>, vector<32x32xbf16>
    %cst_91 = arith.constant dense<0.000000e+00> : vector<8x32xf32>
    %247 = tpu.matmul %245, %246, %cst_91 {dimension_numbers = #tpu.dot_dimension_numbers<[1], [0], [0], [1], [0, 0, 1, 1], [], []>} : vector<8x32xbf16>, vector<32x32xbf16>, vector<8x32xf32> -> vector<8x32xf32>
    %248 = arith.addf %247, %2 : vector<8x32xf32>
    %249 = math.tanh %248 : vector<8x32xf32>
    %250 = vector.broadcast %242 : f32 to vector<8x32xf32>
    %251 = arith.mulf %249, %250 : vector<8x32xf32>
    %252 = arith.addf %233, %251 : vector<8x32xf32>
    %253 = tpu.concatenate %252, %241, %244 in 1 : vector<8x32xf32>, vector<8x32xf32>, vector<8x16xf32> -> vector<8x80xf32>
    %254 = arith.truncf %253 : vector<8x80xf32> to vector<8x80xbf16>
    %c0_92 = arith.constant 0 : index
    %c0_93 = arith.constant 0 : index
    %255 = vector.load %arg4[%c0_92, %c0_93] : memref<80x128xbf16, #tpu.memory_space<vmem>>, vector<80x128xbf16>
    %cst_94 = arith.constant dense<0.000000e+00> : vector<8x128xf32>
    %256 = tpu.matmul %254, %255, %cst_94 {dimension_numbers = #tpu.dot_dimension_numbers<[1], [0], [0], [1], [0, 0, 1, 1], [], []>} : vector<8x80xbf16>, vector<80x128xbf16>, vector<8x128xf32> -> vector<8x128xf32>
    %257 = arith.addf %256, %5 : vector<8x128xf32>
    %258 = math.tanh %257 : vector<8x128xf32>
    %259 = arith.truncf %258 : vector<8x128xf32> to vector<8x128xbf16>
    %c0_95 = arith.constant 0 : index
    %c0_96 = arith.constant 0 : index
    %260 = vector.load %arg6[%c0_95, %c0_96] : memref<128x64xbf16, #tpu.memory_space<vmem>>, vector<128x64xbf16>
    %cst_97 = arith.constant dense<0.000000e+00> : vector<8x64xf32>
    %261 = tpu.matmul %259, %260, %cst_97 {dimension_numbers = #tpu.dot_dimension_numbers<[1], [0], [0], [1], [0, 0, 1, 1], [], []>} : vector<8x128xbf16>, vector<128x64xbf16>, vector<8x64xf32> -> vector<8x64xf32>
    %262 = arith.addf %261, %8 : vector<8x64xf32>
    %263 = arith.negf %262 : vector<8x64xf32>
    %264 = math.exp %263 : vector<8x64xf32>
    %cst_98 = arith.constant 1.000000e+00 : f32
    %265 = vector.broadcast %cst_98 : f32 to vector<8x64xf32>
    %266 = arith.addf %265, %264 : vector<8x64xf32>
    %267 = arith.divf %265, %266 : vector<8x64xf32>
    %268 = vector.extract_strided_slice %267 {offsets = [0, 0], sizes = [8, 32], strides = [1, 1]} : vector<8x64xf32> to vector<8x32xf32>
    %269 = vector.extract_strided_slice %267 {offsets = [0, 32], sizes = [8, 32], strides = [1, 1]} : vector<8x64xf32> to vector<8x32xf32>
    %270 = arith.mulf %252, %269 : vector<8x32xf32>
    %271 = arith.mulf %241, %269 : vector<8x32xf32>
    %272 = tpu.concatenate %270, %271, %244 in 1 : vector<8x32xf32>, vector<8x32xf32>, vector<8x16xf32> -> vector<8x80xf32>
    %273 = arith.truncf %272 : vector<8x80xf32> to vector<8x80xbf16>
    %c0_99 = arith.constant 0 : index
    %c0_100 = arith.constant 0 : index
    %274 = vector.load %arg8[%c0_99, %c0_100] : memref<80x64xbf16, #tpu.memory_space<vmem>>, vector<80x64xbf16>
    %cst_101 = arith.constant dense<0.000000e+00> : vector<8x64xf32>
    %275 = tpu.matmul %273, %274, %cst_101 {dimension_numbers = #tpu.dot_dimension_numbers<[1], [0], [0], [1], [0, 0, 1, 1], [], []>} : vector<8x80xbf16>, vector<80x64xbf16>, vector<8x64xf32> -> vector<8x64xf32>
    %276 = arith.addf %275, %11 : vector<8x64xf32>
    %277 = math.tanh %276 : vector<8x64xf32>
    %278 = arith.truncf %277 : vector<8x64xf32> to vector<8x64xbf16>
    %c0_102 = arith.constant 0 : index
    %c0_103 = arith.constant 0 : index
    %279 = vector.load %arg10[%c0_102, %c0_103] : memref<64x64xbf16, #tpu.memory_space<vmem>>, vector<64x64xbf16>
    %cst_104 = arith.constant dense<0.000000e+00> : vector<8x64xf32>
    %280 = tpu.matmul %278, %279, %cst_104 {dimension_numbers = #tpu.dot_dimension_numbers<[1], [0], [0], [1], [0, 0, 1, 1], [], []>} : vector<8x64xbf16>, vector<64x64xbf16>, vector<8x64xf32> -> vector<8x64xf32>
    %281 = arith.addf %280, %14 : vector<8x64xf32>
    %282 = vector.extract_strided_slice %281 {offsets = [0, 0], sizes = [8, 32], strides = [1, 1]} : vector<8x64xf32> to vector<8x32xf32>
    %283 = vector.extract_strided_slice %281 {offsets = [0, 32], sizes = [8, 32], strides = [1, 1]} : vector<8x64xf32> to vector<8x32xf32>
    %284 = math.absf %283 : vector<8x32xf32>
    %cst_105 = arith.constant 1.000000e+00 : f32
    %285 = vector.broadcast %cst_105 : f32 to vector<8x32xf32>
    %286 = arith.subf %285, %268 : vector<8x32xf32>
    %287 = arith.mulf %286, %282 : vector<8x32xf32>
    %288 = arith.mulf %268, %252 : vector<8x32xf32>
    %289 = arith.addf %287, %288 : vector<8x32xf32>
    %cst_106 = arith.constant 1.000000e+00 : f32
    %290 = vector.broadcast %cst_106 : f32 to vector<8x32xf32>
    %291 = arith.subf %290, %268 : vector<8x32xf32>
    %292 = arith.mulf %291, %284 : vector<8x32xf32>
    %293 = arith.mulf %268, %241 : vector<8x32xf32>
    %294 = arith.addf %292, %293 : vector<8x32xf32>
    %295 = vector.extract_strided_slice %244 {offsets = [0, 8], sizes = [8, 8], strides = [1, 1]} : vector<8x16xf32> to vector<8x8xf32>
    %cst_107 = arith.constant dense<0.000000e+00> : vector<8xf32>
    %296 = vector.multi_reduction <add>, %295, %cst_107 [1] : vector<8x8xf32> to vector<8xf32>
    %297 = vector.shape_cast %296 : vector<8xf32> to vector<8x1xf32>
    %cst_108 = arith.constant 0.000000e+00 : f32
    %298 = vector.broadcast %cst_108 : f32 to vector<8x1xf32>
    %299 = arith.cmpf ogt, %297, %298 : vector<8x1xf32>
    %300 = arith.extui %299 : vector<8x1xi1> to vector<8x1xi32>
    %301 = arith.sitofp %300 : vector<8x1xi32> to vector<8x1xf32>
    %302 = vector.broadcast %301 : vector<8x1xf32> to vector<8x32xf32>
    %303 = arith.mulf %302, %289 : vector<8x32xf32>
    %cst_109 = arith.constant 1.000000e+00 : f32
    %304 = vector.broadcast %cst_109 : f32 to vector<8x1xf32>
    %305 = arith.subf %304, %301 : vector<8x1xf32>
    %306 = vector.broadcast %305 : vector<8x1xf32> to vector<8x32xf32>
    %307 = arith.mulf %306, %252 : vector<8x32xf32>
    %308 = arith.addf %303, %307 : vector<8x32xf32>
    %309 = vector.broadcast %301 : vector<8x1xf32> to vector<8x32xf32>
    %310 = arith.mulf %309, %294 : vector<8x32xf32>
    %cst_110 = arith.constant 1.000000e+00 : f32
    %311 = vector.broadcast %cst_110 : f32 to vector<8x1xf32>
    %312 = arith.subf %311, %301 : vector<8x1xf32>
    %313 = vector.broadcast %312 : vector<8x1xf32> to vector<8x32xf32>
    %314 = arith.mulf %313, %241 : vector<8x32xf32>
    %315 = arith.addf %310, %314 : vector<8x32xf32>
    %316 = math.absf %315 : vector<8x32xf32>
    %c4 = arith.constant 4 : index
    %317 = memref.load %arg0[%c4] : memref<8xf32, #tpu.memory_space<smem>>
    %c4_111 = arith.constant 4 : index
    %c0_112 = arith.constant 0 : index
    %c0_113 = arith.constant 0 : index
    %318 = vector.load %arg1[%c4_111, %c0_112, %c0_113] : memref<8x8x16xf32, #tpu.memory_space<vmem>>, vector<1x8x16xf32>
    %319 = vector.shape_cast %318 : vector<1x8x16xf32> to vector<8x16xf32>
    %320 = arith.truncf %308 : vector<8x32xf32> to vector<8x32xbf16>
    %c0_114 = arith.constant 0 : index
    %c0_115 = arith.constant 0 : index
    %321 = vector.load %arg2[%c0_114, %c0_115] : memref<32x32xbf16, #tpu.memory_space<vmem>>, vector<32x32xbf16>
    %cst_116 = arith.constant dense<0.000000e+00> : vector<8x32xf32>
    %322 = tpu.matmul %320, %321, %cst_116 {dimension_numbers = #tpu.dot_dimension_numbers<[1], [0], [0], [1], [0, 0, 1, 1], [], []>} : vector<8x32xbf16>, vector<32x32xbf16>, vector<8x32xf32> -> vector<8x32xf32>
    %323 = arith.addf %322, %2 : vector<8x32xf32>
    %324 = math.tanh %323 : vector<8x32xf32>
    %325 = vector.broadcast %317 : f32 to vector<8x32xf32>
    %326 = arith.mulf %324, %325 : vector<8x32xf32>
    %327 = arith.addf %308, %326 : vector<8x32xf32>
    %328 = tpu.concatenate %327, %316, %319 in 1 : vector<8x32xf32>, vector<8x32xf32>, vector<8x16xf32> -> vector<8x80xf32>
    %329 = arith.truncf %328 : vector<8x80xf32> to vector<8x80xbf16>
    %c0_117 = arith.constant 0 : index
    %c0_118 = arith.constant 0 : index
    %330 = vector.load %arg4[%c0_117, %c0_118] : memref<80x128xbf16, #tpu.memory_space<vmem>>, vector<80x128xbf16>
    %cst_119 = arith.constant dense<0.000000e+00> : vector<8x128xf32>
    %331 = tpu.matmul %329, %330, %cst_119 {dimension_numbers = #tpu.dot_dimension_numbers<[1], [0], [0], [1], [0, 0, 1, 1], [], []>} : vector<8x80xbf16>, vector<80x128xbf16>, vector<8x128xf32> -> vector<8x128xf32>
    %332 = arith.addf %331, %5 : vector<8x128xf32>
    %333 = math.tanh %332 : vector<8x128xf32>
    %334 = arith.truncf %333 : vector<8x128xf32> to vector<8x128xbf16>
    %c0_120 = arith.constant 0 : index
    %c0_121 = arith.constant 0 : index
    %335 = vector.load %arg6[%c0_120, %c0_121] : memref<128x64xbf16, #tpu.memory_space<vmem>>, vector<128x64xbf16>
    %cst_122 = arith.constant dense<0.000000e+00> : vector<8x64xf32>
    %336 = tpu.matmul %334, %335, %cst_122 {dimension_numbers = #tpu.dot_dimension_numbers<[1], [0], [0], [1], [0, 0, 1, 1], [], []>} : vector<8x128xbf16>, vector<128x64xbf16>, vector<8x64xf32> -> vector<8x64xf32>
    %337 = arith.addf %336, %8 : vector<8x64xf32>
    %338 = arith.negf %337 : vector<8x64xf32>
    %339 = math.exp %338 : vector<8x64xf32>
    %cst_123 = arith.constant 1.000000e+00 : f32
    %340 = vector.broadcast %cst_123 : f32 to vector<8x64xf32>
    %341 = arith.addf %340, %339 : vector<8x64xf32>
    %342 = arith.divf %340, %341 : vector<8x64xf32>
    %343 = vector.extract_strided_slice %342 {offsets = [0, 0], sizes = [8, 32], strides = [1, 1]} : vector<8x64xf32> to vector<8x32xf32>
    %344 = vector.extract_strided_slice %342 {offsets = [0, 32], sizes = [8, 32], strides = [1, 1]} : vector<8x64xf32> to vector<8x32xf32>
    %345 = arith.mulf %327, %344 : vector<8x32xf32>
    %346 = arith.mulf %316, %344 : vector<8x32xf32>
    %347 = tpu.concatenate %345, %346, %319 in 1 : vector<8x32xf32>, vector<8x32xf32>, vector<8x16xf32> -> vector<8x80xf32>
    %348 = arith.truncf %347 : vector<8x80xf32> to vector<8x80xbf16>
    %c0_124 = arith.constant 0 : index
    %c0_125 = arith.constant 0 : index
    %349 = vector.load %arg8[%c0_124, %c0_125] : memref<80x64xbf16, #tpu.memory_space<vmem>>, vector<80x64xbf16>
    %cst_126 = arith.constant dense<0.000000e+00> : vector<8x64xf32>
    %350 = tpu.matmul %348, %349, %cst_126 {dimension_numbers = #tpu.dot_dimension_numbers<[1], [0], [0], [1], [0, 0, 1, 1], [], []>} : vector<8x80xbf16>, vector<80x64xbf16>, vector<8x64xf32> -> vector<8x64xf32>
    %351 = arith.addf %350, %11 : vector<8x64xf32>
    %352 = math.tanh %351 : vector<8x64xf32>
    %353 = arith.truncf %352 : vector<8x64xf32> to vector<8x64xbf16>
    %c0_127 = arith.constant 0 : index
    %c0_128 = arith.constant 0 : index
    %354 = vector.load %arg10[%c0_127, %c0_128] : memref<64x64xbf16, #tpu.memory_space<vmem>>, vector<64x64xbf16>
    %cst_129 = arith.constant dense<0.000000e+00> : vector<8x64xf32>
    %355 = tpu.matmul %353, %354, %cst_129 {dimension_numbers = #tpu.dot_dimension_numbers<[1], [0], [0], [1], [0, 0, 1, 1], [], []>} : vector<8x64xbf16>, vector<64x64xbf16>, vector<8x64xf32> -> vector<8x64xf32>
    %356 = arith.addf %355, %14 : vector<8x64xf32>
    %357 = vector.extract_strided_slice %356 {offsets = [0, 0], sizes = [8, 32], strides = [1, 1]} : vector<8x64xf32> to vector<8x32xf32>
    %358 = vector.extract_strided_slice %356 {offsets = [0, 32], sizes = [8, 32], strides = [1, 1]} : vector<8x64xf32> to vector<8x32xf32>
    %359 = math.absf %358 : vector<8x32xf32>
    %cst_130 = arith.constant 1.000000e+00 : f32
    %360 = vector.broadcast %cst_130 : f32 to vector<8x32xf32>
    %361 = arith.subf %360, %343 : vector<8x32xf32>
    %362 = arith.mulf %361, %357 : vector<8x32xf32>
    %363 = arith.mulf %343, %327 : vector<8x32xf32>
    %364 = arith.addf %362, %363 : vector<8x32xf32>
    %cst_131 = arith.constant 1.000000e+00 : f32
    %365 = vector.broadcast %cst_131 : f32 to vector<8x32xf32>
    %366 = arith.subf %365, %343 : vector<8x32xf32>
    %367 = arith.mulf %366, %359 : vector<8x32xf32>
    %368 = arith.mulf %343, %316 : vector<8x32xf32>
    %369 = arith.addf %367, %368 : vector<8x32xf32>
    %370 = vector.extract_strided_slice %319 {offsets = [0, 8], sizes = [8, 8], strides = [1, 1]} : vector<8x16xf32> to vector<8x8xf32>
    %cst_132 = arith.constant dense<0.000000e+00> : vector<8xf32>
    %371 = vector.multi_reduction <add>, %370, %cst_132 [1] : vector<8x8xf32> to vector<8xf32>
    %372 = vector.shape_cast %371 : vector<8xf32> to vector<8x1xf32>
    %cst_133 = arith.constant 0.000000e+00 : f32
    %373 = vector.broadcast %cst_133 : f32 to vector<8x1xf32>
    %374 = arith.cmpf ogt, %372, %373 : vector<8x1xf32>
    %375 = arith.extui %374 : vector<8x1xi1> to vector<8x1xi32>
    %376 = arith.sitofp %375 : vector<8x1xi32> to vector<8x1xf32>
    %377 = vector.broadcast %376 : vector<8x1xf32> to vector<8x32xf32>
    %378 = arith.mulf %377, %364 : vector<8x32xf32>
    %cst_134 = arith.constant 1.000000e+00 : f32
    %379 = vector.broadcast %cst_134 : f32 to vector<8x1xf32>
    %380 = arith.subf %379, %376 : vector<8x1xf32>
    %381 = vector.broadcast %380 : vector<8x1xf32> to vector<8x32xf32>
    %382 = arith.mulf %381, %327 : vector<8x32xf32>
    %383 = arith.addf %378, %382 : vector<8x32xf32>
    %384 = vector.broadcast %376 : vector<8x1xf32> to vector<8x32xf32>
    %385 = arith.mulf %384, %369 : vector<8x32xf32>
    %cst_135 = arith.constant 1.000000e+00 : f32
    %386 = vector.broadcast %cst_135 : f32 to vector<8x1xf32>
    %387 = arith.subf %386, %376 : vector<8x1xf32>
    %388 = vector.broadcast %387 : vector<8x1xf32> to vector<8x32xf32>
    %389 = arith.mulf %388, %316 : vector<8x32xf32>
    %390 = arith.addf %385, %389 : vector<8x32xf32>
    %391 = math.absf %390 : vector<8x32xf32>
    %c5 = arith.constant 5 : index
    %392 = memref.load %arg0[%c5] : memref<8xf32, #tpu.memory_space<smem>>
    %c5_136 = arith.constant 5 : index
    %c0_137 = arith.constant 0 : index
    %c0_138 = arith.constant 0 : index
    %393 = vector.load %arg1[%c5_136, %c0_137, %c0_138] : memref<8x8x16xf32, #tpu.memory_space<vmem>>, vector<1x8x16xf32>
    %394 = vector.shape_cast %393 : vector<1x8x16xf32> to vector<8x16xf32>
    %395 = arith.truncf %383 : vector<8x32xf32> to vector<8x32xbf16>
    %c0_139 = arith.constant 0 : index
    %c0_140 = arith.constant 0 : index
    %396 = vector.load %arg2[%c0_139, %c0_140] : memref<32x32xbf16, #tpu.memory_space<vmem>>, vector<32x32xbf16>
    %cst_141 = arith.constant dense<0.000000e+00> : vector<8x32xf32>
    %397 = tpu.matmul %395, %396, %cst_141 {dimension_numbers = #tpu.dot_dimension_numbers<[1], [0], [0], [1], [0, 0, 1, 1], [], []>} : vector<8x32xbf16>, vector<32x32xbf16>, vector<8x32xf32> -> vector<8x32xf32>
    %398 = arith.addf %397, %2 : vector<8x32xf32>
    %399 = math.tanh %398 : vector<8x32xf32>
    %400 = vector.broadcast %392 : f32 to vector<8x32xf32>
    %401 = arith.mulf %399, %400 : vector<8x32xf32>
    %402 = arith.addf %383, %401 : vector<8x32xf32>
    %403 = tpu.concatenate %402, %391, %394 in 1 : vector<8x32xf32>, vector<8x32xf32>, vector<8x16xf32> -> vector<8x80xf32>
    %404 = arith.truncf %403 : vector<8x80xf32> to vector<8x80xbf16>
    %c0_142 = arith.constant 0 : index
    %c0_143 = arith.constant 0 : index
    %405 = vector.load %arg4[%c0_142, %c0_143] : memref<80x128xbf16, #tpu.memory_space<vmem>>, vector<80x128xbf16>
    %cst_144 = arith.constant dense<0.000000e+00> : vector<8x128xf32>
    %406 = tpu.matmul %404, %405, %cst_144 {dimension_numbers = #tpu.dot_dimension_numbers<[1], [0], [0], [1], [0, 0, 1, 1], [], []>} : vector<8x80xbf16>, vector<80x128xbf16>, vector<8x128xf32> -> vector<8x128xf32>
    %407 = arith.addf %406, %5 : vector<8x128xf32>
    %408 = math.tanh %407 : vector<8x128xf32>
    %409 = arith.truncf %408 : vector<8x128xf32> to vector<8x128xbf16>
    %c0_145 = arith.constant 0 : index
    %c0_146 = arith.constant 0 : index
    %410 = vector.load %arg6[%c0_145, %c0_146] : memref<128x64xbf16, #tpu.memory_space<vmem>>, vector<128x64xbf16>
    %cst_147 = arith.constant dense<0.000000e+00> : vector<8x64xf32>
    %411 = tpu.matmul %409, %410, %cst_147 {dimension_numbers = #tpu.dot_dimension_numbers<[1], [0], [0], [1], [0, 0, 1, 1], [], []>} : vector<8x128xbf16>, vector<128x64xbf16>, vector<8x64xf32> -> vector<8x64xf32>
    %412 = arith.addf %411, %8 : vector<8x64xf32>
    %413 = arith.negf %412 : vector<8x64xf32>
    %414 = math.exp %413 : vector<8x64xf32>
    %cst_148 = arith.constant 1.000000e+00 : f32
    %415 = vector.broadcast %cst_148 : f32 to vector<8x64xf32>
    %416 = arith.addf %415, %414 : vector<8x64xf32>
    %417 = arith.divf %415, %416 : vector<8x64xf32>
    %418 = vector.extract_strided_slice %417 {offsets = [0, 0], sizes = [8, 32], strides = [1, 1]} : vector<8x64xf32> to vector<8x32xf32>
    %419 = vector.extract_strided_slice %417 {offsets = [0, 32], sizes = [8, 32], strides = [1, 1]} : vector<8x64xf32> to vector<8x32xf32>
    %420 = arith.mulf %402, %419 : vector<8x32xf32>
    %421 = arith.mulf %391, %419 : vector<8x32xf32>
    %422 = tpu.concatenate %420, %421, %394 in 1 : vector<8x32xf32>, vector<8x32xf32>, vector<8x16xf32> -> vector<8x80xf32>
    %423 = arith.truncf %422 : vector<8x80xf32> to vector<8x80xbf16>
    %c0_149 = arith.constant 0 : index
    %c0_150 = arith.constant 0 : index
    %424 = vector.load %arg8[%c0_149, %c0_150] : memref<80x64xbf16, #tpu.memory_space<vmem>>, vector<80x64xbf16>
    %cst_151 = arith.constant dense<0.000000e+00> : vector<8x64xf32>
    %425 = tpu.matmul %423, %424, %cst_151 {dimension_numbers = #tpu.dot_dimension_numbers<[1], [0], [0], [1], [0, 0, 1, 1], [], []>} : vector<8x80xbf16>, vector<80x64xbf16>, vector<8x64xf32> -> vector<8x64xf32>
    %426 = arith.addf %425, %11 : vector<8x64xf32>
    %427 = math.tanh %426 : vector<8x64xf32>
    %428 = arith.truncf %427 : vector<8x64xf32> to vector<8x64xbf16>
    %c0_152 = arith.constant 0 : index
    %c0_153 = arith.constant 0 : index
    %429 = vector.load %arg10[%c0_152, %c0_153] : memref<64x64xbf16, #tpu.memory_space<vmem>>, vector<64x64xbf16>
    %cst_154 = arith.constant dense<0.000000e+00> : vector<8x64xf32>
    %430 = tpu.matmul %428, %429, %cst_154 {dimension_numbers = #tpu.dot_dimension_numbers<[1], [0], [0], [1], [0, 0, 1, 1], [], []>} : vector<8x64xbf16>, vector<64x64xbf16>, vector<8x64xf32> -> vector<8x64xf32>
    %431 = arith.addf %430, %14 : vector<8x64xf32>
    %432 = vector.extract_strided_slice %431 {offsets = [0, 0], sizes = [8, 32], strides = [1, 1]} : vector<8x64xf32> to vector<8x32xf32>
    %433 = vector.extract_strided_slice %431 {offsets = [0, 32], sizes = [8, 32], strides = [1, 1]} : vector<8x64xf32> to vector<8x32xf32>
    %434 = math.absf %433 : vector<8x32xf32>
    %cst_155 = arith.constant 1.000000e+00 : f32
    %435 = vector.broadcast %cst_155 : f32 to vector<8x32xf32>
    %436 = arith.subf %435, %418 : vector<8x32xf32>
    %437 = arith.mulf %436, %432 : vector<8x32xf32>
    %438 = arith.mulf %418, %402 : vector<8x32xf32>
    %439 = arith.addf %437, %438 : vector<8x32xf32>
    %cst_156 = arith.constant 1.000000e+00 : f32
    %440 = vector.broadcast %cst_156 : f32 to vector<8x32xf32>
    %441 = arith.subf %440, %418 : vector<8x32xf32>
    %442 = arith.mulf %441, %434 : vector<8x32xf32>
    %443 = arith.mulf %418, %391 : vector<8x32xf32>
    %444 = arith.addf %442, %443 : vector<8x32xf32>
    %445 = vector.extract_strided_slice %394 {offsets = [0, 8], sizes = [8, 8], strides = [1, 1]} : vector<8x16xf32> to vector<8x8xf32>
    %cst_157 = arith.constant dense<0.000000e+00> : vector<8xf32>
    %446 = vector.multi_reduction <add>, %445, %cst_157 [1] : vector<8x8xf32> to vector<8xf32>
    %447 = vector.shape_cast %446 : vector<8xf32> to vector<8x1xf32>
    %cst_158 = arith.constant 0.000000e+00 : f32
    %448 = vector.broadcast %cst_158 : f32 to vector<8x1xf32>
    %449 = arith.cmpf ogt, %447, %448 : vector<8x1xf32>
    %450 = arith.extui %449 : vector<8x1xi1> to vector<8x1xi32>
    %451 = arith.sitofp %450 : vector<8x1xi32> to vector<8x1xf32>
    %452 = vector.broadcast %451 : vector<8x1xf32> to vector<8x32xf32>
    %453 = arith.mulf %452, %439 : vector<8x32xf32>
    %cst_159 = arith.constant 1.000000e+00 : f32
    %454 = vector.broadcast %cst_159 : f32 to vector<8x1xf32>
    %455 = arith.subf %454, %451 : vector<8x1xf32>
    %456 = vector.broadcast %455 : vector<8x1xf32> to vector<8x32xf32>
    %457 = arith.mulf %456, %402 : vector<8x32xf32>
    %458 = arith.addf %453, %457 : vector<8x32xf32>
    %459 = vector.broadcast %451 : vector<8x1xf32> to vector<8x32xf32>
    %460 = arith.mulf %459, %444 : vector<8x32xf32>
    %cst_160 = arith.constant 1.000000e+00 : f32
    %461 = vector.broadcast %cst_160 : f32 to vector<8x1xf32>
    %462 = arith.subf %461, %451 : vector<8x1xf32>
    %463 = vector.broadcast %462 : vector<8x1xf32> to vector<8x32xf32>
    %464 = arith.mulf %463, %391 : vector<8x32xf32>
    %465 = arith.addf %460, %464 : vector<8x32xf32>
    %466 = math.absf %465 : vector<8x32xf32>
    %c6 = arith.constant 6 : index
    %467 = memref.load %arg0[%c6] : memref<8xf32, #tpu.memory_space<smem>>
    %c6_161 = arith.constant 6 : index
    %c0_162 = arith.constant 0 : index
    %c0_163 = arith.constant 0 : index
    %468 = vector.load %arg1[%c6_161, %c0_162, %c0_163] : memref<8x8x16xf32, #tpu.memory_space<vmem>>, vector<1x8x16xf32>
    %469 = vector.shape_cast %468 : vector<1x8x16xf32> to vector<8x16xf32>
    %470 = arith.truncf %458 : vector<8x32xf32> to vector<8x32xbf16>
    %c0_164 = arith.constant 0 : index
    %c0_165 = arith.constant 0 : index
    %471 = vector.load %arg2[%c0_164, %c0_165] : memref<32x32xbf16, #tpu.memory_space<vmem>>, vector<32x32xbf16>
    %cst_166 = arith.constant dense<0.000000e+00> : vector<8x32xf32>
    %472 = tpu.matmul %470, %471, %cst_166 {dimension_numbers = #tpu.dot_dimension_numbers<[1], [0], [0], [1], [0, 0, 1, 1], [], []>} : vector<8x32xbf16>, vector<32x32xbf16>, vector<8x32xf32> -> vector<8x32xf32>
    %473 = arith.addf %472, %2 : vector<8x32xf32>
    %474 = math.tanh %473 : vector<8x32xf32>
    %475 = vector.broadcast %467 : f32 to vector<8x32xf32>
    %476 = arith.mulf %474, %475 : vector<8x32xf32>
    %477 = arith.addf %458, %476 : vector<8x32xf32>
    %478 = tpu.concatenate %477, %466, %469 in 1 : vector<8x32xf32>, vector<8x32xf32>, vector<8x16xf32> -> vector<8x80xf32>
    %479 = arith.truncf %478 : vector<8x80xf32> to vector<8x80xbf16>
    %c0_167 = arith.constant 0 : index
    %c0_168 = arith.constant 0 : index
    %480 = vector.load %arg4[%c0_167, %c0_168] : memref<80x128xbf16, #tpu.memory_space<vmem>>, vector<80x128xbf16>
    %cst_169 = arith.constant dense<0.000000e+00> : vector<8x128xf32>
    %481 = tpu.matmul %479, %480, %cst_169 {dimension_numbers = #tpu.dot_dimension_numbers<[1], [0], [0], [1], [0, 0, 1, 1], [], []>} : vector<8x80xbf16>, vector<80x128xbf16>, vector<8x128xf32> -> vector<8x128xf32>
    %482 = arith.addf %481, %5 : vector<8x128xf32>
    %483 = math.tanh %482 : vector<8x128xf32>
    %484 = arith.truncf %483 : vector<8x128xf32> to vector<8x128xbf16>
    %c0_170 = arith.constant 0 : index
    %c0_171 = arith.constant 0 : index
    %485 = vector.load %arg6[%c0_170, %c0_171] : memref<128x64xbf16, #tpu.memory_space<vmem>>, vector<128x64xbf16>
    %cst_172 = arith.constant dense<0.000000e+00> : vector<8x64xf32>
    %486 = tpu.matmul %484, %485, %cst_172 {dimension_numbers = #tpu.dot_dimension_numbers<[1], [0], [0], [1], [0, 0, 1, 1], [], []>} : vector<8x128xbf16>, vector<128x64xbf16>, vector<8x64xf32> -> vector<8x64xf32>
    %487 = arith.addf %486, %8 : vector<8x64xf32>
    %488 = arith.negf %487 : vector<8x64xf32>
    %489 = math.exp %488 : vector<8x64xf32>
    %cst_173 = arith.constant 1.000000e+00 : f32
    %490 = vector.broadcast %cst_173 : f32 to vector<8x64xf32>
    %491 = arith.addf %490, %489 : vector<8x64xf32>
    %492 = arith.divf %490, %491 : vector<8x64xf32>
    %493 = vector.extract_strided_slice %492 {offsets = [0, 0], sizes = [8, 32], strides = [1, 1]} : vector<8x64xf32> to vector<8x32xf32>
    %494 = vector.extract_strided_slice %492 {offsets = [0, 32], sizes = [8, 32], strides = [1, 1]} : vector<8x64xf32> to vector<8x32xf32>
    %495 = arith.mulf %477, %494 : vector<8x32xf32>
    %496 = arith.mulf %466, %494 : vector<8x32xf32>
    %497 = tpu.concatenate %495, %496, %469 in 1 : vector<8x32xf32>, vector<8x32xf32>, vector<8x16xf32> -> vector<8x80xf32>
    %498 = arith.truncf %497 : vector<8x80xf32> to vector<8x80xbf16>
    %c0_174 = arith.constant 0 : index
    %c0_175 = arith.constant 0 : index
    %499 = vector.load %arg8[%c0_174, %c0_175] : memref<80x64xbf16, #tpu.memory_space<vmem>>, vector<80x64xbf16>
    %cst_176 = arith.constant dense<0.000000e+00> : vector<8x64xf32>
    %500 = tpu.matmul %498, %499, %cst_176 {dimension_numbers = #tpu.dot_dimension_numbers<[1], [0], [0], [1], [0, 0, 1, 1], [], []>} : vector<8x80xbf16>, vector<80x64xbf16>, vector<8x64xf32> -> vector<8x64xf32>
    %501 = arith.addf %500, %11 : vector<8x64xf32>
    %502 = math.tanh %501 : vector<8x64xf32>
    %503 = arith.truncf %502 : vector<8x64xf32> to vector<8x64xbf16>
    %c0_177 = arith.constant 0 : index
    %c0_178 = arith.constant 0 : index
    %504 = vector.load %arg10[%c0_177, %c0_178] : memref<64x64xbf16, #tpu.memory_space<vmem>>, vector<64x64xbf16>
    %cst_179 = arith.constant dense<0.000000e+00> : vector<8x64xf32>
    %505 = tpu.matmul %503, %504, %cst_179 {dimension_numbers = #tpu.dot_dimension_numbers<[1], [0], [0], [1], [0, 0, 1, 1], [], []>} : vector<8x64xbf16>, vector<64x64xbf16>, vector<8x64xf32> -> vector<8x64xf32>
    %506 = arith.addf %505, %14 : vector<8x64xf32>
    %507 = vector.extract_strided_slice %506 {offsets = [0, 0], sizes = [8, 32], strides = [1, 1]} : vector<8x64xf32> to vector<8x32xf32>
    %508 = vector.extract_strided_slice %506 {offsets = [0, 32], sizes = [8, 32], strides = [1, 1]} : vector<8x64xf32> to vector<8x32xf32>
    %509 = math.absf %508 : vector<8x32xf32>
    %cst_180 = arith.constant 1.000000e+00 : f32
    %510 = vector.broadcast %cst_180 : f32 to vector<8x32xf32>
    %511 = arith.subf %510, %493 : vector<8x32xf32>
    %512 = arith.mulf %511, %507 : vector<8x32xf32>
    %513 = arith.mulf %493, %477 : vector<8x32xf32>
    %514 = arith.addf %512, %513 : vector<8x32xf32>
    %cst_181 = arith.constant 1.000000e+00 : f32
    %515 = vector.broadcast %cst_181 : f32 to vector<8x32xf32>
    %516 = arith.subf %515, %493 : vector<8x32xf32>
    %517 = arith.mulf %516, %509 : vector<8x32xf32>
    %518 = arith.mulf %493, %466 : vector<8x32xf32>
    %519 = arith.addf %517, %518 : vector<8x32xf32>
    %520 = vector.extract_strided_slice %469 {offsets = [0, 8], sizes = [8, 8], strides = [1, 1]} : vector<8x16xf32> to vector<8x8xf32>
    %cst_182 = arith.constant dense<0.000000e+00> : vector<8xf32>
    %521 = vector.multi_reduction <add>, %520, %cst_182 [1] : vector<8x8xf32> to vector<8xf32>
    %522 = vector.shape_cast %521 : vector<8xf32> to vector<8x1xf32>
    %cst_183 = arith.constant 0.000000e+00 : f32
    %523 = vector.broadcast %cst_183 : f32 to vector<8x1xf32>
    %524 = arith.cmpf ogt, %522, %523 : vector<8x1xf32>
    %525 = arith.extui %524 : vector<8x1xi1> to vector<8x1xi32>
    %526 = arith.sitofp %525 : vector<8x1xi32> to vector<8x1xf32>
    %527 = vector.broadcast %526 : vector<8x1xf32> to vector<8x32xf32>
    %528 = arith.mulf %527, %514 : vector<8x32xf32>
    %cst_184 = arith.constant 1.000000e+00 : f32
    %529 = vector.broadcast %cst_184 : f32 to vector<8x1xf32>
    %530 = arith.subf %529, %526 : vector<8x1xf32>
    %531 = vector.broadcast %530 : vector<8x1xf32> to vector<8x32xf32>
    %532 = arith.mulf %531, %477 : vector<8x32xf32>
    %533 = arith.addf %528, %532 : vector<8x32xf32>
    %534 = vector.broadcast %526 : vector<8x1xf32> to vector<8x32xf32>
    %535 = arith.mulf %534, %519 : vector<8x32xf32>
    %cst_185 = arith.constant 1.000000e+00 : f32
    %536 = vector.broadcast %cst_185 : f32 to vector<8x1xf32>
    %537 = arith.subf %536, %526 : vector<8x1xf32>
    %538 = vector.broadcast %537 : vector<8x1xf32> to vector<8x32xf32>
    %539 = arith.mulf %538, %466 : vector<8x32xf32>
    %540 = arith.addf %535, %539 : vector<8x32xf32>
    %541 = math.absf %540 : vector<8x32xf32>
    %c7 = arith.constant 7 : index
    %542 = memref.load %arg0[%c7] : memref<8xf32, #tpu.memory_space<smem>>
    %c7_186 = arith.constant 7 : index
    %c0_187 = arith.constant 0 : index
    %c0_188 = arith.constant 0 : index
    %543 = vector.load %arg1[%c7_186, %c0_187, %c0_188] : memref<8x8x16xf32, #tpu.memory_space<vmem>>, vector<1x8x16xf32>
    %544 = vector.shape_cast %543 : vector<1x8x16xf32> to vector<8x16xf32>
    %545 = arith.truncf %533 : vector<8x32xf32> to vector<8x32xbf16>
    %c0_189 = arith.constant 0 : index
    %c0_190 = arith.constant 0 : index
    %546 = vector.load %arg2[%c0_189, %c0_190] : memref<32x32xbf16, #tpu.memory_space<vmem>>, vector<32x32xbf16>
    %cst_191 = arith.constant dense<0.000000e+00> : vector<8x32xf32>
    %547 = tpu.matmul %545, %546, %cst_191 {dimension_numbers = #tpu.dot_dimension_numbers<[1], [0], [0], [1], [0, 0, 1, 1], [], []>} : vector<8x32xbf16>, vector<32x32xbf16>, vector<8x32xf32> -> vector<8x32xf32>
    %548 = arith.addf %547, %2 : vector<8x32xf32>
    %549 = math.tanh %548 : vector<8x32xf32>
    %550 = vector.broadcast %542 : f32 to vector<8x32xf32>
    %551 = arith.mulf %549, %550 : vector<8x32xf32>
    %552 = arith.addf %533, %551 : vector<8x32xf32>
    %553 = tpu.concatenate %552, %541, %544 in 1 : vector<8x32xf32>, vector<8x32xf32>, vector<8x16xf32> -> vector<8x80xf32>
    %554 = arith.truncf %553 : vector<8x80xf32> to vector<8x80xbf16>
    %c0_192 = arith.constant 0 : index
    %c0_193 = arith.constant 0 : index
    %555 = vector.load %arg4[%c0_192, %c0_193] : memref<80x128xbf16, #tpu.memory_space<vmem>>, vector<80x128xbf16>
    %cst_194 = arith.constant dense<0.000000e+00> : vector<8x128xf32>
    %556 = tpu.matmul %554, %555, %cst_194 {dimension_numbers = #tpu.dot_dimension_numbers<[1], [0], [0], [1], [0, 0, 1, 1], [], []>} : vector<8x80xbf16>, vector<80x128xbf16>, vector<8x128xf32> -> vector<8x128xf32>
    %557 = arith.addf %556, %5 : vector<8x128xf32>
    %558 = math.tanh %557 : vector<8x128xf32>
    %559 = arith.truncf %558 : vector<8x128xf32> to vector<8x128xbf16>
    %c0_195 = arith.constant 0 : index
    %c0_196 = arith.constant 0 : index
    %560 = vector.load %arg6[%c0_195, %c0_196] : memref<128x64xbf16, #tpu.memory_space<vmem>>, vector<128x64xbf16>
    %cst_197 = arith.constant dense<0.000000e+00> : vector<8x64xf32>
    %561 = tpu.matmul %559, %560, %cst_197 {dimension_numbers = #tpu.dot_dimension_numbers<[1], [0], [0], [1], [0, 0, 1, 1], [], []>} : vector<8x128xbf16>, vector<128x64xbf16>, vector<8x64xf32> -> vector<8x64xf32>
    %562 = arith.addf %561, %8 : vector<8x64xf32>
    %563 = arith.negf %562 : vector<8x64xf32>
    %564 = math.exp %563 : vector<8x64xf32>
    %cst_198 = arith.constant 1.000000e+00 : f32
    %565 = vector.broadcast %cst_198 : f32 to vector<8x64xf32>
    %566 = arith.addf %565, %564 : vector<8x64xf32>
    %567 = arith.divf %565, %566 : vector<8x64xf32>
    %568 = vector.extract_strided_slice %567 {offsets = [0, 0], sizes = [8, 32], strides = [1, 1]} : vector<8x64xf32> to vector<8x32xf32>
    %569 = vector.extract_strided_slice %567 {offsets = [0, 32], sizes = [8, 32], strides = [1, 1]} : vector<8x64xf32> to vector<8x32xf32>
    %570 = arith.mulf %552, %569 : vector<8x32xf32>
    %571 = arith.mulf %541, %569 : vector<8x32xf32>
    %572 = tpu.concatenate %570, %571, %544 in 1 : vector<8x32xf32>, vector<8x32xf32>, vector<8x16xf32> -> vector<8x80xf32>
    %573 = arith.truncf %572 : vector<8x80xf32> to vector<8x80xbf16>
    %c0_199 = arith.constant 0 : index
    %c0_200 = arith.constant 0 : index
    %574 = vector.load %arg8[%c0_199, %c0_200] : memref<80x64xbf16, #tpu.memory_space<vmem>>, vector<80x64xbf16>
    %cst_201 = arith.constant dense<0.000000e+00> : vector<8x64xf32>
    %575 = tpu.matmul %573, %574, %cst_201 {dimension_numbers = #tpu.dot_dimension_numbers<[1], [0], [0], [1], [0, 0, 1, 1], [], []>} : vector<8x80xbf16>, vector<80x64xbf16>, vector<8x64xf32> -> vector<8x64xf32>
    %576 = arith.addf %575, %11 : vector<8x64xf32>
    %577 = math.tanh %576 : vector<8x64xf32>
    %578 = arith.truncf %577 : vector<8x64xf32> to vector<8x64xbf16>
    %c0_202 = arith.constant 0 : index
    %c0_203 = arith.constant 0 : index
    %579 = vector.load %arg10[%c0_202, %c0_203] : memref<64x64xbf16, #tpu.memory_space<vmem>>, vector<64x64xbf16>
    %cst_204 = arith.constant dense<0.000000e+00> : vector<8x64xf32>
    %580 = tpu.matmul %578, %579, %cst_204 {dimension_numbers = #tpu.dot_dimension_numbers<[1], [0], [0], [1], [0, 0, 1, 1], [], []>} : vector<8x64xbf16>, vector<64x64xbf16>, vector<8x64xf32> -> vector<8x64xf32>
    %581 = arith.addf %580, %14 : vector<8x64xf32>
    %582 = vector.extract_strided_slice %581 {offsets = [0, 0], sizes = [8, 32], strides = [1, 1]} : vector<8x64xf32> to vector<8x32xf32>
    %583 = vector.extract_strided_slice %581 {offsets = [0, 32], sizes = [8, 32], strides = [1, 1]} : vector<8x64xf32> to vector<8x32xf32>
    %584 = math.absf %583 : vector<8x32xf32>
    %cst_205 = arith.constant 1.000000e+00 : f32
    %585 = vector.broadcast %cst_205 : f32 to vector<8x32xf32>
    %586 = arith.subf %585, %568 : vector<8x32xf32>
    %587 = arith.mulf %586, %582 : vector<8x32xf32>
    %588 = arith.mulf %568, %552 : vector<8x32xf32>
    %589 = arith.addf %587, %588 : vector<8x32xf32>
    %cst_206 = arith.constant 1.000000e+00 : f32
    %590 = vector.broadcast %cst_206 : f32 to vector<8x32xf32>
    %591 = arith.subf %590, %568 : vector<8x32xf32>
    %592 = arith.mulf %591, %584 : vector<8x32xf32>
    %593 = arith.mulf %568, %541 : vector<8x32xf32>
    %594 = arith.addf %592, %593 : vector<8x32xf32>
    %595 = vector.extract_strided_slice %544 {offsets = [0, 8], sizes = [8, 8], strides = [1, 1]} : vector<8x16xf32> to vector<8x8xf32>
    %cst_207 = arith.constant dense<0.000000e+00> : vector<8xf32>
    %596 = vector.multi_reduction <add>, %595, %cst_207 [1] : vector<8x8xf32> to vector<8xf32>
    %597 = vector.shape_cast %596 : vector<8xf32> to vector<8x1xf32>
    %cst_208 = arith.constant 0.000000e+00 : f32
    %598 = vector.broadcast %cst_208 : f32 to vector<8x1xf32>
    %599 = arith.cmpf ogt, %597, %598 : vector<8x1xf32>
    %600 = arith.extui %599 : vector<8x1xi1> to vector<8x1xi32>
    %601 = arith.sitofp %600 : vector<8x1xi32> to vector<8x1xf32>
    %602 = vector.broadcast %601 : vector<8x1xf32> to vector<8x32xf32>
    %603 = arith.mulf %602, %589 : vector<8x32xf32>
    %cst_209 = arith.constant 1.000000e+00 : f32
    %604 = vector.broadcast %cst_209 : f32 to vector<8x1xf32>
    %605 = arith.subf %604, %601 : vector<8x1xf32>
    %606 = vector.broadcast %605 : vector<8x1xf32> to vector<8x32xf32>
    %607 = arith.mulf %606, %552 : vector<8x32xf32>
    %608 = arith.addf %603, %607 : vector<8x32xf32>
    %609 = vector.broadcast %601 : vector<8x1xf32> to vector<8x32xf32>
    %610 = arith.mulf %609, %594 : vector<8x32xf32>
    %cst_210 = arith.constant 1.000000e+00 : f32
    %611 = vector.broadcast %cst_210 : f32 to vector<8x1xf32>
    %612 = arith.subf %611, %601 : vector<8x1xf32>
    %613 = vector.broadcast %612 : vector<8x1xf32> to vector<8x32xf32>
    %614 = arith.mulf %613, %541 : vector<8x32xf32>
    %615 = arith.addf %610, %614 : vector<8x32xf32>
    %616 = math.absf %615 : vector<8x32xf32>
    %617 = tpu.concatenate %608, %616 in 1 : vector<8x32xf32>, vector<8x32xf32> -> vector<8x64xf32>
    %c0_211 = arith.constant 0 : index
    %c0_212 = arith.constant 0 : index
    %618 = vector.load %arg12[%c0_211, %c0_212] : memref<8x64xf32, #tpu.memory_space<vmem>>, vector<8x64xf32>
    tpu.vector_store %arg12[%c0_211, %c0_212], %617 {strides = array<i32>} : memref<8x64xf32, #tpu.memory_space<vmem>>, vector<8x64xf32>,
    return
  }
}

</mosaic_0001>

<bundles_post_ra>
// kernel: tpu_custom_call.1
= control target key start
LH: loop header
LB: loop body
LE: loop exit
PB: predicated region body
PF: predicated region fallthrough
CT: control target
= control target key end

     0   :  { %17 = vsyncpa [#allocation5], 0  ;;  %s4803_s0 = inlined_call_operand.hbm [shape: f32[8], index: 0, kind: input, shape index: {}]   ;;  %s4804_s1 = inlined_call_operand.vmem [shape: f32[8,8,16], index: 1, kind: input, shape index: {}]   ;;  %s4805_s2 = inlined_call_operand.hbm [shape: bf16[32,32], index: 2, kind: input, shape index: {}]   ;;  %s4806_s3 = inlined_call_operand.vmem [shape: f32[1,32], index: 3, kind: input, shape index: {}]   ;;  %s4807_s4 = inlined_call_operand.vmem [shape: bf16[80,128], index: 4, kind: input, shape index: {}]   ;;  %s4808_s5 = inlined_call_operand.vmem [shape: f32[1,128], index: 5, kind: input, shape index: {}]   ;;  %s4809_s6 = inlined_call_operand.vmem [shape: bf16[128,64], index: 6, kind: input, shape index: {}]   ;;  %s4810_s7 = inlined_call_operand.vmem [shape: f32[1,64], index: 7, kind: input, shape index: {}]   ;;  %s4811_s8 = inlined_call_operand.vmem [shape: bf16[80,64], index: 8, kind: input, shape index: {}]   ;;  %s4812_s9 = inlined_call_operand.vmem [shape: f32[1,64], index: 9, kind: input, shape index: {}]   ;;  %s4813_s10 = inlined_call_operand.vmem [shape: bf16[64,64], index: 10, kind: input, shape index: {}]   ;;  %s4814_s11 = inlined_call_operand.vmem [shape: f32[1,64], index: 11, kind: input, shape index: {}]   ;;  %s4815_s12 = inlined_call_operand.hbm [shape: f32[8,64], index: 12, kind: output, shape index: {}]  }
   0x1   :  { %18 = vsyncpa [#allocation3], 0 }
   0x2   :  { %19 = vsyncpa [#allocation4], 0  ;;  %s3638_s21 = smov [#allocation2]   ;;  %s3639_s24 = smov [#allocation6]  }
   0x3   :  { %27 = dma.hbm_to_smem %s4803_s0, 16, %s3638_s21, [#allocation5]  }
   0x4   :  { %s35_s25 = sshll.u32 %s3639_s24, 4  ;;  %s36_s25 = int_to_ptr.vmem [resolvable:$true] %s35_s25 }
   0x5   :  { %s3600_s26 = scalar_lea.vmem %s36_s25, 256  ;;  %p3605_p1 = scmp.lt.s32.totalorder %s36_s25, %s36_s25 }
   0x6   :  { %p3601_p0 = scmp.ne.s32.totalorder %s36_s25, %s3600_s26  ;;  %p3606_p2 = scmp.lt.s32.totalorder %s3600_s26, %s3600_s26 }
   0x8   :  { %p3607_p3 = por %p3606_p2, %p3605_p1 }
   0xa   :  { %p3608_p4 = pnand %p3607_p3, %p3601_p0 }
   0xc   :  { %3611 = shalt.err (!%p3608_p4)
}
   0xd   :  { %s3640_s27 = smov 64   ;;  %s3641_s28 = smov 4  }
   0xe   :  { %41 = dma.hbm_to_vmem [thread:$0]  %s4805_s2, 256, %s36_s25, [#allocation3], %s3640_s27, %s3640_s27, %s3641_s28  }
   0xf   :  { %3632 = dma.done.wait [#allocation5], 16  }
  0x10   :  { %3633 = vsyncadd [#allocation5], 4294967280 }
  0x11   :  { %3634 = dma.done.wait [#allocation3], 256  }
  0x12   :  { %3635 = vsyncadd [#allocation3], 4294967040 }
  0x13   :  { %66 = sfence }
  0x14   :  { %v104_v0 = vld [vmem:[%s4804_s1] sm:$0xff]  ;;  %v3725_v1 = vld [vmem:[#allocation6 + $0x8] sm:$0xff]   ;;  %s3642_s14 = smov 120   ;;  %v3643_v2 = vmov 0.0   ;;  %vm3644_vm0 = vmmov 0   ;;  %v3645_v4 = vmov 0  }
  0x15   :  { %553 = vrot.lane.b32.xlu1 %v104_v0, %s3642_s14  ;;  %2896 = vmatprep.subr.bf16.mxu1 %v3643_v2  ;;  %v3730_v3 = vld [vmem:[#allocation6] sm:$0xff]   ;;  %v3753_v6 = vld [vmem:[%s4807_s4 + $0x18] sm:$0xff]   ;;  %v3759_v7 = vld [vmem:[%s4807_s4 + $0x10] sm:$0xff]   ;;  %vm556_vm1 = vcmask 64512   ;;  %s103_s2 = sld [smem:[#allocation2]]  ;;  %vm121_vm2 = vcmask 261120  }
  0x16   :  { %2897 = vmatpush3.bf16.msra.mxu1 %v3725_v1  ;;  %170 = vrot.lane.b32.xlu0 %v104_v0, %s3640_s27  ;;  %v3746_v5 = vld [vmem:[%s4807_s4 + $0x20] sm:$0xff]   ;;  %v3766_v8 = vld [vmem:[%s4807_s4 + $0x8] sm:$0xff]   ;;  %v3782_v12 = vld [vmem:[%s4809_s6 + $0x38] sm:$0xff]   ;;  %vm174_vm3 = vcmask 523264   ;;  %vm217_vm4 = vcmask 654336   ;;  %s3646_s21 = smov 96  }
  0x17   :  { %2898 = vmatprep.subr.bf16.mxu1 %v3643_v2  ;;  %2900 = vmatprep.mubr.msk.bf16.mxu1 %vm3644_vm0, %v3643_v2  ;;  %v3774_v9 = vld [vmem:[%s4807_s4] sm:$0xff]   ;;  %v3788_v13 = vld [vmem:[%s4809_s6 + $0x30] sm:$0xff]   ;;  %v3795_v14 = vld [vmem:[%s4809_s6 + $0x28] sm:$0xff]   ;;  %s3647_s16 = smov 32   ;;  %s2608_s19 = sld [smem:[#allocation2 + $0x1]] }
  0x18   :  { %2918 = vmatprep.subr.bf16.mxu0 %v3643_v2  ;;  %2934 = vmatprep.mubr.msk.bf16.mxu0 %vm3644_vm0, %v3643_v2  ;;  %v3803_v15 = vld [vmem:[%s4806_s3] ss:$0 sm:$0xff]  ;;  %v3827_v29 = vld [vmem:[%s4809_s6 + $0x18] sm:$0xff]   ;;  %v3834_v30 = vld [vmem:[%s4809_s6 + $0x10] sm:$0xff]   ;;  %s2616_s23 = sld [smem:[#allocation2 + $0x2]] }
  0x19   :  { %2919 = vmatpush3.bf16.msra.mxu0 %v3782_v12  ;;  %v3820_v28 = vld [vmem:[%s4809_s6 + $0x20] sm:$0xff]   ;;  %v3840_v31 = vld [vmem:[%s4809_s6 + $0x8] sm:$0xff]   ;;  %v3869_v42 = vld [vmem:[%s4811_s8 + $0x18] sm:$0xff]   ;;  %s2624_s26 = sld [smem:[#allocation2 + $0x3]] }
  0x1a   :  { %2899 = vmatpush3.bf16.msra.mxu1 %v3730_v3  ;;  %2920 = vmatprep.subr.bf16.mxu0 %v3643_v2  ;;  %v3847_v32 = vld [vmem:[%s4809_s6] sm:$0xff]   ;;  %v3876_v43 = vld [vmem:[%s4811_s8 + $0x10] sm:$0xff]   ;;  %v3883_v44 = vld [vmem:[%s4811_s8 + $0x8] sm:$0xff]  }
  0x1b   :  { %2904 = vmatprep.subr.bf16.mxu1 %v3643_v2  ;;  %v166_v21 = vstv %s103_s2  ;;  %v3855_v33 = vld [vmem:[%s4808_s5] ss:$0 sm:$0xff]  ;;  %v3923_v62 = vld [vmem:[%s4813_s10 + $0x18] sm:$0xff]   ;;  %v3930_v63 = vld [vmem:[%s4813_s10 + $0x10] sm:$0xff]  }
  0x1c   :  { %v3863_v41 = vld [vmem:[%s4811_s8 + $0x20] sm:$0xff]   ;;  %v3937_v0 = vld [vmem:[%s4813_s10 + $0x8] sm:$0xff]  }
  0x1d   :  { %2901 = vmatmul.mubr.bf16.vlgmr.msra.gmra.mxu1 %v3645_v4  ;;  %2921 = vmatpush3.bf16.msra.mxu0 %v3788_v13  ;;  %v3891_v45 = vld [vmem:[%s4810_s7] ss:$0 sm:$0xff] }
  0x1e   :  { %2914 = vmatprep.mubr.msk.bf16.mxu1 %vm3644_vm0, %v3643_v2  ;;  %2905 = vmatpush3.bf16.msra.mxu1 %v3746_v5  ;;  %v3897_v54 = vld [vmem:[%s4811_s8] sm:$0xff]  }
  0x1f   :  { %2906 = vmatprep.subr.bf16.mxu1 %v3643_v2  ;;  %2922 = vmatprep.subr.bf16.mxu0 %v3643_v2  ;;  %v3944_v4 = vld [vmem:[%s4813_s10] sm:$0xff]  }
  0x21   :  { %2923 = vmatpush3.bf16.msra.mxu0 %v3795_v14 }
  0x22   :  { %2907 = vmatpush3.bf16.msra.mxu1 %v3753_v6  ;;  %2924 = vmatprep.subr.bf16.mxu0 %v3643_v2 }
  0x23   :  { %2908 = vmatprep.subr.bf16.mxu1 %v3643_v2 }
  0x25   :  { %2925 = vmatpush3.bf16.msra.mxu0 %v3820_v28 }
  0x26   :  { %2909 = vmatpush3.bf16.msra.mxu1 %v3759_v7  ;;  %2926 = vmatprep.subr.bf16.mxu0 %v3643_v2 }
  0x27   :  { %2910 = vmatprep.subr.bf16.mxu1 %v3643_v2 }
  0x29   :  { %2927 = vmatpush3.bf16.msra.mxu0 %v3827_v29 }
  0x2a   :  { %2911 = vmatpush3.bf16.msra.mxu1 %v3766_v8  ;;  %2928 = vmatprep.subr.bf16.mxu0 %v3643_v2 }
  0x2b   :  { %2912 = vmatprep.subr.bf16.mxu1 %v3643_v2 }
  0x2d   :  { %2929 = vmatpush3.bf16.msra.mxu0 %v3834_v30 }
  0x2e   :  { %2913 = vmatpush3.bf16.msra.mxu1 %v3774_v9  ;;  %2930 = vmatprep.subr.bf16.mxu0 %v3643_v2 }
  0x2f   :  { %2938 = vmatprep.subr.bf16.mxu1 %v3643_v2 }
  0x31   :  { %2931 = vmatpush3.bf16.msra.mxu0 %v3840_v31 }
  0x32   :  { %2932 = vmatprep.subr.bf16.mxu0 %v3643_v2 }
  0x35   :  { %2933 = vmatpush3.bf16.msra.mxu0 %v3847_v32 }
  0x36   :  { %2952 = vmatprep.subr.bf16.mxu0 %v3643_v2 }
  0x87   :  { %v554_v10 = vpop.permute.xlu1 %553 }
  0x88   :  { %v557_v11 = vsel %vm556_vm1, %v554_v10, 0.0  ;;  %v3806_v23 = vpop.permute.xlu0 %170  ;;  %v3951_v10 = vld [vmem:[%s4812_s9] ss:$0 sm:$0xff] }
  0x89   :  { %558 = vadd.xlane.f32.xlu1 %v557_v11 }
  0xdd   :  { %v159_v16 = vpop.f32.mrf.mxu1 }
  0xde   :  { %v160_v17 = vadd.f32 %v3803_v15, %v159_v16 }
  0xdf   :  { %v2902_v18 = vpop.f32.mrf.mxu1 }
  0xe0   :  { %3475 = vtanh.f32 %v160_v17 }
  0xe1   :  { %v162_v19 = vpop.f32.mrf.mxu1 }
  0xe3   :  { %v2903_v20 = vpop.f32.mrf.mxu1 }
  0xed   :  { %v3476_v22 = vpop.eup %3475 }
  0xee   :  { %v3808_v24 = vmul.f32 %v3476_v22, %v166_v21 }
  0xf0   :  { %v173_v25 = vsel %vm121_vm2, %v3808_v24, 0.0 }
  0xf1   :  { %v175_v26 = vsel %vm174_vm3, %v173_v25, %v3806_v23 }
  0xf2   :  { %v176_v27 = vpack.c.bf16 %v175_v26, %v175_v26 }
  0xf4   :  { %2915 = vmatmul.mubr.msk.bf16.vlgmr.msra.gmra.mxu1 %vm217_vm4, %v176_v27 }
  0xf5   :  { %2948 = vmatprep.mubr.msk.bf16.mxu1 %vm3644_vm0, %v3643_v2  ;;  %2939 = vmatpush3.bf16.msra.mxu1 %v3863_v41 }
  0xf6   :  { %2940 = vmatprep.subr.bf16.mxu1 %v3643_v2 }
  0xf9   :  { %2941 = vmatpush3.bf16.msra.mxu1 %v3869_v42 }
  0xfa   :  { %2942 = vmatprep.subr.bf16.mxu1 %v3643_v2 }
  0xfd   :  { %2943 = vmatpush3.bf16.msra.mxu1 %v3876_v43 }
  0xfe   :  { %2944 = vmatprep.subr.bf16.mxu1 %v3643_v2 }
 0x101   :  { %2945 = vmatpush3.bf16.msra.mxu1 %v3883_v44 }
 0x102   :  { %2946 = vmatprep.subr.bf16.mxu1 %v3643_v2 }
 0x105   :  { %2947 = vmatpush3.bf16.msra.mxu1 %v3897_v54 }
 0x106   :  { %2964 = vmatprep.subr.bf16.mxu1 %v3643_v2 }
 0x112   :  { %v559_v22 = vpop.xlane.xlu1 %558 }
 0x113   :  { %vm560_vm5 = vcmp.gt.f32.partialorder %v559_v22, 0.0 }
 0x114   :  { %v2607_v25 = vsel %vm560_vm5, 1.0, %v3643_v2 }
 0x1b4   :  { %v255_v34 = vpop.f32.mrf.mxu1 }
 0x1b5   :  { %v256_v35 = vadd.f32 %v3855_v33, %v255_v34 }
 0x1b6   :  { %v2916_v36 = vpop.f32.mrf.mxu1 }
 0x1b7   :  { %3477 = vtanh.f32 %v256_v35  ;;  %v564_v36 = vsub.f32 1.0, %v2607_v25 }
 0x1b8   :  { %v258_v37 = vpop.f32.mrf.mxu1 }
 0x1ba   :  { %v2917_v38 = vpop.f32.mrf.mxu1 }
 0x1c4   :  { %v3478_v39 = vpop.eup %3477 }
 0x1c5   :  { %v262_v40 = vpack.c.bf16 %v3478_v39, %v3478_v39 }
 0x1c7   :  { %2935 = vmatmul.mubr.bf16.vlgmr.msra.gmra.mxu0 %v262_v40 }
 0x1c8   :  { %2960 = vmatprep.mubr.msk.bf16.mxu0 %vm3644_vm0, %v3643_v2  ;;  %2953 = vmatpush3.bf16.msra.mxu0 %v3923_v62 }
 0x1c9   :  { %2954 = vmatprep.subr.bf16.mxu0 %v3643_v2 }
 0x1cc   :  { %2955 = vmatpush3.bf16.msra.mxu0 %v3930_v63 }
 0x1cd   :  { %2956 = vmatprep.subr.bf16.mxu0 %v3643_v2 }
 0x1d0   :  { %2957 = vmatpush3.bf16.msra.mxu0 %v3937_v0 }
 0x1d1   :  { %2958 = vmatprep.subr.bf16.mxu0 %v3643_v2 }
 0x1d4   :  { %2959 = vmatpush3.bf16.msra.mxu0 %v3944_v4 }
 0x1d5   :  { %2986 = vmatprep.subr.bf16.mxu0 %v3643_v2 }
 0x287   :  { %v361_v46 = vpop.f32.mrf.mxu0 }
 0x288   :  { %v362_v47 = vadd.f32 %v3891_v45, %v361_v46 }
 0x289   :  { %v2936_v48 = vpop.f32.mrf.mxu0 }
 0x28a   :  { %v2595_v49 = vmul.f32 -1.442695, %v362_v47  ;;  %v565_v48 = vmul.f32 %v564_v36, %v3808_v24 }
 0x28b   :  { %v364_v50 = vpop.f32.mrf.mxu0 }
 0x28c   :  { %3479 = vpow2.f32 %v2595_v49 }
 0x28d   :  { %v2937_v51 = vpop.f32.mrf.mxu0 }
 0x299   :  { %v3480_v52 = vpop.eup %3479 }
 0x29a   :  { %v370_v53 = vadd.f32 1.0, %v3480_v52 }
 0x29c   :  { %3481 = vrcp.f32 %v370_v53 }
 0x2a9   :  { %v3901_v55 = vpop.eup %3481 }
 0x2aa   :  { %374 = vrot.lane.b32.xlu0 %v3901_v55, %s3646_s21  ;;  %v3907_v58 = vmul.f32 0.0, %v3901_v55  ;;  %v543_v34 = vsub.f32 1.0, %v3901_v55  ;;  %v545_v39 = vmul.f32 %v3901_v55, %v3808_v24  ;;  %v568_v55 = vmul.f32 0.0, %v564_v36 }
 0x31c   :  { %v375_v56 = vpop.permute.xlu0 %374 }
 0x31d   :  { %v377_v57 = vmul.f32 %v375_v56, %v3808_v24 }
 0x31f   :  { %v379_v59 = vsel %vm121_vm2, %v377_v57, %v3907_v58 }
 0x320   :  { %v380_v60 = vsel %vm174_vm3, %v379_v59, %v3806_v23  ;;  %v3976_v23 = vld [vmem:[%s4814_s11] ss:$0 sm:$0xff] }
 0x321   :  { %v381_v61 = vpack.c.bf16 %v380_v60, %v380_v60  ;;  %v2609_v60 = vld [vmem:[%s4804_s1 + $0x8] sm:$0xff] }
 0x323   :  { %2949 = vmatmul.mubr.msk.bf16.vlgmr.msra.gmra.mxu1 %vm217_vm4, %v381_v61 }
 0x324   :  { %2965 = vmatpush3.bf16.msra.mxu1 %v3725_v1  ;;  %2968 = vmatprep.mubr.msk.bf16.mxu1 %vm3644_vm0, %v3643_v2 }
 0x325   :  { %2966 = vmatprep.subr.bf16.mxu1 %v3643_v2 }
 0x328   :  { %2967 = vmatpush3.bf16.msra.mxu1 %v3730_v3 }
 0x329   :  { %2972 = vmatprep.subr.bf16.mxu1 %v3643_v2 }
 0x3e3   :  { %v459_v11 = vpop.f32.mrf.mxu1 }
 0x3e4   :  { %v460_v16 = vadd.f32 %v3951_v10, %v459_v11 }
 0x3e5   :  { %v2950_v17 = vpop.f32.mrf.mxu1 }
 0x3e6   :  { %3483 = vtanh.f32 %v460_v16 }
 0x3e7   :  { %v462_v18 = vpop.f32.mrf.mxu1 }
 0x3e9   :  { %v2951_v19 = vpop.f32.mrf.mxu1 }
 0x3ea   :  { %v619_v19 = vstv %s2608_s19 }
 0x3f3   :  { %v3484_v20 = vpop.eup %3483 }
 0x3f4   :  { %v466_v21 = vpack.c.bf16 %v3484_v20, %v3484_v20 }
 0x3f6   :  { %2961 = vmatmul.mubr.msk.bf16.vlgmr.msra.gmra.mxu0 %vm174_vm3, %v466_v21 }
 0x3f7   :  { %2987 = vmatpush3.bf16.msra.mxu0 %v3782_v12  ;;  %3002 = vmatprep.mubr.msk.bf16.mxu0 %vm3644_vm0, %v3643_v2 }
 0x3f8   :  { %2988 = vmatprep.subr.bf16.mxu0 %v3643_v2 }
 0x3fb   :  { %2989 = vmatpush3.bf16.msra.mxu0 %v3788_v13 }
 0x3fc   :  { %2990 = vmatprep.subr.bf16.mxu0 %v3643_v2 }
 0x3ff   :  { %2991 = vmatpush3.bf16.msra.mxu0 %v3795_v14 }
 0x400   :  { %2992 = vmatprep.subr.bf16.mxu0 %v3643_v2 }
 0x403   :  { %2993 = vmatpush3.bf16.msra.mxu0 %v3820_v28 }
 0x404   :  { %2994 = vmatprep.subr.bf16.mxu0 %v3643_v2 }
 0x407   :  { %2995 = vmatpush3.bf16.msra.mxu0 %v3827_v29 }
 0x408   :  { %2996 = vmatprep.subr.bf16.mxu0 %v3643_v2 }
 0x40b   :  { %2997 = vmatpush3.bf16.msra.mxu0 %v3834_v30 }
 0x40c   :  { %2998 = vmatprep.subr.bf16.mxu0 %v3643_v2 }
 0x40f   :  { %2999 = vmatpush3.bf16.msra.mxu0 %v3840_v31 }
 0x410   :  { %3000 = vmatprep.subr.bf16.mxu0 %v3643_v2 }
 0x413   :  { %3001 = vmatpush3.bf16.msra.mxu0 %v3847_v32 }
 0x414   :  { %3020 = vmatprep.subr.bf16.mxu0 %v3643_v2 }
 0x4b6   :  { %v536_v26 = vpop.f32.mrf.mxu0 }
 0x4b7   :  { %v537_v27 = vadd.f32 %v3976_v23, %v536_v26 }
 0x4b8   :  { %v2962_v35 = vpop.f32.mrf.mxu0 }
 0x4b9   :  { %v542_v37 = vand.u32 2147483647, %v537_v27  ;;  %v544_v38 = vmul.f32 %v543_v34, %v537_v27 }
 0x4ba   :  { %v539_v40 = vpop.f32.mrf.mxu0 }
 0x4bb   :  { %v546_v46 = vadd.f32 %v545_v39, %v544_v38  ;;  %548 = vrot.lane.b32.xlu0 %v542_v37, %s3646_s21 }
 0x4bc   :  { %v2963_v47 = vpop.f32.mrf.mxu0 }
 0x4bd   :  { %v563_v49 = vmul.f32 %v2607_v25, %v546_v46 }
 0x4bf   :  { %v566_v50 = vadd.f32 %v565_v48, %v563_v49 }
 0x4c1   :  { %v574_v51 = vpack.c.bf16 %v566_v50, %v566_v50 }
 0x4c3   :  { %2969 = vmatmul.mubr.msk.bf16.vlgmr.msra.gmra.mxu1 %vm121_vm2, %v574_v51 }
 0x4c4   :  { %2973 = vmatpush3.bf16.msra.mxu1 %v3746_v5  ;;  %2982 = vmatprep.mubr.msk.bf16.mxu1 %vm3644_vm0, %v3643_v2 }
 0x4c5   :  { %2974 = vmatprep.subr.bf16.mxu1 %v3643_v2 }
 0x4c8   :  { %2975 = vmatpush3.bf16.msra.mxu1 %v3753_v6 }
 0x4c9   :  { %2976 = vmatprep.subr.bf16.mxu1 %v3643_v2 }
 0x4cc   :  { %2977 = vmatpush3.bf16.msra.mxu1 %v3759_v7 }
 0x4cd   :  { %2978 = vmatprep.subr.bf16.mxu1 %v3643_v2 }
 0x4d0   :  { %2979 = vmatpush3.bf16.msra.mxu1 %v3766_v8 }
 0x4d1   :  { %2980 = vmatprep.subr.bf16.mxu1 %v3643_v2 }
 0x4d4   :  { %2981 = vmatpush3.bf16.msra.mxu1 %v3774_v9 }
 0x4d5   :  { %3006 = vmatprep.subr.bf16.mxu1 %v3643_v2 }
 0x52d   :  { %v549_v24 = vpop.permute.xlu0 %548 }
 0x52e   :  { %v551_v52 = vmul.f32 %v549_v24, %v543_v34 }
 0x530   :  { %v552_v53 = vadd.f32 %v551_v52, %v3907_v58 }
 0x532   :  { %v567_v56 = vmul.f32 %v2607_v25, %v552_v53 }
 0x534   :  { %v569_v57 = vadd.f32 %v568_v55, %v567_v56 }
 0x536   :  { %v3999_v59 = vand.u32 2147483647, %v569_v57 }
 0x538   :  { %623 = vrot.lane.b32.xlu0 %v3999_v59, %s3647_s16 }
 0x53c   :  { %627 = vrot.lane.b32.xlu0 %v2609_v60, %s3640_s27 }
 0x583   :  { %v612_v61 = vpop.f32.mrf.mxu1 }
 0x584   :  { %v613_v58 = vadd.f32 %v3803_v15, %v612_v61 }
 0x585   :  { %v2970_v11 = vpop.f32.mrf.mxu1 }
 0x586   :  { %3485 = vtanh.f32 %v613_v58 }
 0x587   :  { %v615_v16 = vpop.f32.mrf.mxu1 }
 0x589   :  { %v2971_v17 = vpop.f32.mrf.mxu1 }
 0x593   :  { %v3486_v18 = vpop.eup %3485 }
 0x594   :  { %v620_v20 = vmul.f32 %v3486_v18, %v619_v19 }
 0x596   :  { %v4008_v22 = vadd.f32 %v620_v20, %v566_v50 }
 0x5aa   :  { %v624_v21 = vpop.permute.xlu0 %623 }
 0x5ab   :  { %v630_v25 = vsel %vm121_vm2, %v4008_v22, %v624_v21 }
 0x5ae   :  { %v628_v26 = vpop.permute.xlu0 %627 }
 0x5af   :  { %v631_v27 = vsel %vm174_vm3, %v630_v25, %v628_v26 }
 0x5b0   :  { %v632_v34 = vpack.c.bf16 %v631_v27, %v631_v27 }
 0x5b2   :  { %2983 = vmatmul.mubr.msk.bf16.vlgmr.msra.gmra.mxu1 %vm217_vm4, %v632_v34 }
 0x5b3   :  { %3007 = vmatpush3.bf16.msra.mxu1 %v3863_v41  ;;  %3016 = vmatprep.mubr.msk.bf16.mxu1 %vm3644_vm0, %v3643_v2 }
 0x5b4   :  { %3008 = vmatprep.subr.bf16.mxu1 %v3643_v2 }
 0x5b7   :  { %3009 = vmatpush3.bf16.msra.mxu1 %v3869_v42 }
 0x5b8   :  { %3010 = vmatprep.subr.bf16.mxu1 %v3643_v2 }
 0x5bb   :  { %3011 = vmatpush3.bf16.msra.mxu1 %v3876_v43 }
 0x5bc   :  { %3012 = vmatprep.subr.bf16.mxu1 %v3643_v2 }
 0x5bf   :  { %3013 = vmatpush3.bf16.msra.mxu1 %v3883_v44 }
 0x5c0   :  { %3014 = vmatprep.subr.bf16.mxu1 %v3643_v2 }
 0x5c3   :  { %3015 = vmatpush3.bf16.msra.mxu1 %v3897_v54 }
 0x5c4   :  { %3032 = vmatprep.subr.bf16.mxu1 %v3643_v2 }
 0x672   :  { %v670_v35 = vpop.f32.mrf.mxu1 }
 0x673   :  { %v671_v36 = vadd.f32 %v3855_v33, %v670_v35 }
 0x674   :  { %v2984_v37 = vpop.f32.mrf.mxu1 }
 0x675   :  { %3487 = vtanh.f32 %v671_v36 }
 0x676   :  { %v673_v38 = vpop.f32.mrf.mxu1 }
 0x678   :  { %v2985_v39 = vpop.f32.mrf.mxu1 }
 0x682   :  { %v3488_v40 = vpop.eup %3487 }
 0x683   :  { %v677_v46 = vpack.c.bf16 %v3488_v40, %v3488_v40 }
 0x685   :  { %3003 = vmatmul.mubr.bf16.vlgmr.msra.gmra.mxu0 %v677_v46 }
 0x686   :  { %3021 = vmatpush3.bf16.msra.mxu0 %v3923_v62  ;;  %3028 = vmatprep.mubr.msk.bf16.mxu0 %vm3644_vm0, %v3643_v2 }
 0x687   :  { %3022 = vmatprep.subr.bf16.mxu0 %v3643_v2 }
 0x68a   :  { %3023 = vmatpush3.bf16.msra.mxu0 %v3930_v63 }
 0x68b   :  { %3024 = vmatprep.subr.bf16.mxu0 %v3643_v2 }
 0x68e   :  { %3025 = vmatpush3.bf16.msra.mxu0 %v3937_v0 }
 0x68f   :  { %3026 = vmatprep.subr.bf16.mxu0 %v3643_v2 }
 0x692   :  { %3027 = vmatpush3.bf16.msra.mxu0 %v3944_v4 }
 0x693   :  { %3054 = vmatprep.subr.bf16.mxu0 %v3643_v2 }
 0x745   :  { %v712_v47 = vpop.f32.mrf.mxu0 }
 0x746   :  { %v713_v48 = vadd.f32 %v3891_v45, %v712_v47 }
 0x747   :  { %v3004_v49 = vpop.f32.mrf.mxu0 }
 0x748   :  { %v2612_v50 = vmul.f32 -1.442695, %v713_v48 }
 0x749   :  { %v715_v51 = vpop.f32.mrf.mxu0 }
 0x74a   :  { %3489 = vpow2.f32 %v2612_v50 }
 0x74b   :  { %v3005_v24 = vpop.f32.mrf.mxu0 }
 0x757   :  { %v3490_v52 = vpop.eup %3489 }
 0x758   :  { %v721_v53 = vadd.f32 1.0, %v3490_v52 }
 0x75a   :  { %3491 = vrcp.f32 %v721_v53 }
 0x767   :  { %v4038_v55 = vpop.eup %3491 }
 0x768   :  { %725 = vrot.lane.b32.xlu0 %v4038_v55, %s3646_s21  ;;  %v826_v39 = vsub.f32 1.0, %v4038_v55  ;;  %v828_v49 = vmul.f32 %v4038_v55, %v4008_v22 }
 0x7da   :  { %v726_v56 = vpop.permute.xlu0 %725 }
 0x7db   :  { %v729_v57 = vmul.f32 %v726_v56, %v3999_v59  ;;  %v728_v61 = vmul.f32 %v726_v56, %v4008_v22 }
 0x7dd   :  { %731 = vrot.lane.b32.xlu0 %v729_v57, %s3647_s16 }
 0x7e1   :  { %837 = vrot.lane.b32.xlu0 %v2609_v60, %s3642_s14 }
 0x84f   :  { %v732_v11 = vpop.permute.xlu0 %731 }
 0x850   :  { %v734_v16 = vsel %vm121_vm2, %v728_v61, %v732_v11  ;;  %v835_v61 = vmul.f32 %v4038_v55, %v3999_v59 }
 0x851   :  { %v735_v17 = vsel %vm174_vm3, %v734_v16, %v628_v26 }
 0x852   :  { %v736_v58 = vpack.c.bf16 %v735_v17, %v735_v17 }
 0x853   :  { %v838_v18 = vpop.permute.xlu0 %837 }
 0x854   :  { %3017 = vmatmul.mubr.msk.bf16.vlgmr.msra.gmra.mxu1 %vm217_vm4, %v736_v58  ;;  %v840_v19 = vsel %vm556_vm1, %v838_v18, 0.0 }
 0x855   :  { %841 = vadd.xlane.f32.xlu0 %v840_v19  ;;  %3033 = vmatpush3.bf16.msra.mxu1 %v3725_v1 }
 0x856   :  { %3034 = vmatprep.subr.bf16.mxu1 %v3643_v2  ;;  %3036 = vmatprep.mubr.msk.bf16.mxu1 %vm3644_vm0, %v3643_v2 }
 0x859   :  { %3035 = vmatpush3.bf16.msra.mxu1 %v3730_v3 }
 0x85a   :  { %3040 = vmatprep.subr.bf16.mxu1 %v3643_v2 }
 0x8de   :  { %v842_v35 = vpop.xlane.xlu0 %841 }
 0x8df   :  { %vm843_vm6 = vcmp.gt.f32.partialorder %v842_v35, 0.0 }
 0x8e0   :  { %v2615_v36 = vsel %vm843_vm6, 1.0, %v3643_v2 }
 0x8e1   :  { %v847_v46 = vsub.f32 1.0, %v2615_v36 }
 0x8e3   :  { %v848_v52 = vmul.f32 %v847_v46, %v4008_v22  ;;  %v851_v17 = vmul.f32 %v847_v46, %v3999_v59 }
 0x914   :  { %v774_v60 = vpop.f32.mrf.mxu1 }
 0x915   :  { %v775_v20 = vadd.f32 %v3951_v10, %v774_v60  ;;  %v2617_v60 = vld [vmem:[%s4804_s1 + $0x10] sm:$0xff] }
 0x916   :  { %v3018_v21 = vpop.f32.mrf.mxu1 }
 0x917   :  { %3493 = vtanh.f32 %v775_v20 }
 0x918   :  { %v777_v25 = vpop.f32.mrf.mxu1 }
 0x91a   :  { %v3019_v26 = vpop.f32.mrf.mxu1 }
 0x924   :  { %v3494_v27 = vpop.eup %3493 }
 0x925   :  { %v781_v34 = vpack.c.bf16 %v3494_v27, %v3494_v27  ;;  %v902_v27 = vstv %s2616_s23  ;;  %s2632_s23 = sld [smem:[#allocation2 + $0x4]] }
 0x927   :  { %3029 = vmatmul.mubr.msk.bf16.vlgmr.msra.gmra.mxu0 %vm174_vm3, %v781_v34 }
 0x928   :  { %3055 = vmatpush3.bf16.msra.mxu0 %v3782_v12  ;;  %3070 = vmatprep.mubr.msk.bf16.mxu0 %vm3644_vm0, %v3643_v2 }
 0x929   :  { %3056 = vmatprep.subr.bf16.mxu0 %v3643_v2 }
 0x92c   :  { %3057 = vmatpush3.bf16.msra.mxu0 %v3788_v13 }
 0x92d   :  { %3058 = vmatprep.subr.bf16.mxu0 %v3643_v2 }
 0x930   :  { %3059 = vmatpush3.bf16.msra.mxu0 %v3795_v14 }
 0x931   :  { %3060 = vmatprep.subr.bf16.mxu0 %v3643_v2 }
 0x934   :  { %3061 = vmatpush3.bf16.msra.mxu0 %v3820_v28 }
 0x935   :  { %3062 = vmatprep.subr.bf16.mxu0 %v3643_v2 }
 0x938   :  { %3063 = vmatpush3.bf16.msra.mxu0 %v3827_v29 }
 0x939   :  { %3064 = vmatprep.subr.bf16.mxu0 %v3643_v2 }
 0x93c   :  { %3065 = vmatpush3.bf16.msra.mxu0 %v3834_v30 }
 0x93d   :  { %3066 = vmatprep.subr.bf16.mxu0 %v3643_v2 }
 0x940   :  { %3067 = vmatpush3.bf16.msra.mxu0 %v3840_v31 }
 0x941   :  { %3068 = vmatprep.subr.bf16.mxu0 %v3643_v2 }
 0x944   :  { %3069 = vmatpush3.bf16.msra.mxu0 %v3847_v32 }
 0x945   :  { %3088 = vmatprep.subr.bf16.mxu0 %v3643_v2 }
 0x9e7   :  { %v819_v37 = vpop.f32.mrf.mxu0 }
 0x9e8   :  { %v820_v38 = vadd.f32 %v3976_v23, %v819_v37 }
 0x9e9   :  { %v3030_v40 = vpop.f32.mrf.mxu0 }
 0x9ea   :  { %v825_v47 = vand.u32 2147483647, %v820_v38  ;;  %v827_v48 = vmul.f32 %v826_v39, %v820_v38 }
 0x9eb   :  { %v822_v50 = vpop.f32.mrf.mxu0 }
 0x9ec   :  { %v829_v51 = vadd.f32 %v828_v49, %v827_v48  ;;  %831 = vrot.lane.b32.xlu1 %v825_v47, %s3646_s21 }
 0x9ed   :  { %v3031_v24 = vpop.f32.mrf.mxu0 }
 0x9ee   :  { %v846_v53 = vmul.f32 %v2615_v36, %v829_v51 }
 0x9f0   :  { %v849_v56 = vadd.f32 %v848_v52, %v846_v53 }
 0x9f2   :  { %v857_v57 = vpack.c.bf16 %v849_v56, %v849_v56 }
 0x9f4   :  { %3037 = vmatmul.mubr.msk.bf16.vlgmr.msra.gmra.mxu1 %vm121_vm2, %v857_v57 }
 0x9f5   :  { %3041 = vmatpush3.bf16.msra.mxu1 %v3746_v5  ;;  %3050 = vmatprep.mubr.msk.bf16.mxu1 %vm3644_vm0, %v3643_v2 }
 0x9f6   :  { %3042 = vmatprep.subr.bf16.mxu1 %v3643_v2 }
 0x9f9   :  { %3043 = vmatpush3.bf16.msra.mxu1 %v3753_v6 }
 0x9fa   :  { %3044 = vmatprep.subr.bf16.mxu1 %v3643_v2 }
 0x9fd   :  { %3045 = vmatpush3.bf16.msra.mxu1 %v3759_v7 }
 0x9fe   :  { %3046 = vmatprep.subr.bf16.mxu1 %v3643_v2 }
 0xa01   :  { %3047 = vmatpush3.bf16.msra.mxu1 %v3766_v8 }
 0xa02   :  { %3048 = vmatprep.subr.bf16.mxu1 %v3643_v2 }
 0xa05   :  { %3049 = vmatpush3.bf16.msra.mxu1 %v3774_v9 }
 0xa06   :  { %3074 = vmatprep.subr.bf16.mxu1 %v3643_v2 }
 0xa5e   :  { %v832_v22 = vpop.permute.xlu1 %831 }
 0xa5f   :  { %v834_v11 = vmul.f32 %v832_v22, %v826_v39 }
 0xa61   :  { %v836_v16 = vadd.f32 %v835_v61, %v834_v11 }
 0xa63   :  { %v850_v58 = vmul.f32 %v2615_v36, %v836_v16 }
 0xa65   :  { %v852_v18 = vadd.f32 %v851_v17, %v850_v58 }
 0xa67   :  { %v4099_v19 = vand.u32 2147483647, %v852_v18 }
 0xa69   :  { %906 = vrot.lane.b32.xlu1 %v4099_v19, %s3647_s16 }
 0xa6d   :  { %910 = vrot.lane.b32.xlu1 %v2617_v60, %s3640_s27 }
 0xab4   :  { %v895_v20 = vpop.f32.mrf.mxu1 }
 0xab5   :  { %v896_v26 = vadd.f32 %v3803_v15, %v895_v20 }
 0xab6   :  { %v3038_v21 = vpop.f32.mrf.mxu1 }
 0xab7   :  { %3495 = vtanh.f32 %v896_v26 }
 0xab8   :  { %v898_v55 = vpop.f32.mrf.mxu1 }
 0xaba   :  { %v3039_v25 = vpop.f32.mrf.mxu1 }
 0xac4   :  { %v3496_v59 = vpop.eup %3495 }
 0xac5   :  { %v903_v34 = vmul.f32 %v3496_v59, %v902_v27 }
 0xac7   :  { %v4108_v36 = vadd.f32 %v903_v34, %v849_v56 }
 0xadb   :  { %v907_v35 = vpop.permute.xlu1 %906 }
 0xadc   :  { %v913_v37 = vsel %vm121_vm2, %v4108_v36, %v907_v35 }
 0xadf   :  { %v911_v38 = vpop.permute.xlu1 %910 }
 0xae0   :  { %v914_v39 = vsel %vm174_vm3, %v913_v37, %v911_v38 }
 0xae1   :  { %v915_v40 = vpack.c.bf16 %v914_v39, %v914_v39 }
 0xae3   :  { %3051 = vmatmul.mubr.msk.bf16.vlgmr.msra.gmra.mxu1 %vm217_vm4, %v915_v40 }
 0xae4   :  { %3075 = vmatpush3.bf16.msra.mxu1 %v3863_v41  ;;  %3084 = vmatprep.mubr.msk.bf16.mxu1 %vm3644_vm0, %v3643_v2 }
 0xae5   :  { %3076 = vmatprep.subr.bf16.mxu1 %v3643_v2 }
 0xae8   :  { %3077 = vmatpush3.bf16.msra.mxu1 %v3869_v42 }
 0xae9   :  { %3078 = vmatprep.subr.bf16.mxu1 %v3643_v2 }
 0xaec   :  { %3079 = vmatpush3.bf16.msra.mxu1 %v3876_v43 }
 0xaed   :  { %3080 = vmatprep.subr.bf16.mxu1 %v3643_v2 }
 0xaf0   :  { %3081 = vmatpush3.bf16.msra.mxu1 %v3883_v44 }
 0xaf1   :  { %3082 = vmatprep.subr.bf16.mxu1 %v3643_v2 }
 0xaf4   :  { %3083 = vmatpush3.bf16.msra.mxu1 %v3897_v54 }
 0xaf5   :  { %3100 = vmatprep.subr.bf16.mxu1 %v3643_v2 }
 0xba3   :  { %v953_v46 = vpop.f32.mrf.mxu1 }
 0xba4   :  { %v954_v47 = vadd.f32 %v3855_v33, %v953_v46 }
 0xba5   :  { %v3052_v48 = vpop.f32.mrf.mxu1 }
 0xba6   :  { %3497 = vtanh.f32 %v954_v47 }
 0xba7   :  { %v956_v49 = vpop.f32.mrf.mxu1 }
 0xba9   :  { %v3053_v50 = vpop.f32.mrf.mxu1 }
 0xbb3   :  { %v3498_v51 = vpop.eup %3497 }
 0xbb4   :  { %v960_v24 = vpack.c.bf16 %v3498_v51, %v3498_v51 }
 0xbb6   :  { %3071 = vmatmul.mubr.bf16.vlgmr.msra.gmra.mxu0 %v960_v24 }
 0xbb7   :  { %3089 = vmatpush3.bf16.msra.mxu0 %v3923_v62  ;;  %3096 = vmatprep.mubr.msk.bf16.mxu0 %vm3644_vm0, %v3643_v2 }
 0xbb8   :  { %3090 = vmatprep.subr.bf16.mxu0 %v3643_v2 }
 0xbbb   :  { %3091 = vmatpush3.bf16.msra.mxu0 %v3930_v63 }
 0xbbc   :  { %3092 = vmatprep.subr.bf16.mxu0 %v3643_v2 }
 0xbbf   :  { %3093 = vmatpush3.bf16.msra.mxu0 %v3937_v0 }
 0xbc0   :  { %3094 = vmatprep.subr.bf16.mxu0 %v3643_v2 }
 0xbc3   :  { %3095 = vmatpush3.bf16.msra.mxu0 %v3944_v4 }
 0xbc4   :  { %3122 = vmatprep.subr.bf16.mxu0 %v3643_v2 }
 0xc76   :  { %v995_v52 = vpop.f32.mrf.mxu0 }
 0xc77   :  { %v996_v53 = vadd.f32 %v3891_v45, %v995_v52 }
 0xc78   :  { %v3072_v56 = vpop.f32.mrf.mxu0 }
 0xc79   :  { %v2620_v57 = vmul.f32 -1.442695, %v996_v53 }
 0xc7a   :  { %v998_v22 = vpop.f32.mrf.mxu0 }
 0xc7b   :  { %3499 = vpow2.f32 %v2620_v57 }
 0xc7c   :  { %v3073_v61 = vpop.f32.mrf.mxu0 }
 0xc88   :  { %v3500_v11 = vpop.eup %3499 }
 0xc89   :  { %v1004_v16 = vadd.f32 1.0, %v3500_v11 }
 0xc8b   :  { %3501 = vrcp.f32 %v1004_v16 }
 0xc98   :  { %v4138_v17 = vpop.eup %3501 }
 0xc99   :  { %1008 = vrot.lane.b32.xlu0 %v4138_v17, %s3646_s21 }
 0xd0b   :  { %v1009_v58 = vpop.permute.xlu0 %1008 }
 0xd0c   :  { %v1012_v18 = vmul.f32 %v1009_v58, %v4099_v19  ;;  %v1011_v20 = vmul.f32 %v1009_v58, %v4108_v36 }
 0xd0e   :  { %1014 = vrot.lane.b32.xlu1 %v1012_v18, %s3647_s16 }
 0xd12   :  { %1120 = vrot.lane.b32.xlu1 %v2617_v60, %s3642_s14 }
 0xd80   :  { %v1015_v21 = vpop.permute.xlu1 %1014 }
 0xd81   :  { %v1017_v55 = vsel %vm121_vm2, %v1011_v20, %v1015_v21 }
 0xd82   :  { %v1018_v25 = vsel %vm174_vm3, %v1017_v55, %v911_v38 }
 0xd83   :  { %v1019_v26 = vpack.c.bf16 %v1018_v25, %v1018_v25 }
 0xd84   :  { %v1121_v59 = vpop.permute.xlu1 %1120 }
 0xd85   :  { %3085 = vmatmul.mubr.msk.bf16.vlgmr.msra.gmra.mxu1 %vm217_vm4, %v1019_v26  ;;  %v1123_v27 = vsel %vm556_vm1, %v1121_v59, 0.0 }
 0xd86   :  { %1124 = vadd.xlane.f32.xlu1 %v1123_v27  ;;  %3101 = vmatpush3.bf16.msra.mxu1 %v3725_v1 }
 0xd87   :  { %3102 = vmatprep.subr.bf16.mxu1 %v3643_v2  ;;  %3104 = vmatprep.mubr.msk.bf16.mxu1 %vm3644_vm0, %v3643_v2 }
 0xd8a   :  { %3103 = vmatpush3.bf16.msra.mxu1 %v3730_v3 }
 0xd8b   :  { %3108 = vmatprep.subr.bf16.mxu1 %v3643_v2 }
 0xe0f   :  { %v1125_v1 = vpop.xlane.xlu1 %1124 }
 0xe10   :  { %vm1126_vm7 = vcmp.gt.f32.partialorder %v1125_v1, 0.0 }
 0xe11   :  { %v2623_v3 = vsel %vm1126_vm7, 1.0, %v3643_v2 }
 0xe45   :  { %v1057_v60 = vpop.f32.mrf.mxu1 }
 0xe46   :  { %v1058_v34 = vadd.f32 %v3951_v10, %v1057_v60 }
 0xe47   :  { %v3086_v35 = vpop.f32.mrf.mxu1 }
 0xe48   :  { %3503 = vtanh.f32 %v1058_v34 }
 0xe49   :  { %v1060_v37 = vpop.f32.mrf.mxu1 }
 0xe4b   :  { %v3087_v38 = vpop.f32.mrf.mxu1 }
 0xe55   :  { %v3504_v39 = vpop.eup %3503 }
 0xe56   :  { %v1064_v40 = vpack.c.bf16 %v3504_v39, %v3504_v39 }
 0xe58   :  { %3097 = vmatmul.mubr.msk.bf16.vlgmr.msra.gmra.mxu0 %vm174_vm3, %v1064_v40 }
 0xe59   :  { %3123 = vmatpush3.bf16.msra.mxu0 %v3782_v12  ;;  %3138 = vmatprep.mubr.msk.bf16.mxu0 %vm3644_vm0, %v3643_v2 }
 0xe5a   :  { %3124 = vmatprep.subr.bf16.mxu0 %v3643_v2 }
 0xe5d   :  { %3125 = vmatpush3.bf16.msra.mxu0 %v3788_v13 }
 0xe5e   :  { %3126 = vmatprep.subr.bf16.mxu0 %v3643_v2 }
 0xe61   :  { %3127 = vmatpush3.bf16.msra.mxu0 %v3795_v14  ;;  %v1109_v14 = vsub.f32 1.0, %v4138_v17 }
 0xe62   :  { %3128 = vmatprep.subr.bf16.mxu0 %v3643_v2 }
 0xe65   :  { %3129 = vmatpush3.bf16.msra.mxu0 %v3820_v28 }
 0xe66   :  { %3130 = vmatprep.subr.bf16.mxu0 %v3643_v2 }
 0xe69   :  { %3131 = vmatpush3.bf16.msra.mxu0 %v3827_v29  ;;  %v1130_v29 = vsub.f32 1.0, %v2623_v3 }
 0xe6a   :  { %3132 = vmatprep.subr.bf16.mxu0 %v3643_v2 }
 0xe6b   :  { %v1131_v49 = vmul.f32 %v1130_v29, %v4108_v36  ;;  %v1134_v53 = vmul.f32 %v1130_v29, %v4099_v19 }
 0xe6d   :  { %3133 = vmatpush3.bf16.msra.mxu0 %v3834_v30 }
 0xe6e   :  { %3134 = vmatprep.subr.bf16.mxu0 %v3643_v2 }
 0xe71   :  { %3135 = vmatpush3.bf16.msra.mxu0 %v3840_v31  ;;  %v1111_v31 = vmul.f32 %v4138_v17, %v4108_v36  ;;  %v1118_v36 = vmul.f32 %v4138_v17, %v4099_v19  ;;  %v1185_v17 = vstv %s2624_s26 }
 0xe72   :  { %3136 = vmatprep.subr.bf16.mxu0 %v3643_v2 }
 0xe75   :  { %3137 = vmatpush3.bf16.msra.mxu0 %v3847_v32 }
 0xe76   :  { %3156 = vmatprep.subr.bf16.mxu0 %v3643_v2 }
 0xf18   :  { %v1102_v12 = vpop.f32.mrf.mxu0 }
 0xf19   :  { %v1103_v13 = vadd.f32 %v3976_v23, %v1102_v12 }
 0xf1a   :  { %v3098_v28 = vpop.f32.mrf.mxu0 }
 0xf1b   :  { %v1108_v30 = vand.u32 2147483647, %v1103_v13  ;;  %v1110_v46 = vmul.f32 %v1109_v14, %v1103_v13  ;;  %v4256_v28 = vld [vmem:[#allocation6] sm:$0xff]  }
 0xf1c   :  { %v1105_v47 = vpop.f32.mrf.mxu0 }
 0xf1d   :  { %v1112_v32 = vadd.f32 %v1111_v31, %v1110_v46  ;;  %1114 = vrot.lane.b32.xlu0 %v1108_v30, %s3646_s21 }
 0xf1e   :  { %v3099_v48 = vpop.f32.mrf.mxu0 }
 0xf1f   :  { %v1129_v50 = vmul.f32 %v2623_v3, %v1112_v32 }
 0xf21   :  { %v1132_v51 = vadd.f32 %v1131_v49, %v1129_v50  ;;  %v4265_v49 = vld [vmem:[%s4809_s6 + $0x38] sm:$0xff]   ;;  %v4281_v50 = vld [vmem:[%s4809_s6 + $0x28] sm:$0xff]  }
 0xf23   :  { %v1140_v24 = vpack.c.bf16 %v1132_v51, %v1132_v51 }
 0xf25   :  { %3105 = vmatmul.mubr.msk.bf16.vlgmr.msra.gmra.mxu1 %vm121_vm2, %v1140_v24  ;;  %v4295_v24 = vld [vmem:[%s4809_s6 + $0x18] sm:$0xff]  }
 0xf26   :  { %3109 = vmatpush3.bf16.msra.mxu1 %v3746_v5  ;;  %3118 = vmatprep.mubr.msk.bf16.mxu1 %vm3644_vm0, %v3643_v2 }
 0xf27   :  { %3110 = vmatprep.subr.bf16.mxu1 %v3643_v2 }
 0xf2a   :  { %3111 = vmatpush3.bf16.msra.mxu1 %v3753_v6 }
 0xf2b   :  { %3112 = vmatprep.subr.bf16.mxu1 %v3643_v2 }
 0xf2e   :  { %3113 = vmatpush3.bf16.msra.mxu1 %v3759_v7 }
 0xf2f   :  { %3114 = vmatprep.subr.bf16.mxu1 %v3643_v2 }
 0xf32   :  { %3115 = vmatpush3.bf16.msra.mxu1 %v3766_v8  ;;  %v2625_v8 = vld [vmem:[%s4804_s1 + $0x18] sm:$0xff] }
 0xf33   :  { %3116 = vmatprep.subr.bf16.mxu1 %v3643_v2 }
 0xf36   :  { %3117 = vmatpush3.bf16.msra.mxu1 %v3774_v9 }
 0xf37   :  { %3142 = vmatprep.subr.bf16.mxu1 %v3643_v2 }
 0xf8f   :  { %v1115_v5 = vpop.permute.xlu0 %1114 }
 0xf90   :  { %v1117_v52 = vmul.f32 %v1115_v5, %v1109_v14  ;;  %v4250_v14 = vld [vmem:[#allocation6 + $0x8] sm:$0xff]   ;;  %v4302_v5 = vld [vmem:[%s4809_s6 + $0x10] sm:$0xff]  }
 0xf92   :  { %v1119_v6 = vadd.f32 %v1118_v36, %v1117_v52  ;;  %v4309_v36 = vld [vmem:[%s4809_s6 + $0x8] sm:$0xff]   ;;  %v4316_v52 = vld [vmem:[%s4809_s6] sm:$0xff]  }
 0xf94   :  { %v1133_v56 = vmul.f32 %v2623_v3, %v1119_v6 }
 0xf96   :  { %v1135_v7 = vadd.f32 %v1134_v53, %v1133_v56 }
 0xf98   :  { %v4199_v57 = vand.u32 2147483647, %v1135_v7 }
 0xf9a   :  { %1189 = vrot.lane.b32.xlu0 %v4199_v57, %s3647_s16 }
 0xf9e   :  { %1193 = vrot.lane.b32.xlu0 %v2625_v8, %s3640_s27 }
 0xfe5   :  { %v1178_v9 = vpop.f32.mrf.mxu1 }
 0xfe6   :  { %v1179_v16 = vadd.f32 %v3803_v15, %v1178_v9 }
 0xfe7   :  { %v3106_v22 = vpop.f32.mrf.mxu1 }
 0xfe8   :  { %3505 = vtanh.f32 %v1179_v16  ;;  %v2633_v22 = vld [vmem:[%s4804_s1 + $0x20] sm:$0xff] }
 0xfe9   :  { %v1181_v61 = vpop.f32.mrf.mxu1 }
 0xfeb   :  { %v3107_v11 = vpop.f32.mrf.mxu1 }
 0xff5   :  { %v3506_v19 = vpop.eup %3505 }
 0xff6   :  { %v1186_v58 = vmul.f32 %v3506_v19, %v1185_v17 }
 0xff8   :  { %v4208_v20 = vadd.f32 %v1186_v58, %v1132_v51  ;;  %v4288_v51 = vld [vmem:[%s4809_s6 + $0x20] sm:$0xff]  }
0x100c   :  { %v1190_v18 = vpop.permute.xlu0 %1189 }
0x100d   :  { %v1196_v21 = vsel %vm121_vm2, %v4208_v20, %v1190_v18 }
0x1010   :  { %v1194_v55 = vpop.permute.xlu0 %1193 }
0x1011   :  { %v1197_v25 = vsel %vm174_vm3, %v1196_v21, %v1194_v55 }
0x1012   :  { %v1198_v26 = vpack.c.bf16 %v1197_v25, %v1197_v25 }
0x1014   :  { %3119 = vmatmul.mubr.msk.bf16.vlgmr.msra.gmra.mxu1 %vm217_vm4, %v1198_v26  ;;  %v4335_v26 = vld [vmem:[%s4807_s4 + $0x20] sm:$0xff]  }
0x1015   :  { %3143 = vmatpush3.bf16.msra.mxu1 %v3863_v41  ;;  %3152 = vmatprep.mubr.msk.bf16.mxu1 %vm3644_vm0, %v3643_v2 }
0x1016   :  { %3144 = vmatprep.subr.bf16.mxu1 %v3643_v2 }
0x1019   :  { %3145 = vmatpush3.bf16.msra.mxu1 %v3869_v42 }
0x101a   :  { %3146 = vmatprep.subr.bf16.mxu1 %v3643_v2 }
0x101d   :  { %3147 = vmatpush3.bf16.msra.mxu1 %v3876_v43 }
0x101e   :  { %3148 = vmatprep.subr.bf16.mxu1 %v3643_v2 }
0x1021   :  { %3149 = vmatpush3.bf16.msra.mxu1 %v3883_v44 }
0x1022   :  { %3150 = vmatprep.subr.bf16.mxu1 %v3643_v2 }
0x1025   :  { %3151 = vmatpush3.bf16.msra.mxu1 %v3897_v54 }
0x1026   :  { %3168 = vmatprep.subr.bf16.mxu1 %v3643_v2 }
0x10d4   :  { %v1236_v15 = vpop.f32.mrf.mxu1 }
0x10d5   :  { %v1237_v41 = vadd.f32 %v3855_v33, %v1236_v15  ;;  %v4351_v15 = vld [vmem:[%s4807_s4 + $0x10] sm:$0xff]  }
0x10d6   :  { %v3120_v59 = vpop.f32.mrf.mxu1 }
0x10d7   :  { %3507 = vtanh.f32 %v1237_v41  ;;  %v4358_v41 = vld [vmem:[%s4807_s4 + $0x8] sm:$0xff]   ;;  %v4365_v59 = vld [vmem:[%s4807_s4] sm:$0xff]  }
0x10d8   :  { %v1239_v42 = vpop.f32.mrf.mxu1 }
0x10da   :  { %v3121_v27 = vpop.f32.mrf.mxu1 }
0x10e4   :  { %v3508_v60 = vpop.eup %3507 }
0x10e5   :  { %v1243_v34 = vpack.c.bf16 %v3508_v60, %v3508_v60 }
0x10e7   :  { %3139 = vmatmul.mubr.bf16.vlgmr.msra.gmra.mxu0 %v1243_v34 }
0x10e8   :  { %3157 = vmatpush3.bf16.msra.mxu0 %v3923_v62  ;;  %3164 = vmatprep.mubr.msk.bf16.mxu0 %vm3644_vm0, %v3643_v2 }
0x10e9   :  { %3158 = vmatprep.subr.bf16.mxu0 %v3643_v2 }
0x10ec   :  { %3159 = vmatpush3.bf16.msra.mxu0 %v3930_v63 }
0x10ed   :  { %3160 = vmatprep.subr.bf16.mxu0 %v3643_v2 }
0x10f0   :  { %3161 = vmatpush3.bf16.msra.mxu0 %v3937_v0 }
0x10f1   :  { %3162 = vmatprep.subr.bf16.mxu0 %v3643_v2 }
0x10f4   :  { %3163 = vmatpush3.bf16.msra.mxu0 %v3944_v4 }
0x10f5   :  { %3190 = vmatprep.subr.bf16.mxu0 %v3643_v2 }
0x11a7   :  { %v1278_v33 = vpop.f32.mrf.mxu0 }
0x11a8   :  { %v1279_v43 = vadd.f32 %v3891_v45, %v1278_v33 }
0x11a9   :  { %v3140_v44 = vpop.f32.mrf.mxu0 }
0x11aa   :  { %v2628_v54 = vmul.f32 -1.442695, %v1279_v43 }
0x11ab   :  { %v1281_v62 = vpop.f32.mrf.mxu0 }
0x11ac   :  { %3509 = vpow2.f32 %v2628_v54 }
0x11ad   :  { %v3141_v35 = vpop.f32.mrf.mxu0 }
0x11b9   :  { %v3510_v37 = vpop.eup %3509 }
0x11ba   :  { %v1287_v63 = vadd.f32 1.0, %v3510_v37 }
0x11bc   :  { %3511 = vrcp.f32 %v1287_v63 }
0x11c9   :  { %v4238_v38 = vpop.eup %3511 }
0x11ca   :  { %1291 = vrot.lane.b32.xlu0 %v4238_v38, %s3646_s21  ;;  %v1394_v19 = vmul.f32 %v4238_v38, %v4208_v20  ;;  %v1401_v27 = vmul.f32 %v4238_v38, %v4199_v57 }
0x123c   :  { %v1292_v0 = vpop.permute.xlu0 %1291 }
0x123d   :  { %v1295_v4 = vmul.f32 %v1292_v0, %v4199_v57  ;;  %v1294_v45 = vmul.f32 %v1292_v0, %v4208_v20 }
0x123f   :  { %1297 = vrot.lane.b32.xlu0 %v1295_v4, %s3647_s16  ;;  %v1468_v4 = vstv %s2632_s23 }
0x1243   :  { %1403 = vrot.lane.b32.xlu0 %v2625_v8, %s3642_s14  ;;  %v1392_v8 = vsub.f32 1.0, %v4238_v38  ;;  %v4380_v38 = vld [vmem:[%s4806_s3] ss:$0 sm:$0xff] }
0x12b1   :  { %v1298_v39 = vpop.permute.xlu0 %1297 }
0x12b2   :  { %v1300_v40 = vsel %vm121_vm2, %v1294_v45, %v1298_v39 }
0x12b3   :  { %v1301_v1 = vsel %vm174_vm3, %v1300_v40, %v1194_v55 }
0x12b4   :  { %v1302_v3 = vpack.c.bf16 %v1301_v1, %v1301_v1 }
0x12b5   :  { %v1404_v12 = vpop.permute.xlu0 %1403 }
0x12b6   :  { %3153 = vmatmul.mubr.msk.bf16.vlgmr.msra.gmra.mxu1 %vm217_vm4, %v1302_v3  ;;  %v1406_v13 = vsel %vm556_vm1, %v1404_v12, 0.0 }
0x12b7   :  { %1407 = vadd.xlane.f32.xlu0 %v1406_v13  ;;  %3169 = vmatpush3.bf16.msra.mxu1 %v4250_v14 }
0x12b8   :  { %3170 = vmatprep.subr.bf16.mxu1 %v3643_v2  ;;  %3172 = vmatprep.mubr.msk.bf16.mxu1 %vm3644_vm0, %v3643_v2 }
0x12bb   :  { %3171 = vmatpush3.bf16.msra.mxu1 %v4256_v28 }
0x12bc   :  { %3176 = vmatprep.subr.bf16.mxu1 %v3643_v2 }
0x12cd   :  { %1686 = vrot.lane.b32.xlu0 %v2633_v22, %s3642_s14 }
0x1340   :  { %v1408_v6 = vpop.xlane.xlu0 %1407 }
0x1341   :  { %vm1409_vm8 = vcmp.gt.f32.partialorder %v1408_v6, 0.0 }
0x1342   :  { %v2631_v53 = vsel %vm1409_vm8, 1.0, %v3643_v2 }
0x1343   :  { %v1413_v61 = vsub.f32 1.0, %v2631_v53 }
0x1345   :  { %v1414_v18 = vmul.f32 %v1413_v61, %v4208_v20  ;;  %v4344_v20 = vld [vmem:[%s4807_s4 + $0x18] sm:$0xff]   ;;  %v1417_v33 = vmul.f32 %v1413_v61, %v4199_v57  ;;  %v4447_v61 = vld [vmem:[%s4813_s10 + $0x10] sm:$0xff]  }
0x1376   :  { %v1340_v29 = vpop.f32.mrf.mxu1 }
0x1377   :  { %v1341_v30 = vadd.f32 %v3951_v10, %v1340_v29  ;;  %v4274_v10 = vld [vmem:[%s4809_s6 + $0x30] sm:$0xff]   ;;  %v4395_v29 = vld [vmem:[%s4811_s8 + $0x20] sm:$0xff]   ;;  %s2648_s6 = sld [smem:[#allocation2 + $0x6]] }
0x1378   :  { %v3154_v46 = vpop.f32.mrf.mxu1 }
0x1379   :  { %3513 = vtanh.f32 %v1341_v30  ;;  %v4404_v30 = vld [vmem:[%s4811_s8 + $0x18] sm:$0xff]   ;;  %v4411_v46 = vld [vmem:[%s4811_s8 + $0x10] sm:$0xff]  }
0x137a   :  { %v1343_v31 = vpop.f32.mrf.mxu1 }
0x137b   :  { %v4418_v31 = vld [vmem:[%s4811_s8 + $0x8] sm:$0xff]  }
0x137c   :  { %v3155_v47 = vpop.f32.mrf.mxu1 }
0x137d   :  { %v4425_v47 = vld [vmem:[%s4811_s8] sm:$0xff]  }
0x1386   :  { %v3514_v32 = vpop.eup %3513 }
0x1387   :  { %v1347_v48 = vpack.c.bf16 %v3514_v32, %v3514_v32 }
0x1389   :  { %3165 = vmatmul.mubr.msk.bf16.vlgmr.msra.gmra.mxu0 %vm174_vm3, %v1347_v48  ;;  %v4432_v48 = vld [vmem:[%s4808_s5] ss:$0 sm:$0xff] }
0x138a   :  { %3191 = vmatpush3.bf16.msra.mxu0 %v4265_v49  ;;  %3206 = vmatprep.mubr.msk.bf16.mxu0 %vm3644_vm0, %v3643_v2 }
0x138b   :  { %3192 = vmatprep.subr.bf16.mxu0 %v3643_v2 }
0x138e   :  { %3193 = vmatpush3.bf16.msra.mxu0 %v4274_v10 }
0x138f   :  { %3194 = vmatprep.subr.bf16.mxu0 %v3643_v2 }
0x1392   :  { %3195 = vmatpush3.bf16.msra.mxu0 %v4281_v50 }
0x1393   :  { %3196 = vmatprep.subr.bf16.mxu0 %v3643_v2 }
0x1396   :  { %3197 = vmatpush3.bf16.msra.mxu0 %v4288_v51 }
0x1397   :  { %3198 = vmatprep.subr.bf16.mxu0 %v3643_v2 }
0x139a   :  { %3199 = vmatpush3.bf16.msra.mxu0 %v4295_v24 }
0x139b   :  { %3200 = vmatprep.subr.bf16.mxu0 %v3643_v2 }
0x139e   :  { %3201 = vmatpush3.bf16.msra.mxu0 %v4302_v5 }
0x139f   :  { %3202 = vmatprep.subr.bf16.mxu0 %v3643_v2 }
0x13a2   :  { %3203 = vmatpush3.bf16.msra.mxu0 %v4309_v36 }
0x13a3   :  { %3204 = vmatprep.subr.bf16.mxu0 %v3643_v2 }
0x13a6   :  { %3205 = vmatpush3.bf16.msra.mxu0 %v4316_v52 }
0x13a7   :  { %3224 = vmatprep.subr.bf16.mxu0 %v3643_v2 }
0x1449   :  { %v1385_v56 = vpop.f32.mrf.mxu0 }
0x144a   :  { %v1386_v7 = vadd.f32 %v3976_v23, %v1385_v56 }
0x144b   :  { %v3166_v9 = vpop.f32.mrf.mxu0 }
0x144c   :  { %v1391_v11 = vand.u32 2147483647, %v1386_v7  ;;  %v1393_v16 = vmul.f32 %v1392_v8, %v1386_v7 }
0x144d   :  { %v1388_v17 = vpop.f32.mrf.mxu0 }
0x144e   :  { %v1395_v58 = vadd.f32 %v1394_v19, %v1393_v16  ;;  %1397 = vrot.lane.b32.xlu1 %v1391_v11, %s3646_s21  ;;  %v4454_v11 = vld [vmem:[%s4813_s10 + $0x8] sm:$0xff]   ;;  %v4461_v16 = vld [vmem:[%s4813_s10] sm:$0xff]  }
0x144f   :  { %v3167_v23 = vpop.f32.mrf.mxu0  ;;  %v4468_v17 = vld [vmem:[%s4810_s7] ss:$0 sm:$0xff] }
0x1450   :  { %v1412_v21 = vmul.f32 %v2631_v53, %v1395_v58 }
0x1452   :  { %v1415_v55 = vadd.f32 %v1414_v18, %v1412_v21 }
0x1454   :  { %v1423_v25 = vpack.c.bf16 %v1415_v55, %v1415_v55 }
0x1456   :  { %3173 = vmatmul.mubr.msk.bf16.vlgmr.msra.gmra.mxu1 %vm121_vm2, %v1423_v25 }
0x1457   :  { %3177 = vmatpush3.bf16.msra.mxu1 %v4335_v26  ;;  %3186 = vmatprep.mubr.msk.bf16.mxu1 %vm3644_vm0, %v3643_v2 }
0x1458   :  { %3178 = vmatprep.subr.bf16.mxu1 %v3643_v2 }
0x145b   :  { %3179 = vmatpush3.bf16.msra.mxu1 %v4344_v20 }
0x145c   :  { %3180 = vmatprep.subr.bf16.mxu1 %v3643_v2 }
0x145f   :  { %3181 = vmatpush3.bf16.msra.mxu1 %v4351_v15 }
0x1460   :  { %3182 = vmatprep.subr.bf16.mxu1 %v3643_v2 }
0x1463   :  { %3183 = vmatpush3.bf16.msra.mxu1 %v4358_v41 }
0x1464   :  { %3184 = vmatprep.subr.bf16.mxu1 %v3643_v2 }
0x1467   :  { %3185 = vmatpush3.bf16.msra.mxu1 %v4365_v59 }
0x1468   :  { %3210 = vmatprep.subr.bf16.mxu1 %v3643_v2 }
0x14c0   :  { %v1398_v42 = vpop.permute.xlu1 %1397 }
0x14c1   :  { %v1400_v60 = vmul.f32 %v1398_v42, %v1392_v8 }
0x14c3   :  { %v1402_v34 = vadd.f32 %v1401_v27, %v1400_v60 }
0x14c5   :  { %v1416_v43 = vmul.f32 %v2631_v53, %v1402_v34 }
0x14c7   :  { %v1418_v44 = vadd.f32 %v1417_v33, %v1416_v43  ;;  %v1687_v33 = vpop.permute.xlu0 %1686 }
0x14c8   :  { %v1689_v43 = vsel %vm556_vm1, %v1687_v33, 0.0 }
0x14c9   :  { %v4372_v54 = vand.u32 2147483647, %v1418_v44 }
0x14cb   :  { %1472 = vrot.lane.b32.xlu1 %v4372_v54, %s3647_s16 }
0x14cf   :  { %1476 = vrot.lane.b32.xlu1 %v2633_v22, %s3640_s27  ;;  %v4438_v22 = vld [vmem:[%s4813_s10 + $0x18] sm:$0xff]  }
0x1516   :  { %v1461_v62 = vpop.f32.mrf.mxu1 }
0x1517   :  { %v1462_v57 = vadd.f32 %v4380_v38, %v1461_v62 }
0x1518   :  { %v3174_v35 = vpop.f32.mrf.mxu1 }
0x1519   :  { %3515 = vtanh.f32 %v1462_v57 }
0x151a   :  { %v1464_v37 = vpop.f32.mrf.mxu1 }
0x151c   :  { %v3175_v63 = vpop.f32.mrf.mxu1 }
0x1526   :  { %v3516_v0 = vpop.eup %3515 }
0x1527   :  { %v1469_v45 = vmul.f32 %v3516_v0, %v1468_v4  ;;  %v4492_v0 = vld [vmem:[%s4812_s9] ss:$0 sm:$0xff] }
0x1529   :  { %v4383_v40 = vadd.f32 %v1469_v45, %v1415_v55 }
0x153d   :  { %v1473_v39 = vpop.permute.xlu1 %1472 }
0x153e   :  { %v1479_v1 = vsel %vm121_vm2, %v4383_v40, %v1473_v39 }
0x1541   :  { %v4387_v3 = vpop.permute.xlu1 %1476 }
0x1542   :  { %v1480_v12 = vsel %vm174_vm3, %v1479_v1, %v4387_v3 }
0x1543   :  { %v1481_v13 = vpack.c.bf16 %v1480_v12, %v1480_v12 }
0x1545   :  { %3187 = vmatmul.mubr.msk.bf16.vlgmr.msra.gmra.mxu1 %vm217_vm4, %v1481_v13 }
0x1546   :  { %3211 = vmatpush3.bf16.msra.mxu1 %v4395_v29  ;;  %3220 = vmatprep.mubr.msk.bf16.mxu1 %vm3644_vm0, %v3643_v2 }
0x1547   :  { %3212 = vmatprep.subr.bf16.mxu1 %v3643_v2 }
0x154a   :  { %3213 = vmatpush3.bf16.msra.mxu1 %v4404_v30 }
0x154b   :  { %3214 = vmatprep.subr.bf16.mxu1 %v3643_v2 }
0x154e   :  { %3215 = vmatpush3.bf16.msra.mxu1 %v4411_v46 }
0x154f   :  { %3216 = vmatprep.subr.bf16.mxu1 %v3643_v2 }
0x1552   :  { %3217 = vmatpush3.bf16.msra.mxu1 %v4418_v31 }
0x1553   :  { %3218 = vmatprep.subr.bf16.mxu1 %v3643_v2 }
0x1556   :  { %3219 = vmatpush3.bf16.msra.mxu1 %v4425_v47 }
0x1557   :  { %3236 = vmatprep.subr.bf16.mxu1 %v3643_v2 }
0x1605   :  { %v1519_v32 = vpop.f32.mrf.mxu1 }
0x1606   :  { %v1520_v6 = vadd.f32 %v4432_v48, %v1519_v32 }
0x1607   :  { %v3188_v53 = vpop.f32.mrf.mxu1 }
0x1608   :  { %3517 = vtanh.f32 %v1520_v6  ;;  %v4518_v53 = vld [vmem:[%s4814_s11] ss:$0 sm:$0xff]  ;;  %s2640_s11 = sld [smem:[#allocation2 + $0x5]] }
0x1609   :  { %v1522_v56 = vpop.f32.mrf.mxu1 }
0x160b   :  { %v3189_v7 = vpop.f32.mrf.mxu1 }
0x1615   :  { %v3518_v8 = vpop.eup %3517 }
0x1616   :  { %v1526_v9 = vpack.c.bf16 %v3518_v8, %v3518_v8 }
0x1618   :  { %3207 = vmatmul.mubr.bf16.vlgmr.msra.gmra.mxu0 %v1526_v9  ;;  %v2641_v9 = vld [vmem:[%s4804_s1 + $0x28] sm:$0xff] }
0x1619   :  { %3225 = vmatpush3.bf16.msra.mxu0 %v4438_v22  ;;  %3232 = vmatprep.mubr.msk.bf16.mxu0 %vm3644_vm0, %v3643_v2 }
0x161a   :  { %3226 = vmatprep.subr.bf16.mxu0 %v3643_v2 }
0x161d   :  { %3227 = vmatpush3.bf16.msra.mxu0 %v4447_v61 }
0x161e   :  { %3228 = vmatprep.subr.bf16.mxu0 %v3643_v2 }
0x1621   :  { %3229 = vmatpush3.bf16.msra.mxu0 %v4454_v11 }
0x1622   :  { %3230 = vmatprep.subr.bf16.mxu0 %v3643_v2 }
0x1625   :  { %3231 = vmatpush3.bf16.msra.mxu0 %v4461_v16 }
0x1626   :  { %3258 = vmatprep.subr.bf16.mxu0 %v3643_v2 }
0x16d8   :  { %v1561_v19 = vpop.f32.mrf.mxu0 }
0x16d9   :  { %v1562_v58 = vadd.f32 %v4468_v17, %v1561_v19 }
0x16da   :  { %v3208_v23 = vpop.f32.mrf.mxu0 }
0x16db   :  { %v2636_v18 = vmul.f32 -1.442695, %v1562_v58 }
0x16dc   :  { %v1564_v21 = vpop.f32.mrf.mxu0 }
0x16dd   :  { %3519 = vpow2.f32 %v2636_v18 }
0x16de   :  { %v3209_v55 = vpop.f32.mrf.mxu0 }
0x16ea   :  { %v3520_v25 = vpop.eup %3519 }
0x16eb   :  { %v1570_v42 = vadd.f32 1.0, %v3520_v25 }
0x16ed   :  { %3521 = vrcp.f32 %v1570_v42 }
0x16fa   :  { %v4471_v27 = vpop.eup %3521 }
0x16fb   :  { %1574 = vrot.lane.b32.xlu1 %v4471_v27, %s3646_s21  ;;  %v1675_v7 = vsub.f32 1.0, %v4471_v27  ;;  %v1677_v18 = vmul.f32 %v4471_v27, %v4383_v40 }
0x176d   :  { %v1575_v60 = vpop.permute.xlu1 %1574 }
0x176e   :  { %v1578_v34 = vmul.f32 %v1575_v60, %v4372_v54  ;;  %v1577_v44 = vmul.f32 %v1575_v60, %v4383_v40 }
0x1770   :  { %1580 = vrot.lane.b32.xlu1 %v1578_v34, %s3647_s16 }
0x1794   :  { %1690 = vadd.xlane.f32.xlu1 %v1689_v43  ;;  %v1684_v43 = vmul.f32 %v4471_v27, %v4372_v54 }
0x17a5   :  { %1969 = vrot.lane.b32.xlu1 %v2641_v9, %s3642_s14 }
0x17e2   :  { %v1581_v62 = vpop.permute.xlu1 %1580 }
0x17e3   :  { %v1583_v35 = vsel %vm121_vm2, %v1577_v44, %v1581_v62 }
0x17e4   :  { %v1584_v37 = vsel %vm174_vm3, %v1583_v35, %v4387_v3 }
0x17e5   :  { %v1585_v63 = vpack.c.bf16 %v1584_v37, %v1584_v37 }
0x17e7   :  { %3221 = vmatmul.mubr.msk.bf16.vlgmr.msra.gmra.mxu1 %vm217_vm4, %v1585_v63 }
0x17e8   :  { %3237 = vmatpush3.bf16.msra.mxu1 %v4250_v14  ;;  %3240 = vmatprep.mubr.msk.bf16.mxu1 %vm3644_vm0, %v3643_v2 }
0x17e9   :  { %3238 = vmatprep.subr.bf16.mxu1 %v3643_v2 }
0x17ec   :  { %3239 = vmatpush3.bf16.msra.mxu1 %v4256_v28 }
0x17ed   :  { %3244 = vmatprep.subr.bf16.mxu1 %v3643_v2 }
0x181d   :  { %v1691_v13 = vpop.xlane.xlu1 %1690 }
0x181e   :  { %vm1692_vm9 = vcmp.gt.f32.partialorder %v1691_v13, 0.0 }
0x181f   :  { %v2639_v32 = vsel %vm1692_vm9, 1.0, %v3643_v2 }
0x1820   :  { %v1696_v19 = vsub.f32 1.0, %v2639_v32 }
0x1822   :  { %v1697_v42 = vmul.f32 %v1696_v19, %v4383_v40  ;;  %v1700_v35 = vmul.f32 %v1696_v19, %v4372_v54 }
0x18a7   :  { %v1623_v57 = vpop.f32.mrf.mxu1 }
0x18a8   :  { %v1624_v4 = vadd.f32 %v4492_v0, %v1623_v57 }
0x18a9   :  { %v3222_v45 = vpop.f32.mrf.mxu1 }
0x18aa   :  { %3523 = vtanh.f32 %v1624_v4 }
0x18ab   :  { %v1626_v39 = vpop.f32.mrf.mxu1 }
0x18ad   :  { %v3223_v1 = vpop.f32.mrf.mxu1 }
0x18b7   :  { %v3524_v3 = vpop.eup %3523 }
0x18b8   :  { %v1630_v12 = vpack.c.bf16 %v3524_v3, %v3524_v3 }
0x18ba   :  { %3233 = vmatmul.mubr.msk.bf16.vlgmr.msra.gmra.mxu0 %vm174_vm3, %v1630_v12  ;;  %v1751_v12 = vstv %s2640_s11 }
0x18bb   :  { %3259 = vmatpush3.bf16.msra.mxu0 %v4265_v49  ;;  %3274 = vmatprep.mubr.msk.bf16.mxu0 %vm3644_vm0, %v3643_v2 }
0x18bc   :  { %3260 = vmatprep.subr.bf16.mxu0 %v3643_v2 }
0x18bf   :  { %3261 = vmatpush3.bf16.msra.mxu0 %v4274_v10 }
0x18c0   :  { %3262 = vmatprep.subr.bf16.mxu0 %v3643_v2 }
0x18c3   :  { %3263 = vmatpush3.bf16.msra.mxu0 %v4281_v50 }
0x18c4   :  { %3264 = vmatprep.subr.bf16.mxu0 %v3643_v2 }
0x18c7   :  { %3265 = vmatpush3.bf16.msra.mxu0 %v4288_v51 }
0x18c8   :  { %3266 = vmatprep.subr.bf16.mxu0 %v3643_v2 }
0x18cb   :  { %3267 = vmatpush3.bf16.msra.mxu0 %v4295_v24 }
0x18cc   :  { %3268 = vmatprep.subr.bf16.mxu0 %v3643_v2 }
0x18cf   :  { %3269 = vmatpush3.bf16.msra.mxu0 %v4302_v5 }
0x18d0   :  { %3270 = vmatprep.subr.bf16.mxu0 %v3643_v2 }
0x18d3   :  { %3271 = vmatpush3.bf16.msra.mxu0 %v4309_v36 }
0x18d4   :  { %3272 = vmatprep.subr.bf16.mxu0 %v3643_v2 }
0x18d7   :  { %3273 = vmatpush3.bf16.msra.mxu0 %v4316_v52 }
0x18d8   :  { %3292 = vmatprep.subr.bf16.mxu0 %v3643_v2 }
0x197a   :  { %v1668_v6 = vpop.f32.mrf.mxu0 }
0x197b   :  { %v1669_v56 = vadd.f32 %v4518_v53, %v1668_v6 }
0x197c   :  { %v3234_v8 = vpop.f32.mrf.mxu0 }
0x197d   :  { %v1674_v58 = vand.u32 2147483647, %v1669_v56  ;;  %v1676_v23 = vmul.f32 %v1675_v7, %v1669_v56 }
0x197e   :  { %v1671_v21 = vpop.f32.mrf.mxu0 }
0x197f   :  { %v1678_v55 = vadd.f32 %v1677_v18, %v1676_v23  ;;  %1680 = vrot.lane.b32.xlu0 %v1674_v58, %s3646_s21 }
0x1980   :  { %v3235_v25 = vpop.f32.mrf.mxu0 }
0x1981   :  { %v1695_v60 = vmul.f32 %v2639_v32, %v1678_v55 }
0x1983   :  { %v1698_v34 = vadd.f32 %v1697_v42, %v1695_v60 }
0x1985   :  { %v1706_v33 = vpack.c.bf16 %v1698_v34, %v1698_v34 }
0x1987   :  { %3241 = vmatmul.mubr.msk.bf16.vlgmr.msra.gmra.mxu1 %vm121_vm2, %v1706_v33 }
0x1988   :  { %3245 = vmatpush3.bf16.msra.mxu1 %v4335_v26  ;;  %3254 = vmatprep.mubr.msk.bf16.mxu1 %vm3644_vm0, %v3643_v2 }
0x1989   :  { %3246 = vmatprep.subr.bf16.mxu1 %v3643_v2 }
0x198c   :  { %3247 = vmatpush3.bf16.msra.mxu1 %v4344_v20 }
0x198d   :  { %3248 = vmatprep.subr.bf16.mxu1 %v3643_v2 }
0x1990   :  { %3249 = vmatpush3.bf16.msra.mxu1 %v4351_v15 }
0x1991   :  { %3250 = vmatprep.subr.bf16.mxu1 %v3643_v2 }
0x1994   :  { %3251 = vmatpush3.bf16.msra.mxu1 %v4358_v41 }
0x1995   :  { %3252 = vmatprep.subr.bf16.mxu1 %v3643_v2 }
0x1998   :  { %3253 = vmatpush3.bf16.msra.mxu1 %v4365_v59 }
0x1999   :  { %3278 = vmatprep.subr.bf16.mxu1 %v3643_v2 }
0x19f1   :  { %v1681_v40 = vpop.permute.xlu0 %1680 }
0x19f2   :  { %v1683_v44 = vmul.f32 %v1681_v40, %v1675_v7 }
0x19f4   :  { %v1685_v62 = vadd.f32 %v1684_v43, %v1683_v44 }
0x19f6   :  { %v1699_v37 = vmul.f32 %v2639_v32, %v1685_v62 }
0x19f8   :  { %v1701_v63 = vadd.f32 %v1700_v35, %v1699_v37 }
0x19fa   :  { %v4546_v57 = vand.u32 2147483647, %v1701_v63  ;;  %v1970_v63 = vpop.permute.xlu1 %1969 }
0x19fc   :  { %1755 = vrot.lane.b32.xlu0 %v4546_v57, %s3647_s16 }
0x1a00   :  { %1759 = vrot.lane.b32.xlu0 %v2641_v9, %s3640_s27 }
0x1a47   :  { %v1744_v4 = vpop.f32.mrf.mxu1 }
0x1a48   :  { %v1745_v3 = vadd.f32 %v4380_v38, %v1744_v4  ;;  %v1972_v4 = vsel %vm556_vm1, %v1970_v63, 0.0 }
0x1a49   :  { %v3242_v45 = vpop.f32.mrf.mxu1 }
0x1a4a   :  { %3525 = vtanh.f32 %v1745_v3 }
0x1a4b   :  { %v1747_v39 = vpop.f32.mrf.mxu1 }
0x1a4d   :  { %v3243_v1 = vpop.f32.mrf.mxu1 }
0x1a57   :  { %v3526_v27 = vpop.eup %3525 }
0x1a58   :  { %v1752_v54 = vmul.f32 %v3526_v27, %v1751_v12 }
0x1a5a   :  { %v4552_v32 = vadd.f32 %v1752_v54, %v1698_v34 }
0x1a6e   :  { %v1756_v13 = vpop.permute.xlu0 %1755 }
0x1a6f   :  { %v1762_v6 = vsel %vm121_vm2, %v4552_v32, %v1756_v13 }
0x1a72   :  { %v1760_v56 = vpop.permute.xlu0 %1759 }
0x1a73   :  { %v1763_v7 = vsel %vm174_vm3, %v1762_v6, %v1760_v56 }
0x1a74   :  { %v1764_v8 = vpack.c.bf16 %v1763_v7, %v1763_v7 }
0x1a76   :  { %3255 = vmatmul.mubr.msk.bf16.vlgmr.msra.gmra.mxu1 %vm217_vm4, %v1764_v8 }
0x1a77   :  { %3279 = vmatpush3.bf16.msra.mxu1 %v4395_v29  ;;  %3288 = vmatprep.mubr.msk.bf16.mxu1 %vm3644_vm0, %v3643_v2 }
0x1a78   :  { %3280 = vmatprep.subr.bf16.mxu1 %v3643_v2 }
0x1a7b   :  { %3281 = vmatpush3.bf16.msra.mxu1 %v4404_v30 }
0x1a7c   :  { %3282 = vmatprep.subr.bf16.mxu1 %v3643_v2 }
0x1a7f   :  { %3283 = vmatpush3.bf16.msra.mxu1 %v4411_v46 }
0x1a80   :  { %3284 = vmatprep.subr.bf16.mxu1 %v3643_v2 }
0x1a83   :  { %3285 = vmatpush3.bf16.msra.mxu1 %v4418_v31 }
0x1a84   :  { %3286 = vmatprep.subr.bf16.mxu1 %v3643_v2 }
0x1a87   :  { %3287 = vmatpush3.bf16.msra.mxu1 %v4425_v47 }
0x1a88   :  { %3304 = vmatprep.subr.bf16.mxu1 %v3643_v2 }
0x1b36   :  { %v1802_v9 = vpop.f32.mrf.mxu1 }
0x1b37   :  { %v1803_v19 = vadd.f32 %v4432_v48, %v1802_v9 }
0x1b38   :  { %v3256_v58 = vpop.f32.mrf.mxu1 }
0x1b39   :  { %3527 = vtanh.f32 %v1803_v19 }
0x1b3a   :  { %v1805_v23 = vpop.f32.mrf.mxu1 }
0x1b3c   :  { %v3257_v18 = vpop.f32.mrf.mxu1 }
0x1b46   :  { %v3528_v21 = vpop.eup %3527 }
0x1b47   :  { %v1809_v55 = vpack.c.bf16 %v3528_v21, %v3528_v21 }
0x1b49   :  { %3275 = vmatmul.mubr.bf16.vlgmr.msra.gmra.mxu0 %v1809_v55  ;;  %v2649_v55 = vld [vmem:[%s4804_s1 + $0x30] sm:$0xff] }
0x1b4a   :  { %3293 = vmatpush3.bf16.msra.mxu0 %v4438_v22  ;;  %3300 = vmatprep.mubr.msk.bf16.mxu0 %vm3644_vm0, %v3643_v2 }
0x1b4b   :  { %3294 = vmatprep.subr.bf16.mxu0 %v3643_v2 }
0x1b4e   :  { %3295 = vmatpush3.bf16.msra.mxu0 %v4447_v61 }
0x1b4f   :  { %3296 = vmatprep.subr.bf16.mxu0 %v3643_v2 }
0x1b52   :  { %3297 = vmatpush3.bf16.msra.mxu0 %v4454_v11 }
0x1b53   :  { %3298 = vmatprep.subr.bf16.mxu0 %v3643_v2 }
0x1b56   :  { %3299 = vmatpush3.bf16.msra.mxu0 %v4461_v16 }
0x1b57   :  { %3326 = vmatprep.subr.bf16.mxu0 %v3643_v2 }
0x1c09   :  { %v1844_v25 = vpop.f32.mrf.mxu0 }
0x1c0a   :  { %v1845_v42 = vadd.f32 %v4468_v17, %v1844_v25 }
0x1c0b   :  { %v3276_v60 = vpop.f32.mrf.mxu0 }
0x1c0c   :  { %v2644_v34 = vmul.f32 -1.442695, %v1845_v42 }
0x1c0d   :  { %v1847_v33 = vpop.f32.mrf.mxu0 }
0x1c0e   :  { %3529 = vpow2.f32 %v2644_v34 }
0x1c0f   :  { %v3277_v40 = vpop.f32.mrf.mxu0 }
0x1c1b   :  { %v3530_v43 = vpop.eup %3529 }
0x1c1c   :  { %v1853_v44 = vadd.f32 1.0, %v3530_v43 }
0x1c1e   :  { %3531 = vrcp.f32 %v1853_v44 }
0x1c2b   :  { %v4582_v62 = vpop.eup %3531 }
0x1c2c   :  { %1857 = vrot.lane.b32.xlu0 %v4582_v62, %s3646_s21  ;;  %v1958_v18 = vsub.f32 1.0, %v4582_v62  ;;  %v1960_v34 = vmul.f32 %v4582_v62, %v4552_v32 }
0x1c9e   :  { %v1858_v35 = vpop.permute.xlu0 %1857 }
0x1c9f   :  { %v1861_v37 = vmul.f32 %v1858_v35, %v4546_v57  ;;  %v1860_v45 = vmul.f32 %v1858_v35, %v4552_v32 }
0x1ca1   :  { %1863 = vrot.lane.b32.xlu0 %v1861_v37, %s3647_s16 }
0x1cc0   :  { %1973 = vadd.xlane.f32.xlu0 %v1972_v4  ;;  %v1967_v4 = vmul.f32 %v4582_v62, %v4546_v57 }
0x1cd6   :  { %2252 = vrot.lane.b32.xlu0 %v2649_v55, %s3642_s14 }
0x1d13   :  { %v1864_v39 = vpop.permute.xlu0 %1863 }
0x1d14   :  { %v1866_v1 = vsel %vm121_vm2, %v1860_v45, %v1864_v39 }
0x1d15   :  { %v1867_v3 = vsel %vm174_vm3, %v1866_v1, %v1760_v56 }
0x1d16   :  { %v1868_v27 = vpack.c.bf16 %v1867_v3, %v1867_v3 }
0x1d18   :  { %3289 = vmatmul.mubr.msk.bf16.vlgmr.msra.gmra.mxu1 %vm217_vm4, %v1868_v27 }
0x1d19   :  { %3305 = vmatpush3.bf16.msra.mxu1 %v4250_v14  ;;  %3308 = vmatprep.mubr.msk.bf16.mxu1 %vm3644_vm0, %v3643_v2 }
0x1d1a   :  { %3306 = vmatprep.subr.bf16.mxu1 %v3643_v2 }
0x1d1d   :  { %3307 = vmatpush3.bf16.msra.mxu1 %v4256_v28 }
0x1d1e   :  { %3312 = vmatprep.subr.bf16.mxu1 %v3643_v2 }
0x1d49   :  { %v1974_v9 = vpop.xlane.xlu0 %1973 }
0x1d4a   :  { %vm1975_vm10 = vcmp.gt.f32.partialorder %v1974_v9, 0.0 }
0x1d4b   :  { %v2647_v19 = vsel %vm1975_vm10, 1.0, %v3643_v2 }
0x1d4c   :  { %v1979_v25 = vsub.f32 1.0, %v2647_v19 }
0x1d4e   :  { %v1980_v44 = vmul.f32 %v1979_v25, %v4552_v32  ;;  %v1983_v1 = vmul.f32 %v1979_v25, %v4546_v57 }
0x1dd8   :  { %v1906_v12 = vpop.f32.mrf.mxu1 }
0x1dd9   :  { %v1907_v54 = vadd.f32 %v4492_v0, %v1906_v12 }
0x1dda   :  { %v3290_v13 = vpop.f32.mrf.mxu1 }
0x1ddb   :  { %3533 = vtanh.f32 %v1907_v54 }
0x1ddc   :  { %v1909_v6 = vpop.f32.mrf.mxu1 }
0x1dde   :  { %v3291_v56 = vpop.f32.mrf.mxu1 }
0x1de8   :  { %v3534_v7 = vpop.eup %3533 }
0x1de9   :  { %v1913_v8 = vpack.c.bf16 %v3534_v7, %v3534_v7 }
0x1deb   :  { %3301 = vmatmul.mubr.msk.bf16.vlgmr.msra.gmra.mxu0 %vm174_vm3, %v1913_v8  ;;  %v2034_v8 = vstv %s2648_s6 }
0x1dec   :  { %3327 = vmatpush3.bf16.msra.mxu0 %v4265_v49  ;;  %3342 = vmatprep.mubr.msk.bf16.mxu0 %vm3644_vm0, %v3643_v2 }
0x1ded   :  { %3328 = vmatprep.subr.bf16.mxu0 %v3643_v2 }
0x1df0   :  { %3329 = vmatpush3.bf16.msra.mxu0 %v4274_v10 }
0x1df1   :  { %3330 = vmatprep.subr.bf16.mxu0 %v3643_v2 }
0x1df4   :  { %3331 = vmatpush3.bf16.msra.mxu0 %v4281_v50 }
0x1df5   :  { %3332 = vmatprep.subr.bf16.mxu0 %v3643_v2 }
0x1df8   :  { %3333 = vmatpush3.bf16.msra.mxu0 %v4288_v51 }
0x1df9   :  { %3334 = vmatprep.subr.bf16.mxu0 %v3643_v2 }
0x1dfc   :  { %3335 = vmatpush3.bf16.msra.mxu0 %v4295_v24 }
0x1dfd   :  { %3336 = vmatprep.subr.bf16.mxu0 %v3643_v2 }
0x1e00   :  { %3337 = vmatpush3.bf16.msra.mxu0 %v4302_v5 }
0x1e01   :  { %3338 = vmatprep.subr.bf16.mxu0 %v3643_v2 }
0x1e04   :  { %3339 = vmatpush3.bf16.msra.mxu0 %v4309_v36 }
0x1e05   :  { %3340 = vmatprep.subr.bf16.mxu0 %v3643_v2 }
0x1e08   :  { %3341 = vmatpush3.bf16.msra.mxu0 %v4316_v52 }
0x1e09   :  { %3360 = vmatprep.subr.bf16.mxu0 %v3643_v2 }
0x1eab   :  { %v1951_v58 = vpop.f32.mrf.mxu0 }
0x1eac   :  { %v1952_v23 = vadd.f32 %v4518_v53, %v1951_v58 }
0x1ead   :  { %v3302_v21 = vpop.f32.mrf.mxu0 }
0x1eae   :  { %v1957_v42 = vand.u32 2147483647, %v1952_v23  ;;  %v1959_v60 = vmul.f32 %v1958_v18, %v1952_v23 }
0x1eaf   :  { %v1954_v33 = vpop.f32.mrf.mxu0 }
0x1eb0   :  { %v1961_v40 = vadd.f32 %v1960_v34, %v1959_v60  ;;  %1963 = vrot.lane.b32.xlu1 %v1957_v42, %s3646_s21 }
0x1eb1   :  { %v3303_v43 = vpop.f32.mrf.mxu0 }
0x1eb2   :  { %v1978_v35 = vmul.f32 %v2647_v19, %v1961_v40 }
0x1eb4   :  { %v1981_v37 = vadd.f32 %v1980_v44, %v1978_v35 }
0x1eb6   :  { %v1989_v63 = vpack.c.bf16 %v1981_v37, %v1981_v37 }
0x1eb8   :  { %3309 = vmatmul.mubr.msk.bf16.vlgmr.msra.gmra.mxu1 %vm121_vm2, %v1989_v63 }
0x1eb9   :  { %3313 = vmatpush3.bf16.msra.mxu1 %v4335_v26  ;;  %3322 = vmatprep.mubr.msk.bf16.mxu1 %vm3644_vm0, %v3643_v2 }
0x1eba   :  { %3314 = vmatprep.subr.bf16.mxu1 %v3643_v2 }
0x1ebd   :  { %3315 = vmatpush3.bf16.msra.mxu1 %v4344_v20 }
0x1ebe   :  { %3316 = vmatprep.subr.bf16.mxu1 %v3643_v2 }
0x1ec1   :  { %3317 = vmatpush3.bf16.msra.mxu1 %v4351_v15 }
0x1ec2   :  { %3318 = vmatprep.subr.bf16.mxu1 %v3643_v2 }
0x1ec5   :  { %3319 = vmatpush3.bf16.msra.mxu1 %v4358_v41 }
0x1ec6   :  { %3320 = vmatprep.subr.bf16.mxu1 %v3643_v2 }
0x1ec9   :  { %3321 = vmatpush3.bf16.msra.mxu1 %v4365_v59 }
0x1eca   :  { %3346 = vmatprep.subr.bf16.mxu1 %v3643_v2 }
0x1f22   :  { %v1964_v32 = vpop.permute.xlu1 %1963 }
0x1f23   :  { %v1966_v45 = vmul.f32 %v1964_v32, %v1958_v18 }
0x1f25   :  { %v1968_v39 = vadd.f32 %v1967_v4, %v1966_v45 }
0x1f27   :  { %v1982_v3 = vmul.f32 %v2647_v19, %v1968_v39 }
0x1f29   :  { %v1984_v27 = vadd.f32 %v1983_v1, %v1982_v3 }
0x1f2b   :  { %v4646_v12 = vand.u32 2147483647, %v1984_v27  ;;  %v2253_v27 = vpop.permute.xlu0 %2252 }
0x1f2d   :  { %2038 = vrot.lane.b32.xlu1 %v4646_v12, %s3647_s16 }
0x1f31   :  { %2042 = vrot.lane.b32.xlu1 %v2649_v55, %s3640_s27 }
0x1f78   :  { %v2027_v54 = vpop.f32.mrf.mxu1 }
0x1f79   :  { %v2028_v7 = vadd.f32 %v4380_v38, %v2027_v54  ;;  %v2255_v54 = vsel %vm556_vm1, %v2253_v27, 0.0 }
0x1f7a   :  { %v3310_v13 = vpop.f32.mrf.mxu1 }
0x1f7b   :  { %3535 = vtanh.f32 %v2028_v7 }
0x1f7c   :  { %v2030_v6 = vpop.f32.mrf.mxu1 }
0x1f7e   :  { %v3311_v56 = vpop.f32.mrf.mxu1 }
0x1f88   :  { %v3536_v62 = vpop.eup %3535 }
0x1f89   :  { %v2035_v57 = vmul.f32 %v3536_v62, %v2034_v8 }
0x1f8b   :  { %v4652_v19 = vadd.f32 %v2035_v57, %v1981_v37 }
0x1f9f   :  { %v2039_v9 = vpop.permute.xlu1 %2038 }
0x1fa0   :  { %v2045_v58 = vsel %vm121_vm2, %v4652_v19, %v2039_v9 }
0x1fa3   :  { %v2043_v23 = vpop.permute.xlu1 %2042 }
0x1fa4   :  { %v2046_v18 = vsel %vm174_vm3, %v2045_v58, %v2043_v23 }
0x1fa5   :  { %v2047_v21 = vpack.c.bf16 %v2046_v18, %v2046_v18 }
0x1fa7   :  { %3323 = vmatmul.mubr.msk.bf16.vlgmr.msra.gmra.mxu1 %vm217_vm4, %v2047_v21 }
0x1fa8   :  { %3347 = vmatpush3.bf16.msra.mxu1 %v4395_v29  ;;  %3356 = vmatprep.mubr.msk.bf16.mxu1 %vm3644_vm0, %v3643_v2 }
0x1fa9   :  { %3348 = vmatprep.subr.bf16.mxu1 %v3643_v2 }
0x1fac   :  { %3349 = vmatpush3.bf16.msra.mxu1 %v4404_v30 }
0x1fad   :  { %3350 = vmatprep.subr.bf16.mxu1 %v3643_v2 }
0x1fb0   :  { %3351 = vmatpush3.bf16.msra.mxu1 %v4411_v46 }
0x1fb1   :  { %3352 = vmatprep.subr.bf16.mxu1 %v3643_v2 }
0x1fb4   :  { %3353 = vmatpush3.bf16.msra.mxu1 %v4418_v31 }
0x1fb5   :  { %3354 = vmatprep.subr.bf16.mxu1 %v3643_v2 }
0x1fb8   :  { %3355 = vmatpush3.bf16.msra.mxu1 %v4425_v47 }
0x1fb9   :  { %3372 = vmatprep.subr.bf16.mxu1 %v3643_v2 }
0x2067   :  { %v2085_v55 = vpop.f32.mrf.mxu1 }
0x2068   :  { %v2086_v25 = vadd.f32 %v4432_v48, %v2085_v55 }
0x2069   :  { %v3324_v42 = vpop.f32.mrf.mxu1 }
0x206a   :  { %3537 = vtanh.f32 %v2086_v25 }
0x206b   :  { %v2088_v60 = vpop.f32.mrf.mxu1 }
0x206d   :  { %v3325_v34 = vpop.f32.mrf.mxu1 }
0x2077   :  { %v3538_v33 = vpop.eup %3537 }
0x2078   :  { %v2092_v40 = vpack.c.bf16 %v3538_v33, %v3538_v33 }
0x207a   :  { %3343 = vmatmul.mubr.bf16.vlgmr.msra.gmra.mxu0 %v2092_v40 }
0x207b   :  { %3361 = vmatpush3.bf16.msra.mxu0 %v4438_v22  ;;  %3368 = vmatprep.mubr.msk.bf16.mxu0 %vm3644_vm0, %v3643_v2 }
0x207c   :  { %3362 = vmatprep.subr.bf16.mxu0 %v3643_v2 }
0x207f   :  { %3363 = vmatpush3.bf16.msra.mxu0 %v4447_v61 }
0x2080   :  { %3364 = vmatprep.subr.bf16.mxu0 %v3643_v2 }
0x2083   :  { %3365 = vmatpush3.bf16.msra.mxu0 %v4454_v11 }
0x2084   :  { %3366 = vmatprep.subr.bf16.mxu0 %v3643_v2 }
0x2087   :  { %3367 = vmatpush3.bf16.msra.mxu0 %v4461_v16 }
0x2088   :  { %3394 = vmatprep.subr.bf16.mxu0 %v3643_v2 }
0x213a   :  { %v2127_v43 = vpop.f32.mrf.mxu0 }
0x213b   :  { %v2128_v44 = vadd.f32 %v4468_v17, %v2127_v43 }
0x213c   :  { %v3344_v35 = vpop.f32.mrf.mxu0 }
0x213d   :  { %v2652_v37 = vmul.f32 -1.442695, %v2128_v44 }
0x213e   :  { %v2130_v63 = vpop.f32.mrf.mxu0 }
0x213f   :  { %3539 = vpow2.f32 %v2652_v37 }
0x2140   :  { %v3345_v32 = vpop.f32.mrf.mxu0 }
0x214c   :  { %v3540_v4 = vpop.eup %3539 }
0x214d   :  { %v2136_v45 = vadd.f32 1.0, %v3540_v4 }
0x214f   :  { %3541 = vrcp.f32 %v2136_v45 }
0x215c   :  { %v4682_v39 = vpop.eup %3541 }
0x215d   :  { %2140 = vrot.lane.b32.xlu1 %v4682_v39, %s3646_s21 }
0x21cf   :  { %v2141_v1 = vpop.permute.xlu1 %2140 }
0x21d0   :  { %v2144_v3 = vmul.f32 %v2141_v1, %v4646_v12  ;;  %v2143_v13 = vmul.f32 %v2141_v1, %v4652_v19 }
0x21d2   :  { %2146 = vrot.lane.b32.xlu1 %v2144_v3, %s3647_s16 }
0x21f6   :  { %2256 = vadd.xlane.f32.xlu1 %v2255_v54 }
0x2244   :  { %v2147_v6 = vpop.permute.xlu1 %2146 }
0x2245   :  { %v2149_v56 = vsel %vm121_vm2, %v2143_v13, %v2147_v6 }
0x2246   :  { %v2150_v7 = vsel %vm174_vm3, %v2149_v56, %v2043_v23 }
0x2247   :  { %v2151_v62 = vpack.c.bf16 %v2150_v7, %v2150_v7 }
0x2249   :  { %3357 = vmatmul.mubr.msk.bf16.vlgmr.msra.gmra.mxu1 %vm217_vm4, %v2151_v62 }
0x224a   :  { %3373 = vmatpush3.bf16.msra.mxu1 %v4250_v14  ;;  %3376 = vmatprep.mubr.msk.bf16.mxu1 %vm3644_vm0, %v3643_v2 }
0x224b   :  { %3374 = vmatprep.subr.bf16.mxu1 %v3643_v2 }
0x224e   :  { %3375 = vmatpush3.bf16.msra.mxu1 %v4256_v28 }
0x224f   :  { %3380 = vmatprep.subr.bf16.mxu1 %v3643_v2 }
0x227f   :  { %v2257_v14 = vpop.xlane.xlu1 %2256 }
0x2280   :  { %vm2258_vm11 = vcmp.gt.f32.partialorder %v2257_v14, 0.0 }
0x2281   :  { %v2655_v28 = vsel %vm2258_vm11, 1.0, %v3643_v2 }
0x2309   :  { %v2189_v8 = vpop.f32.mrf.mxu1 }
0x230a   :  { %v2190_v57 = vadd.f32 %v4492_v0, %v2189_v8 }
0x230b   :  { %v3358_v9 = vpop.f32.mrf.mxu1 }
0x230c   :  { %3543 = vtanh.f32 %v2190_v57 }
0x230d   :  { %v2192_v58 = vpop.f32.mrf.mxu1 }
0x230f   :  { %v3359_v23 = vpop.f32.mrf.mxu1 }
0x2319   :  { %v3544_v18 = vpop.eup %3543 }
0x231a   :  { %v2196_v21 = vpack.c.bf16 %v3544_v18, %v3544_v18 }
0x231c   :  { %3369 = vmatmul.mubr.msk.bf16.vlgmr.msra.gmra.mxu0 %vm174_vm3, %v2196_v21 }
0x231d   :  { %3395 = vmatpush3.bf16.msra.mxu0 %v4265_v49  ;;  %3410 = vmatprep.mubr.msk.bf16.mxu0 %vm3644_vm0, %v3643_v2 }
0x231e   :  { %3396 = vmatprep.subr.bf16.mxu0 %v3643_v2 }
0x2321   :  { %3397 = vmatpush3.bf16.msra.mxu0 %v4274_v10 }
0x2322   :  { %3398 = vmatprep.subr.bf16.mxu0 %v3643_v2 }
0x2325   :  { %3399 = vmatpush3.bf16.msra.mxu0 %v4281_v50  ;;  %v2241_v50 = vsub.f32 1.0, %v4682_v39 }
0x2326   :  { %3400 = vmatprep.subr.bf16.mxu0 %v3643_v2 }
0x2329   :  { %3401 = vmatpush3.bf16.msra.mxu0 %v4288_v51 }
0x232a   :  { %3402 = vmatprep.subr.bf16.mxu0 %v3643_v2 }
0x232d   :  { %3403 = vmatpush3.bf16.msra.mxu0 %v4295_v24  ;;  %v2657_v24 = vld [vmem:[%s4804_s1 + $0x38] sm:$0xff]  ;;  %s2656_s1 = sld [smem:[#allocation2 + $0x7]] }
0x232e   :  { %3404 = vmatprep.subr.bf16.mxu0 %v3643_v2  ;;  %2535 = vrot.lane.b32.xlu1 %v2657_v24, %s3642_s14 }
0x2331   :  { %3405 = vmatpush3.bf16.msra.mxu0 %v4302_v5  ;;  %v2262_v5 = vsub.f32 1.0, %v2655_v28 }
0x2332   :  { %3406 = vmatprep.subr.bf16.mxu0 %v3643_v2 }
0x2333   :  { %v2263_v34 = vmul.f32 %v2262_v5, %v4652_v19  ;;  %v2266_v35 = vmul.f32 %v2262_v5, %v4646_v12  ;;  %v2317_v1 = vstv %s2656_s1 }
0x2335   :  { %3407 = vmatpush3.bf16.msra.mxu0 %v4309_v36 }
0x2336   :  { %3408 = vmatprep.subr.bf16.mxu0 %v3643_v2 }
0x2339   :  { %3409 = vmatpush3.bf16.msra.mxu0 %v4316_v52  ;;  %v2243_v52 = vmul.f32 %v4682_v39, %v4652_v19  ;;  %v2250_v19 = vmul.f32 %v4682_v39, %v4646_v12 }
0x233a   :  { %3428 = vmatprep.subr.bf16.mxu0 %v3643_v2 }
0x23dc   :  { %v2234_v49 = vpop.f32.mrf.mxu0 }
0x23dd   :  { %v2235_v10 = vadd.f32 %v4518_v53, %v2234_v49 }
0x23de   :  { %v3370_v51 = vpop.f32.mrf.mxu0 }
0x23df   :  { %v2240_v36 = vand.u32 2147483647, %v2235_v10  ;;  %v2242_v55 = vmul.f32 %v2241_v50, %v2235_v10 }
0x23e0   :  { %v2237_v25 = vpop.f32.mrf.mxu0 }
0x23e1   :  { %v2244_v42 = vadd.f32 %v2243_v52, %v2242_v55  ;;  %2246 = vrot.lane.b32.xlu0 %v2240_v36, %s3646_s21 }
0x23e2   :  { %v3371_v60 = vpop.f32.mrf.mxu0 }
0x23e3   :  { %v2261_v33 = vmul.f32 %v2655_v28, %v2244_v42 }
0x23e5   :  { %v2264_v40 = vadd.f32 %v2263_v34, %v2261_v33 }
0x23e7   :  { %v2272_v43 = vpack.c.bf16 %v2264_v40, %v2264_v40 }
0x23e9   :  { %3377 = vmatmul.mubr.msk.bf16.vlgmr.msra.gmra.mxu1 %vm121_vm2, %v2272_v43 }
0x23ea   :  { %3381 = vmatpush3.bf16.msra.mxu1 %v4335_v26  ;;  %3390 = vmatprep.mubr.msk.bf16.mxu1 %vm3644_vm0, %v3643_v2 }
0x23eb   :  { %3382 = vmatprep.subr.bf16.mxu1 %v3643_v2 }
0x23ee   :  { %3383 = vmatpush3.bf16.msra.mxu1 %v4344_v20 }
0x23ef   :  { %3384 = vmatprep.subr.bf16.mxu1 %v3643_v2 }
0x23f2   :  { %3385 = vmatpush3.bf16.msra.mxu1 %v4351_v15 }
0x23f3   :  { %3386 = vmatprep.subr.bf16.mxu1 %v3643_v2 }
0x23f6   :  { %3387 = vmatpush3.bf16.msra.mxu1 %v4358_v41 }
0x23f7   :  { %3388 = vmatprep.subr.bf16.mxu1 %v3643_v2 }
0x23fa   :  { %3389 = vmatpush3.bf16.msra.mxu1 %v4365_v59 }
0x23fb   :  { %3414 = vmatprep.subr.bf16.mxu1 %v3643_v2 }
0x2453   :  { %v2247_v26 = vpop.permute.xlu0 %2246 }
0x2454   :  { %v2249_v44 = vmul.f32 %v2247_v26, %v2241_v50 }
0x2456   :  { %v2251_v20 = vadd.f32 %v2250_v19, %v2249_v44 }
0x2458   :  { %v2265_v37 = vmul.f32 %v2655_v28, %v2251_v20 }
0x245a   :  { %v2267_v15 = vadd.f32 %v2266_v35, %v2265_v37 }
0x245c   :  { %v4746_v63 = vand.u32 2147483647, %v2267_v15 }
0x245e   :  { %2321 = vrot.lane.b32.xlu0 %v4746_v63, %s3647_s16 }
0x2462   :  { %2325 = vrot.lane.b32.xlu0 %v2657_v24, %s3640_s27  ;;  %s3648_s27 = smov [#allocation7]  }
0x2463   :  { %s2564_s14 = sshll.u32 %s3648_s27, 4  ;;  %s2565_s14 = int_to_ptr.vmem [resolvable:$true] %s2564_s14 }
0x2464   :  { %p3617_p6 = scmp.lt.s32.totalorder %s2565_s14, %s2565_s14 }
0x24a9   :  { %v2310_v41 = vpop.f32.mrf.mxu1 }
0x24aa   :  { %v2311_v45 = vadd.f32 %v4380_v38, %v2310_v41 }
0x24ab   :  { %v3378_v59 = vpop.f32.mrf.mxu1 }
0x24ac   :  { %3545 = vtanh.f32 %v2311_v45 }
0x24ad   :  { %v2313_v32 = vpop.f32.mrf.mxu1 }
0x24af   :  { %v3379_v4 = vpop.f32.mrf.mxu1 }
0x24b9   :  { %v3546_v39 = vpop.eup %3545 }
0x24ba   :  { %v2318_v12 = vmul.f32 %v3546_v39, %v2317_v1 }
0x24bc   :  { %v4752_v27 = vadd.f32 %v2318_v12, %v2264_v40 }
0x24d0   :  { %v2322_v3 = vpop.permute.xlu0 %2321 }
0x24d1   :  { %v2328_v54 = vsel %vm121_vm2, %v4752_v27, %v2322_v3 }
0x24d4   :  { %v2326_v13 = vpop.permute.xlu0 %2325 }
0x24d5   :  { %v2329_v6 = vsel %vm174_vm3, %v2328_v54, %v2326_v13 }
0x24d6   :  { %v2330_v56 = vpack.c.bf16 %v2329_v6, %v2329_v6 }
0x24d8   :  { %3391 = vmatmul.mubr.msk.bf16.vlgmr.msra.gmra.mxu1 %vm217_vm4, %v2330_v56 }
0x24d9   :  { %3415 = vmatpush3.bf16.msra.mxu1 %v4395_v29  ;;  %3424 = vmatprep.mubr.msk.bf16.mxu1 %vm3644_vm0, %v3643_v2 }
0x24da   :  { %3416 = vmatprep.subr.bf16.mxu1 %v3643_v2 }
0x24dd   :  { %3417 = vmatpush3.bf16.msra.mxu1 %v4404_v30 }
0x24de   :  { %3418 = vmatprep.subr.bf16.mxu1 %v3643_v2 }
0x24e1   :  { %3419 = vmatpush3.bf16.msra.mxu1 %v4411_v46 }
0x24e2   :  { %3420 = vmatprep.subr.bf16.mxu1 %v3643_v2 }
0x24e5   :  { %3421 = vmatpush3.bf16.msra.mxu1 %v4418_v31 }
0x24e6   :  { %3422 = vmatprep.subr.bf16.mxu1 %v3643_v2 }
0x24e9   :  { %3423 = vmatpush3.bf16.msra.mxu1 %v4425_v47 }
0x2598   :  { %v2368_v38 = vpop.f32.mrf.mxu1 }
0x2599   :  { %v2369_v29 = vadd.f32 %v4432_v48, %v2368_v38 }
0x259a   :  { %v3392_v7 = vpop.f32.mrf.mxu1 }
0x259b   :  { %3547 = vtanh.f32 %v2369_v29 }
0x259c   :  { %v2371_v62 = vpop.f32.mrf.mxu1 }
0x259e   :  { %v3393_v8 = vpop.f32.mrf.mxu1 }
0x25a8   :  { %v3548_v30 = vpop.eup %3547 }
0x25a9   :  { %v2375_v57 = vpack.c.bf16 %v3548_v30, %v3548_v30 }
0x25ab   :  { %3411 = vmatmul.mubr.bf16.vlgmr.msra.gmra.mxu0 %v2375_v57 }
0x25ac   :  { %3429 = vmatpush3.bf16.msra.mxu0 %v4438_v22  ;;  %3436 = vmatprep.mubr.msk.bf16.mxu0 %vm3644_vm0, %v3643_v2 }
0x25ad   :  { %3430 = vmatprep.subr.bf16.mxu0 %v3643_v2 }
0x25b0   :  { %3431 = vmatpush3.bf16.msra.mxu0 %v4447_v61 }
0x25b1   :  { %3432 = vmatprep.subr.bf16.mxu0 %v3643_v2 }
0x25b4   :  { %3433 = vmatpush3.bf16.msra.mxu0 %v4454_v11 }
0x25b5   :  { %3434 = vmatprep.subr.bf16.mxu0 %v3643_v2 }
0x25b8   :  { %3435 = vmatpush3.bf16.msra.mxu0 %v4461_v16  ;;  %v2536_v16 = vpop.permute.xlu1 %2535 }
0x25b9   :  { %v2538_v21 = vsel %vm556_vm1, %v2536_v16, 0.0 }
0x266b   :  { %v2410_v46 = vpop.f32.mrf.mxu0 }
0x266c   :  { %v2411_v31 = vadd.f32 %v4468_v17, %v2410_v46 }
0x266d   :  { %v3412_v47 = vpop.f32.mrf.mxu0 }
0x266e   :  { %v2660_v48 = vmul.f32 -1.442695, %v2411_v31 }
0x266f   :  { %v2413_v22 = vpop.f32.mrf.mxu0 }
0x2670   :  { %3549 = vpow2.f32 %v2660_v48 }
0x2671   :  { %v3413_v9 = vpop.f32.mrf.mxu0 }
0x267d   :  { %v3550_v58 = vpop.eup %3549 }
0x267e   :  { %v2419_v23 = vadd.f32 1.0, %v3550_v58 }
0x2680   :  { %3551 = vrcp.f32 %v2419_v23 }
0x268d   :  { %v3552_v61 = vpop.eup %3551 }
0x268e   :  { %2423 = vrot.lane.b32.xlu0 %v3552_v61, %s3646_s21  ;;  %v2524_v33 = vsub.f32 1.0, %v3552_v61  ;;  %v2526_v19 = vmul.f32 %v3552_v61, %v4752_v27  ;;  %v2533_v59 = vmul.f32 %v3552_v61, %v4746_v63 }
0x2700   :  { %v2424_v18 = vpop.permute.xlu0 %2423 }
0x2701   :  { %v2427_v11 = vmul.f32 %v2424_v18, %v4746_v63  ;;  %v2426_v17 = vmul.f32 %v2424_v18, %v4752_v27 }
0x2703   :  { %2429 = vrot.lane.b32.xlu0 %v2427_v11, %s3647_s16 }
0x2722   :  { %2539 = vadd.xlane.f32.xlu0 %v2538_v21 }
0x2775   :  { %v2430_v14 = vpop.permute.xlu0 %2429 }
0x2776   :  { %v2432_v28 = vsel %vm121_vm2, %v2426_v17, %v2430_v14 }
0x2777   :  { %v2433_v49 = vsel %vm174_vm3, %v2432_v28, %v2326_v13 }
0x2778   :  { %v2434_v10 = vpack.c.bf16 %v2433_v49, %v2433_v49 }
0x277a   :  { %3425 = vmatmul.mubr.msk.bf16.vlgmr.msra.gmra.mxu1 %vm217_vm4, %v2434_v10 }
0x27ab   :  { %v2540_v25 = vpop.xlane.xlu0 %2539 }
0x27ac   :  { %vm2541_vm12 = vcmp.gt.f32.partialorder %v2540_v25, 0.0 }
0x27ad   :  { %v2663_v42 = vsel %vm2541_vm12, 1.0, %v3643_v2 }
0x27ae   :  { %v2545_v43 = vsub.f32 1.0, %v2663_v42 }
0x27b0   :  { %v2546_v37 = vmul.f32 %v2545_v43, %v4752_v27  ;;  %v2549_v4 = vmul.f32 %v2545_v43, %v4746_v63 }
0x283a   :  { %v2472_v50 = vpop.f32.mrf.mxu1 }
0x283b   :  { %v2473_v51 = vadd.f32 %v4492_v0, %v2472_v50 }
0x283c   :  { %v3426_v24 = vpop.f32.mrf.mxu1 }
0x283d   :  { %3553 = vtanh.f32 %v2473_v51 }
0x283e   :  { %v2475_v5 = vpop.f32.mrf.mxu1 }
0x2840   :  { %v3427_v36 = vpop.f32.mrf.mxu1 }
0x284a   :  { %v3554_v55 = vpop.eup %3553 }
0x284b   :  { %v2479_v52 = vpack.c.bf16 %v3554_v55, %v3554_v55 }
0x284d   :  { %3437 = vmatmul.mubr.msk.bf16.vlgmr.msra.gmra.mxu0 %vm174_vm3, %v2479_v52 }
0x290d   :  { %v2517_v60 = vpop.f32.mrf.mxu0 }
0x290e   :  { %v2518_v34 = vadd.f32 %v4518_v53, %v2517_v60 }
0x290f   :  { %v3438_v40 = vpop.f32.mrf.mxu0 }
0x2910   :  { %v2523_v26 = vand.u32 2147483647, %v2518_v34  ;;  %v2525_v0 = vmul.f32 %v2524_v33, %v2518_v34 }
0x2911   :  { %v2520_v44 = vpop.f32.mrf.mxu0 }
0x2912   :  { %v2527_v20 = vadd.f32 %v2526_v19, %v2525_v0  ;;  %2529 = vrot.lane.b32.xlu1 %v2523_v26, %s3646_s21  ;;  %s3612_s21 = scalar_lea.vmem %s2565_s14, 128 }
0x2913   :  { %v3439_v35 = vpop.f32.mrf.mxu0  ;;  %p3613_p5 = scmp.ne.s32.totalorder %s2565_s14, %s3612_s21  ;;  %p3618_p7 = scmp.lt.s32.totalorder %s3612_s21, %s3612_s21 }
0x2914   :  { %v2544_v15 = vmul.f32 %v2663_v42, %v2527_v20 }
0x2915   :  { %p3619_p8 = por %p3618_p7, %p3617_p6 }
0x2916   :  { %v2547_v41 = vadd.f32 %v2546_v37, %v2544_v15 }
0x2917   :  { %p3620_p9 = pnand %p3619_p8, %p3613_p5 }
0x2984   :  { %v2530_v2 = vpop.permute.xlu1 %2529 }
0x2985   :  { %v2532_v53 = vmul.f32 %v2530_v2, %v2524_v33 }
0x2987   :  { %v2534_v32 = vadd.f32 %v2533_v59, %v2532_v53 }
0x2989   :  { %v2548_v45 = vmul.f32 %v2663_v42, %v2534_v32 }
0x298b   :  { %v2550_v39 = vadd.f32 %v2549_v4, %v2548_v45 }
0x298d   :  { %v2551_v1 = vand.u32 2147483647, %v2550_v39 }
0x298f   :  { %2553 = vrot.lane.b32.xlu1 %v2551_v1, %s3647_s16 }
0x2a01   :  { %v2554_v12 = vpop.permute.xlu1 %2553 }
0x2a02   :  { %v2556_v3 = vsel %vm121_vm2, %v2547_v41, %v2554_v12 }
0x2a03   :  { %2557 = vst.msk [vmem:[#allocation7] sm:$0xff] %vm174_vm3, %v2556_v3 }
0x2a04   :  { %3623 = shalt.err (!%p3620_p9)
}
0x2a05   :  { %2567 = dma.vmem_to_hbm [thread:$0]  %s2565_s14, 128, %s4815_s12, [#allocation4]  }
0x2a06   :  { %3636 = dma.done.wait [#allocation4], 128  }
0x2a07   :  { %3637 = vsyncadd [#allocation4], 4294967168 }
0x2a08   :  { %2571 = vsyncpa [#allocation3], 1 }
0x2a09   :  { %2572 = vsyncpa [#allocation4], 1 }
0x2a0a   :  { %2573 = vsyncpa [#allocation5], 1 }

</bundles_post_ra>
